<compile_context>
chip_gen: v7x
topology: tpu7x:2x2x1
jax: 0.10.0
libtpu: 0.0.40
codegen_flags: <defaults>
</compile_context>

<pallas_src>
import jax
import jax.numpy as jnp
from jax.experimental import pallas as pl
from jax.experimental.pallas import tpu as pltpu


# ----------------------------- model dimensions -----------------------------
BATCH = 8
EMB = 32
HIDDEN = 32          # 4 * HIDDEN = 128  -> gate matrix is lane-dense
SRC_VOCAB = 128
TGT_VOCAB = 128
SRC_LEN = 10
TGT_LEN = 8


def _lstm_gates_to_hc(gates, c):
    """PyTorch nn.LSTM nonlinearity. Gate order: i, f, g, o.

    sigmoid/tanh are applied to the full (B, 4H) vreg first (EUP slot), then
    the per-gate 32-lane columns are selected.
    """
    sig = jax.nn.sigmoid(gates)
    th = jnp.tanh(gates)
    i = sig[:, 0 * HIDDEN:1 * HIDDEN]
    f = sig[:, 1 * HIDDEN:2 * HIDDEN]
    g = th[:, 2 * HIDDEN:3 * HIDDEN]
    o = sig[:, 3 * HIDDEN:4 * HIDDEN]
    c_new = f * c + i * g
    h_new = o * jnp.tanh(c_new)
    return h_new, c_new


# ------------------------- fused seq2seq forward kernel ----------------------
def seq2seq_kernel(src_ref, tgt_ref, tf_ref,
                   enc_w_ref, enc_b_ref,
                   dec_w_ref, dec_b_ref,
                   fc_w_ref, fc_b_ref,
                   out_ref):
    """Single-invocation fused encoder + decoder forward.

    src_ref : (SRC_LEN, B, 1) int32   source tokens
    tgt_ref : (TGT_LEN, B, 1) int32   target tokens
    tf_ref  : (TGT_LEN, B, 1) int32   teacher-forcing flag per step (batch-broadcast)
    enc_w_ref / dec_w_ref : (VOCAB + HIDDEN, 4H) fused [embed @ W_ih^T ; W_hh^T]
    enc_b_ref / dec_b_ref : (1, 4H)              combined b_ih + b_hh
    fc_w_ref : (HIDDEN, TGT_VOCAB)               output projection (transposed)
    fc_b_ref : (1, TGT_VOCAB)
    out_ref  : (TGT_LEN, B, TGT_VOCAB) float32 logits; row 0 stays zero
    """
    iota_src = jax.lax.broadcasted_iota(jnp.int32, (BATCH, SRC_VOCAB), 1)
    iota_tgt = jax.lax.broadcasted_iota(jnp.int32, (BATCH, TGT_VOCAB), 1)
    iota_tgt_f = iota_tgt.astype(jnp.float32)

    def lstm_cell(onehot, h, c, w_ref, b_ref):
        # [one_hot(token) | h] @ [[embed @ W_ih^T], [W_hh^T]]  == x_emb@W_ih^T + h@W_hh^T
        xh = jnp.concatenate([onehot, h], axis=-1)                        # (B, V+H)
        gates = (jnp.dot(xh, w_ref[...], preferred_element_type=jnp.float32)
                 + b_ref[...])                                            # (B, 4H)
        return _lstm_gates_to_hc(gates, c)

    # ------------------------------ encoder ----------------------------------
    h = jnp.zeros((BATCH, HIDDEN), jnp.float32)
    c = jnp.zeros((BATCH, HIDDEN), jnp.float32)
    for t in range(SRC_LEN):
        onehot = (iota_src == src_ref[t]).astype(jnp.float32)             # (B, V)
        h, c = lstm_cell(onehot, h, c, enc_w_ref, enc_b_ref)

    # ------------------------------ decoder ----------------------------------
    out_ref[0] = jnp.zeros((BATCH, TGT_VOCAB), jnp.float32)               # outputs[0] == 0
    x = tgt_ref[0]                                                        # (B, 1) int32
    for t in range(1, TGT_LEN):
        onehot = (iota_tgt == x).astype(jnp.float32)                      # (B, V)
        h, c = lstm_cell(onehot, h, c, dec_w_ref, dec_b_ref)
        logits = (jnp.dot(h, fc_w_ref[...], preferred_element_type=jnp.float32)
                  + fc_b_ref[...])                                        # (B, V)
        out_ref[t] = logits

        # argmax(logits, axis=1) as "first index attaining the max"
        # (kept 2-D / lane-dense; matches torch & jnp argmax tie-breaking).
        m = jnp.max(logits, axis=1, keepdims=True)                        # (B, 1)
        cand = jnp.where(logits == m, iota_tgt_f, float(TGT_VOCAB))
        best = jnp.min(cand, axis=1, keepdims=True).astype(jnp.int32)     # (B, 1)

        # teacher forcing: one coin per timestep, shared across the batch.
        x = jnp.where(tf_ref[t] != 0, tgt_ref[t], best)


# ------------------------------ jitted wrapper --------------------------------
@jax.jit
def _seq2seq_forward_impl(params, source, target, tf_key, teacher_force_ratio):
    tgt_len, batch = target.shape

    # Fold the embedding tables into the input-to-gate weights and stack with
    # the hidden-to-gate weights -> one (160, 128) MXU matmul per LSTM step.
    enc_wbig = jnp.concatenate(
        [jnp.dot(params["enc_embed"], params["enc_wih_t"]), params["enc_whh_t"]],
        axis=0)                                                  # (SRC_VOCAB+H, 4H)
    dec_wbig = jnp.concatenate(
        [jnp.dot(params["dec_embed"], params["dec_wih_t"]), params["dec_whh_t"]],
        axis=0)                                                  # (TGT_VOCAB+H, 4H)

    src_tok = source.astype(jnp.int32)[:, :, None]               # (SRC_LEN, B, 1)
    tgt_tok = target.astype(jnp.int32)[:, :, None]               # (TGT_LEN, B, 1)

    # One teacher-forcing coin per decoder timestep (index 0 unused).
    coins = jax.random.uniform(tf_key, (tgt_len,))
    tf_flags = (coins < teacher_force_ratio).astype(jnp.int32)
    tf_flags = jnp.broadcast_to(tf_flags[:, None, None], (tgt_len, batch, 1))

    vmem = pl.BlockSpec(memory_space=pltpu.MemorySpace.VMEM)
    out_shape = jax.ShapeDtypeStruct((tgt_len, batch, TGT_VOCAB), jnp.float32)
    return pl.pallas_call(
        seq2seq_kernel,
        out_shape=out_shape,
        in_specs=[vmem] * 9,
        out_specs=vmem,
    )(src_tok, tgt_tok, tf_flags,
      enc_wbig, params["enc_b"],
      dec_wbig, params["dec_b"],
      params["dec_wfc_t"], params["dec_bfc"])


def seq2seq_forward(params, source, target, teacher_force_ratio=0.5,
                    tf_key=jax.random.PRNGKey(42)):
    """source: (SRC_LEN, B) int32, target: (TGT_LEN, B) int32
       returns outputs: (TGT_LEN, B, TGT_VOCAB) float32 (row 0 stays zero)."""
    return _seq2seq_forward_impl(params, source, target, tf_key,
                                 jnp.float32(teacher_force_ratio))


# ------------------------------ parameter init -------------------------------
def init_params(key):
    ks = jax.random.split(key, 10)
    scale = 1.0 / jnp.sqrt(jnp.float32(HIDDEN))

    def u(k, shape):
        return jax.random.uniform(k, shape, jnp.float32, -scale, scale)

    return {
        # encoder
        "enc_embed": u(ks[0], (SRC_VOCAB, EMB)),
        "enc_wih_t": u(ks[1], (EMB, 4 * HIDDEN)),      # W_ih^T
        "enc_whh_t": u(ks[2], (HIDDEN, 4 * HIDDEN)),   # W_hh^T
        "enc_b": u(ks[3], (1, 4 * HIDDEN)),            # b_ih + b_hh (combined)
        # decoder
        "dec_embed": u(ks[4], (TGT_VOCAB, EMB)),
        "dec_wih_t": u(ks[5], (EMB, 4 * HIDDEN)),
        "dec_whh_t": u(ks[6], (HIDDEN, 4 * HIDDEN)),
        "dec_b": u(ks[7], (1, 4 * HIDDEN)),
        "dec_wfc_t": u(ks[8], (HIDDEN, TGT_VOCAB)),    # fc weight^T
        "dec_bfc": u(ks[9], (1, TGT_VOCAB)),
    }


# ------------------------------------ main ------------------------------------
if __name__ == "__main__":
    key = jax.random.PRNGKey(0)
    k_par, k_src, k_tgt = jax.random.split(key, 3)

    params = init_params(k_par)
    source = jax.random.randint(k_src, (SRC_LEN, BATCH), 0, SRC_VOCAB, jnp.int32)
    target = jax.random.randint(k_tgt, (TGT_LEN, BATCH), 0, TGT_VOCAB, jnp.int32)

    outputs = seq2seq_forward(params, source, target, teacher_force_ratio=0.5)
    outputs = jax.block_until_ready(outputs)

    assert outputs.shape == (TGT_LEN, BATCH, TGT_VOCAB)
    assert outputs.dtype == jnp.float32
    assert bool(jnp.all(outputs[0] == 0.0))       # outputs[0] intentionally zero
    assert bool(jnp.all(jnp.isfinite(outputs)))
    print("KERNEL_OK")
</pallas_src>

<mosaic_0001>
module attributes {stable_mosaic.version = 11 : i64} {
  func.func @seq2seq_kernel(%arg0: memref<10x8x1xi32, #tpu.memory_space<vmem>>, %arg1: memref<8x8x1xi32, #tpu.memory_space<vmem>>, %arg2: memref<8x8x1xi32, #tpu.memory_space<vmem>>, %arg3: memref<160x128xf32, #tpu.memory_space<vmem>>, %arg4: memref<1x128xf32, #tpu.memory_space<vmem>>, %arg5: memref<160x128xf32, #tpu.memory_space<vmem>>, %arg6: memref<1x128xf32, #tpu.memory_space<vmem>>, %arg7: memref<32x128xf32, #tpu.memory_space<vmem>>, %arg8: memref<1x128xf32, #tpu.memory_space<vmem>>, %arg9: memref<8x8x128xf32, #tpu.memory_space<vmem>>) attributes {dimension_semantics = [], scalar_prefetch = 0 : i64, scratch_operands = 0 : i64, tpu.core_type = #tpu.core_type<tc>} {
    %0 = tpu.iota {dimensions = array<i32: 1>} : vector<8x128xi32>
    %1 = tpu.iota {dimensions = array<i32: 1>} : vector<8x128xi32>
    %2 = arith.sitofp %1 : vector<8x128xi32> to vector<8x128xf32>
    %cst = arith.constant 0.000000e+00 : f32
    %3 = vector.broadcast %cst : f32 to vector<8x32xf32>
    %cst_0 = arith.constant 0.000000e+00 : f32
    %4 = vector.broadcast %cst_0 : f32 to vector<8x32xf32>
    %c0 = arith.constant 0 : index
    %c0_1 = arith.constant 0 : index
    %c0_2 = arith.constant 0 : index
    %5 = vector.load %arg0[%c0, %c0_1, %c0_2] : memref<10x8x1xi32, #tpu.memory_space<vmem>>, vector<1x8x1xi32>
    %6 = vector.shape_cast %5 : vector<1x8x1xi32> to vector<8x1xi32>
    %7 = vector.broadcast %6 : vector<8x1xi32> to vector<8x128xi32>
    %8 = arith.cmpi eq, %0, %7 : vector<8x128xi32>
    %9 = arith.extui %8 : vector<8x128xi1> to vector<8x128xi32>
    %10 = arith.sitofp %9 : vector<8x128xi32> to vector<8x128xf32>
    %11 = tpu.concatenate %10, %3 in 1 : vector<8x128xf32>, vector<8x32xf32> -> vector<8x160xf32>
    %c0_3 = arith.constant 0 : index
    %c0_4 = arith.constant 0 : index
    %12 = vector.load %arg3[%c0_3, %c0_4] : memref<160x128xf32, #tpu.memory_space<vmem>>, vector<160x128xf32>
    %cst_5 = arith.constant dense<0.000000e+00> : vector<8x128xf32>
    %13 = tpu.matmul %11, %12, %cst_5 {dimension_numbers = #tpu.dot_dimension_numbers<[1], [0], [0], [1], [0, 0, 1, 1], [], []>} : vector<8x160xf32>, vector<160x128xf32>, vector<8x128xf32> -> vector<8x128xf32>
    %c0_6 = arith.constant 0 : index
    %c0_7 = arith.constant 0 : index
    %14 = vector.load %arg4[%c0_6, %c0_7] : memref<1x128xf32, #tpu.memory_space<vmem>>, vector<1x128xf32>
    %15 = vector.broadcast %14 : vector<1x128xf32> to vector<8x128xf32>
    %16 = arith.addf %13, %15 : vector<8x128xf32>
    %17 = arith.negf %16 : vector<8x128xf32>
    %18 = math.exp %17 : vector<8x128xf32>
    %cst_8 = arith.constant 1.000000e+00 : f32
    %19 = vector.broadcast %cst_8 : f32 to vector<8x128xf32>
    %20 = arith.addf %19, %18 : vector<8x128xf32>
    %21 = arith.divf %19, %20 : vector<8x128xf32>
    %22 = math.tanh %16 : vector<8x128xf32>
    %23 = vector.extract_strided_slice %21 {offsets = [0, 0], sizes = [8, 32], strides = [1, 1]} : vector<8x128xf32> to vector<8x32xf32>
    %24 = vector.extract_strided_slice %21 {offsets = [0, 32], sizes = [8, 32], strides = [1, 1]} : vector<8x128xf32> to vector<8x32xf32>
    %25 = vector.extract_strided_slice %22 {offsets = [0, 64], sizes = [8, 32], strides = [1, 1]} : vector<8x128xf32> to vector<8x32xf32>
    %26 = vector.extract_strided_slice %21 {offsets = [0, 96], sizes = [8, 32], strides = [1, 1]} : vector<8x128xf32> to vector<8x32xf32>
    %27 = arith.mulf %24, %4 : vector<8x32xf32>
    %28 = arith.mulf %23, %25 : vector<8x32xf32>
    %29 = arith.addf %27, %28 : vector<8x32xf32>
    %30 = math.tanh %29 : vector<8x32xf32>
    %31 = arith.mulf %26, %30 : vector<8x32xf32>
    %c1 = arith.constant 1 : index
    %c0_9 = arith.constant 0 : index
    %c0_10 = arith.constant 0 : index
    %32 = vector.load %arg0[%c1, %c0_9, %c0_10] : memref<10x8x1xi32, #tpu.memory_space<vmem>>, vector<1x8x1xi32>
    %33 = vector.shape_cast %32 : vector<1x8x1xi32> to vector<8x1xi32>
    %34 = vector.broadcast %33 : vector<8x1xi32> to vector<8x128xi32>
    %35 = arith.cmpi eq, %0, %34 : vector<8x128xi32>
    %36 = arith.extui %35 : vector<8x128xi1> to vector<8x128xi32>
    %37 = arith.sitofp %36 : vector<8x128xi32> to vector<8x128xf32>
    %38 = tpu.concatenate %37, %31 in 1 : vector<8x128xf32>, vector<8x32xf32> -> vector<8x160xf32>
    %c0_11 = arith.constant 0 : index
    %c0_12 = arith.constant 0 : index
    %39 = vector.load %arg3[%c0_11, %c0_12] : memref<160x128xf32, #tpu.memory_space<vmem>>, vector<160x128xf32>
    %cst_13 = arith.constant dense<0.000000e+00> : vector<8x128xf32>
    %40 = tpu.matmul %38, %39, %cst_13 {dimension_numbers = #tpu.dot_dimension_numbers<[1], [0], [0], [1], [0, 0, 1, 1], [], []>} : vector<8x160xf32>, vector<160x128xf32>, vector<8x128xf32> -> vector<8x128xf32>
    %c0_14 = arith.constant 0 : index
    %c0_15 = arith.constant 0 : index
    %41 = vector.load %arg4[%c0_14, %c0_15] : memref<1x128xf32, #tpu.memory_space<vmem>>, vector<1x128xf32>
    %42 = vector.broadcast %41 : vector<1x128xf32> to vector<8x128xf32>
    %43 = arith.addf %40, %42 : vector<8x128xf32>
    %44 = arith.negf %43 : vector<8x128xf32>
    %45 = math.exp %44 : vector<8x128xf32>
    %cst_16 = arith.constant 1.000000e+00 : f32
    %46 = vector.broadcast %cst_16 : f32 to vector<8x128xf32>
    %47 = arith.addf %46, %45 : vector<8x128xf32>
    %48 = arith.divf %46, %47 : vector<8x128xf32>
    %49 = math.tanh %43 : vector<8x128xf32>
    %50 = vector.extract_strided_slice %48 {offsets = [0, 0], sizes = [8, 32], strides = [1, 1]} : vector<8x128xf32> to vector<8x32xf32>
    %51 = vector.extract_strided_slice %48 {offsets = [0, 32], sizes = [8, 32], strides = [1, 1]} : vector<8x128xf32> to vector<8x32xf32>
    %52 = vector.extract_strided_slice %49 {offsets = [0, 64], sizes = [8, 32], strides = [1, 1]} : vector<8x128xf32> to vector<8x32xf32>
    %53 = vector.extract_strided_slice %48 {offsets = [0, 96], sizes = [8, 32], strides = [1, 1]} : vector<8x128xf32> to vector<8x32xf32>
    %54 = arith.mulf %51, %29 : vector<8x32xf32>
    %55 = arith.mulf %50, %52 : vector<8x32xf32>
    %56 = arith.addf %54, %55 : vector<8x32xf32>
    %57 = math.tanh %56 : vector<8x32xf32>
    %58 = arith.mulf %53, %57 : vector<8x32xf32>
    %c2 = arith.constant 2 : index
    %c0_17 = arith.constant 0 : index
    %c0_18 = arith.constant 0 : index
    %59 = vector.load %arg0[%c2, %c0_17, %c0_18] : memref<10x8x1xi32, #tpu.memory_space<vmem>>, vector<1x8x1xi32>
    %60 = vector.shape_cast %59 : vector<1x8x1xi32> to vector<8x1xi32>
    %61 = vector.broadcast %60 : vector<8x1xi32> to vector<8x128xi32>
    %62 = arith.cmpi eq, %0, %61 : vector<8x128xi32>
    %63 = arith.extui %62 : vector<8x128xi1> to vector<8x128xi32>
    %64 = arith.sitofp %63 : vector<8x128xi32> to vector<8x128xf32>
    %65 = tpu.concatenate %64, %58 in 1 : vector<8x128xf32>, vector<8x32xf32> -> vector<8x160xf32>
    %c0_19 = arith.constant 0 : index
    %c0_20 = arith.constant 0 : index
    %66 = vector.load %arg3[%c0_19, %c0_20] : memref<160x128xf32, #tpu.memory_space<vmem>>, vector<160x128xf32>
    %cst_21 = arith.constant dense<0.000000e+00> : vector<8x128xf32>
    %67 = tpu.matmul %65, %66, %cst_21 {dimension_numbers = #tpu.dot_dimension_numbers<[1], [0], [0], [1], [0, 0, 1, 1], [], []>} : vector<8x160xf32>, vector<160x128xf32>, vector<8x128xf32> -> vector<8x128xf32>
    %c0_22 = arith.constant 0 : index
    %c0_23 = arith.constant 0 : index
    %68 = vector.load %arg4[%c0_22, %c0_23] : memref<1x128xf32, #tpu.memory_space<vmem>>, vector<1x128xf32>
    %69 = vector.broadcast %68 : vector<1x128xf32> to vector<8x128xf32>
    %70 = arith.addf %67, %69 : vector<8x128xf32>
    %71 = arith.negf %70 : vector<8x128xf32>
    %72 = math.exp %71 : vector<8x128xf32>
    %cst_24 = arith.constant 1.000000e+00 : f32
    %73 = vector.broadcast %cst_24 : f32 to vector<8x128xf32>
    %74 = arith.addf %73, %72 : vector<8x128xf32>
    %75 = arith.divf %73, %74 : vector<8x128xf32>
    %76 = math.tanh %70 : vector<8x128xf32>
    %77 = vector.extract_strided_slice %75 {offsets = [0, 0], sizes = [8, 32], strides = [1, 1]} : vector<8x128xf32> to vector<8x32xf32>
    %78 = vector.extract_strided_slice %75 {offsets = [0, 32], sizes = [8, 32], strides = [1, 1]} : vector<8x128xf32> to vector<8x32xf32>
    %79 = vector.extract_strided_slice %76 {offsets = [0, 64], sizes = [8, 32], strides = [1, 1]} : vector<8x128xf32> to vector<8x32xf32>
    %80 = vector.extract_strided_slice %75 {offsets = [0, 96], sizes = [8, 32], strides = [1, 1]} : vector<8x128xf32> to vector<8x32xf32>
    %81 = arith.mulf %78, %56 : vector<8x32xf32>
    %82 = arith.mulf %77, %79 : vector<8x32xf32>
    %83 = arith.addf %81, %82 : vector<8x32xf32>
    %84 = math.tanh %83 : vector<8x32xf32>
    %85 = arith.mulf %80, %84 : vector<8x32xf32>
    %c3 = arith.constant 3 : index
    %c0_25 = arith.constant 0 : index
    %c0_26 = arith.constant 0 : index
    %86 = vector.load %arg0[%c3, %c0_25, %c0_26] : memref<10x8x1xi32, #tpu.memory_space<vmem>>, vector<1x8x1xi32>
    %87 = vector.shape_cast %86 : vector<1x8x1xi32> to vector<8x1xi32>
    %88 = vector.broadcast %87 : vector<8x1xi32> to vector<8x128xi32>
    %89 = arith.cmpi eq, %0, %88 : vector<8x128xi32>
    %90 = arith.extui %89 : vector<8x128xi1> to vector<8x128xi32>
    %91 = arith.sitofp %90 : vector<8x128xi32> to vector<8x128xf32>
    %92 = tpu.concatenate %91, %85 in 1 : vector<8x128xf32>, vector<8x32xf32> -> vector<8x160xf32>
    %c0_27 = arith.constant 0 : index
    %c0_28 = arith.constant 0 : index
    %93 = vector.load %arg3[%c0_27, %c0_28] : memref<160x128xf32, #tpu.memory_space<vmem>>, vector<160x128xf32>
    %cst_29 = arith.constant dense<0.000000e+00> : vector<8x128xf32>
    %94 = tpu.matmul %92, %93, %cst_29 {dimension_numbers = #tpu.dot_dimension_numbers<[1], [0], [0], [1], [0, 0, 1, 1], [], []>} : vector<8x160xf32>, vector<160x128xf32>, vector<8x128xf32> -> vector<8x128xf32>
    %c0_30 = arith.constant 0 : index
    %c0_31 = arith.constant 0 : index
    %95 = vector.load %arg4[%c0_30, %c0_31] : memref<1x128xf32, #tpu.memory_space<vmem>>, vector<1x128xf32>
    %96 = vector.broadcast %95 : vector<1x128xf32> to vector<8x128xf32>
    %97 = arith.addf %94, %96 : vector<8x128xf32>
    %98 = arith.negf %97 : vector<8x128xf32>
    %99 = math.exp %98 : vector<8x128xf32>
    %cst_32 = arith.constant 1.000000e+00 : f32
    %100 = vector.broadcast %cst_32 : f32 to vector<8x128xf32>
    %101 = arith.addf %100, %99 : vector<8x128xf32>
    %102 = arith.divf %100, %101 : vector<8x128xf32>
    %103 = math.tanh %97 : vector<8x128xf32>
    %104 = vector.extract_strided_slice %102 {offsets = [0, 0], sizes = [8, 32], strides = [1, 1]} : vector<8x128xf32> to vector<8x32xf32>
    %105 = vector.extract_strided_slice %102 {offsets = [0, 32], sizes = [8, 32], strides = [1, 1]} : vector<8x128xf32> to vector<8x32xf32>
    %106 = vector.extract_strided_slice %103 {offsets = [0, 64], sizes = [8, 32], strides = [1, 1]} : vector<8x128xf32> to vector<8x32xf32>
    %107 = vector.extract_strided_slice %102 {offsets = [0, 96], sizes = [8, 32], strides = [1, 1]} : vector<8x128xf32> to vector<8x32xf32>
    %108 = arith.mulf %105, %83 : vector<8x32xf32>
    %109 = arith.mulf %104, %106 : vector<8x32xf32>
    %110 = arith.addf %108, %109 : vector<8x32xf32>
    %111 = math.tanh %110 : vector<8x32xf32>
    %112 = arith.mulf %107, %111 : vector<8x32xf32>
    %c4 = arith.constant 4 : index
    %c0_33 = arith.constant 0 : index
    %c0_34 = arith.constant 0 : index
    %113 = vector.load %arg0[%c4, %c0_33, %c0_34] : memref<10x8x1xi32, #tpu.memory_space<vmem>>, vector<1x8x1xi32>
    %114 = vector.shape_cast %113 : vector<1x8x1xi32> to vector<8x1xi32>
    %115 = vector.broadcast %114 : vector<8x1xi32> to vector<8x128xi32>
    %116 = arith.cmpi eq, %0, %115 : vector<8x128xi32>
    %117 = arith.extui %116 : vector<8x128xi1> to vector<8x128xi32>
    %118 = arith.sitofp %117 : vector<8x128xi32> to vector<8x128xf32>
    %119 = tpu.concatenate %118, %112 in 1 : vector<8x128xf32>, vector<8x32xf32> -> vector<8x160xf32>
    %c0_35 = arith.constant 0 : index
    %c0_36 = arith.constant 0 : index
    %120 = vector.load %arg3[%c0_35, %c0_36] : memref<160x128xf32, #tpu.memory_space<vmem>>, vector<160x128xf32>
    %cst_37 = arith.constant dense<0.000000e+00> : vector<8x128xf32>
    %121 = tpu.matmul %119, %120, %cst_37 {dimension_numbers = #tpu.dot_dimension_numbers<[1], [0], [0], [1], [0, 0, 1, 1], [], []>} : vector<8x160xf32>, vector<160x128xf32>, vector<8x128xf32> -> vector<8x128xf32>
    %c0_38 = arith.constant 0 : index
    %c0_39 = arith.constant 0 : index
    %122 = vector.load %arg4[%c0_38, %c0_39] : memref<1x128xf32, #tpu.memory_space<vmem>>, vector<1x128xf32>
    %123 = vector.broadcast %122 : vector<1x128xf32> to vector<8x128xf32>
    %124 = arith.addf %121, %123 : vector<8x128xf32>
    %125 = arith.negf %124 : vector<8x128xf32>
    %126 = math.exp %125 : vector<8x128xf32>
    %cst_40 = arith.constant 1.000000e+00 : f32
    %127 = vector.broadcast %cst_40 : f32 to vector<8x128xf32>
    %128 = arith.addf %127, %126 : vector<8x128xf32>
    %129 = arith.divf %127, %128 : vector<8x128xf32>
    %130 = math.tanh %124 : vector<8x128xf32>
    %131 = vector.extract_strided_slice %129 {offsets = [0, 0], sizes = [8, 32], strides = [1, 1]} : vector<8x128xf32> to vector<8x32xf32>
    %132 = vector.extract_strided_slice %129 {offsets = [0, 32], sizes = [8, 32], strides = [1, 1]} : vector<8x128xf32> to vector<8x32xf32>
    %133 = vector.extract_strided_slice %130 {offsets = [0, 64], sizes = [8, 32], strides = [1, 1]} : vector<8x128xf32> to vector<8x32xf32>
    %134 = vector.extract_strided_slice %129 {offsets = [0, 96], sizes = [8, 32], strides = [1, 1]} : vector<8x128xf32> to vector<8x32xf32>
    %135 = arith.mulf %132, %110 : vector<8x32xf32>
    %136 = arith.mulf %131, %133 : vector<8x32xf32>
    %137 = arith.addf %135, %136 : vector<8x32xf32>
    %138 = math.tanh %137 : vector<8x32xf32>
    %139 = arith.mulf %134, %138 : vector<8x32xf32>
    %c5 = arith.constant 5 : index
    %c0_41 = arith.constant 0 : index
    %c0_42 = arith.constant 0 : index
    %140 = vector.load %arg0[%c5, %c0_41, %c0_42] : memref<10x8x1xi32, #tpu.memory_space<vmem>>, vector<1x8x1xi32>
    %141 = vector.shape_cast %140 : vector<1x8x1xi32> to vector<8x1xi32>
    %142 = vector.broadcast %141 : vector<8x1xi32> to vector<8x128xi32>
    %143 = arith.cmpi eq, %0, %142 : vector<8x128xi32>
    %144 = arith.extui %143 : vector<8x128xi1> to vector<8x128xi32>
    %145 = arith.sitofp %144 : vector<8x128xi32> to vector<8x128xf32>
    %146 = tpu.concatenate %145, %139 in 1 : vector<8x128xf32>, vector<8x32xf32> -> vector<8x160xf32>
    %c0_43 = arith.constant 0 : index
    %c0_44 = arith.constant 0 : index
    %147 = vector.load %arg3[%c0_43, %c0_44] : memref<160x128xf32, #tpu.memory_space<vmem>>, vector<160x128xf32>
    %cst_45 = arith.constant dense<0.000000e+00> : vector<8x128xf32>
    %148 = tpu.matmul %146, %147, %cst_45 {dimension_numbers = #tpu.dot_dimension_numbers<[1], [0], [0], [1], [0, 0, 1, 1], [], []>} : vector<8x160xf32>, vector<160x128xf32>, vector<8x128xf32> -> vector<8x128xf32>
    %c0_46 = arith.constant 0 : index
    %c0_47 = arith.constant 0 : index
    %149 = vector.load %arg4[%c0_46, %c0_47] : memref<1x128xf32, #tpu.memory_space<vmem>>, vector<1x128xf32>
    %150 = vector.broadcast %149 : vector<1x128xf32> to vector<8x128xf32>
    %151 = arith.addf %148, %150 : vector<8x128xf32>
    %152 = arith.negf %151 : vector<8x128xf32>
    %153 = math.exp %152 : vector<8x128xf32>
    %cst_48 = arith.constant 1.000000e+00 : f32
    %154 = vector.broadcast %cst_48 : f32 to vector<8x128xf32>
    %155 = arith.addf %154, %153 : vector<8x128xf32>
    %156 = arith.divf %154, %155 : vector<8x128xf32>
    %157 = math.tanh %151 : vector<8x128xf32>
    %158 = vector.extract_strided_slice %156 {offsets = [0, 0], sizes = [8, 32], strides = [1, 1]} : vector<8x128xf32> to vector<8x32xf32>
    %159 = vector.extract_strided_slice %156 {offsets = [0, 32], sizes = [8, 32], strides = [1, 1]} : vector<8x128xf32> to vector<8x32xf32>
    %160 = vector.extract_strided_slice %157 {offsets = [0, 64], sizes = [8, 32], strides = [1, 1]} : vector<8x128xf32> to vector<8x32xf32>
    %161 = vector.extract_strided_slice %156 {offsets = [0, 96], sizes = [8, 32], strides = [1, 1]} : vector<8x128xf32> to vector<8x32xf32>
    %162 = arith.mulf %159, %137 : vector<8x32xf32>
    %163 = arith.mulf %158, %160 : vector<8x32xf32>
    %164 = arith.addf %162, %163 : vector<8x32xf32>
    %165 = math.tanh %164 : vector<8x32xf32>
    %166 = arith.mulf %161, %165 : vector<8x32xf32>
    %c6 = arith.constant 6 : index
    %c0_49 = arith.constant 0 : index
    %c0_50 = arith.constant 0 : index
    %167 = vector.load %arg0[%c6, %c0_49, %c0_50] : memref<10x8x1xi32, #tpu.memory_space<vmem>>, vector<1x8x1xi32>
    %168 = vector.shape_cast %167 : vector<1x8x1xi32> to vector<8x1xi32>
    %169 = vector.broadcast %168 : vector<8x1xi32> to vector<8x128xi32>
    %170 = arith.cmpi eq, %0, %169 : vector<8x128xi32>
    %171 = arith.extui %170 : vector<8x128xi1> to vector<8x128xi32>
    %172 = arith.sitofp %171 : vector<8x128xi32> to vector<8x128xf32>
    %173 = tpu.concatenate %172, %166 in 1 : vector<8x128xf32>, vector<8x32xf32> -> vector<8x160xf32>
    %c0_51 = arith.constant 0 : index
    %c0_52 = arith.constant 0 : index
    %174 = vector.load %arg3[%c0_51, %c0_52] : memref<160x128xf32, #tpu.memory_space<vmem>>, vector<160x128xf32>
    %cst_53 = arith.constant dense<0.000000e+00> : vector<8x128xf32>
    %175 = tpu.matmul %173, %174, %cst_53 {dimension_numbers = #tpu.dot_dimension_numbers<[1], [0], [0], [1], [0, 0, 1, 1], [], []>} : vector<8x160xf32>, vector<160x128xf32>, vector<8x128xf32> -> vector<8x128xf32>
    %c0_54 = arith.constant 0 : index
    %c0_55 = arith.constant 0 : index
    %176 = vector.load %arg4[%c0_54, %c0_55] : memref<1x128xf32, #tpu.memory_space<vmem>>, vector<1x128xf32>
    %177 = vector.broadcast %176 : vector<1x128xf32> to vector<8x128xf32>
    %178 = arith.addf %175, %177 : vector<8x128xf32>
    %179 = arith.negf %178 : vector<8x128xf32>
    %180 = math.exp %179 : vector<8x128xf32>
    %cst_56 = arith.constant 1.000000e+00 : f32
    %181 = vector.broadcast %cst_56 : f32 to vector<8x128xf32>
    %182 = arith.addf %181, %180 : vector<8x128xf32>
    %183 = arith.divf %181, %182 : vector<8x128xf32>
    %184 = math.tanh %178 : vector<8x128xf32>
    %185 = vector.extract_strided_slice %183 {offsets = [0, 0], sizes = [8, 32], strides = [1, 1]} : vector<8x128xf32> to vector<8x32xf32>
    %186 = vector.extract_strided_slice %183 {offsets = [0, 32], sizes = [8, 32], strides = [1, 1]} : vector<8x128xf32> to vector<8x32xf32>
    %187 = vector.extract_strided_slice %184 {offsets = [0, 64], sizes = [8, 32], strides = [1, 1]} : vector<8x128xf32> to vector<8x32xf32>
    %188 = vector.extract_strided_slice %183 {offsets = [0, 96], sizes = [8, 32], strides = [1, 1]} : vector<8x128xf32> to vector<8x32xf32>
    %189 = arith.mulf %186, %164 : vector<8x32xf32>
    %190 = arith.mulf %185, %187 : vector<8x32xf32>
    %191 = arith.addf %189, %190 : vector<8x32xf32>
    %192 = math.tanh %191 : vector<8x32xf32>
    %193 = arith.mulf %188, %192 : vector<8x32xf32>
    %c7 = arith.constant 7 : index
    %c0_57 = arith.constant 0 : index
    %c0_58 = arith.constant 0 : index
    %194 = vector.load %arg0[%c7, %c0_57, %c0_58] : memref<10x8x1xi32, #tpu.memory_space<vmem>>, vector<1x8x1xi32>
    %195 = vector.shape_cast %194 : vector<1x8x1xi32> to vector<8x1xi32>
    %196 = vector.broadcast %195 : vector<8x1xi32> to vector<8x128xi32>
    %197 = arith.cmpi eq, %0, %196 : vector<8x128xi32>
    %198 = arith.extui %197 : vector<8x128xi1> to vector<8x128xi32>
    %199 = arith.sitofp %198 : vector<8x128xi32> to vector<8x128xf32>
    %200 = tpu.concatenate %199, %193 in 1 : vector<8x128xf32>, vector<8x32xf32> -> vector<8x160xf32>
    %c0_59 = arith.constant 0 : index
    %c0_60 = arith.constant 0 : index
    %201 = vector.load %arg3[%c0_59, %c0_60] : memref<160x128xf32, #tpu.memory_space<vmem>>, vector<160x128xf32>
    %cst_61 = arith.constant dense<0.000000e+00> : vector<8x128xf32>
    %202 = tpu.matmul %200, %201, %cst_61 {dimension_numbers = #tpu.dot_dimension_numbers<[1], [0], [0], [1], [0, 0, 1, 1], [], []>} : vector<8x160xf32>, vector<160x128xf32>, vector<8x128xf32> -> vector<8x128xf32>
    %c0_62 = arith.constant 0 : index
    %c0_63 = arith.constant 0 : index
    %203 = vector.load %arg4[%c0_62, %c0_63] : memref<1x128xf32, #tpu.memory_space<vmem>>, vector<1x128xf32>
    %204 = vector.broadcast %203 : vector<1x128xf32> to vector<8x128xf32>
    %205 = arith.addf %202, %204 : vector<8x128xf32>
    %206 = arith.negf %205 : vector<8x128xf32>
    %207 = math.exp %206 : vector<8x128xf32>
    %cst_64 = arith.constant 1.000000e+00 : f32
    %208 = vector.broadcast %cst_64 : f32 to vector<8x128xf32>
    %209 = arith.addf %208, %207 : vector<8x128xf32>
    %210 = arith.divf %208, %209 : vector<8x128xf32>
    %211 = math.tanh %205 : vector<8x128xf32>
    %212 = vector.extract_strided_slice %210 {offsets = [0, 0], sizes = [8, 32], strides = [1, 1]} : vector<8x128xf32> to vector<8x32xf32>
    %213 = vector.extract_strided_slice %210 {offsets = [0, 32], sizes = [8, 32], strides = [1, 1]} : vector<8x128xf32> to vector<8x32xf32>
    %214 = vector.extract_strided_slice %211 {offsets = [0, 64], sizes = [8, 32], strides = [1, 1]} : vector<8x128xf32> to vector<8x32xf32>
    %215 = vector.extract_strided_slice %210 {offsets = [0, 96], sizes = [8, 32], strides = [1, 1]} : vector<8x128xf32> to vector<8x32xf32>
    %216 = arith.mulf %213, %191 : vector<8x32xf32>
    %217 = arith.mulf %212, %214 : vector<8x32xf32>
    %218 = arith.addf %216, %217 : vector<8x32xf32>
    %219 = math.tanh %218 : vector<8x32xf32>
    %220 = arith.mulf %215, %219 : vector<8x32xf32>
    %c8 = arith.constant 8 : index
    %c0_65 = arith.constant 0 : index
    %c0_66 = arith.constant 0 : index
    %221 = vector.load %arg0[%c8, %c0_65, %c0_66] : memref<10x8x1xi32, #tpu.memory_space<vmem>>, vector<1x8x1xi32>
    %222 = vector.shape_cast %221 : vector<1x8x1xi32> to vector<8x1xi32>
    %223 = vector.broadcast %222 : vector<8x1xi32> to vector<8x128xi32>
    %224 = arith.cmpi eq, %0, %223 : vector<8x128xi32>
    %225 = arith.extui %224 : vector<8x128xi1> to vector<8x128xi32>
    %226 = arith.sitofp %225 : vector<8x128xi32> to vector<8x128xf32>
    %227 = tpu.concatenate %226, %220 in 1 : vector<8x128xf32>, vector<8x32xf32> -> vector<8x160xf32>
    %c0_67 = arith.constant 0 : index
    %c0_68 = arith.constant 0 : index
    %228 = vector.load %arg3[%c0_67, %c0_68] : memref<160x128xf32, #tpu.memory_space<vmem>>, vector<160x128xf32>
    %cst_69 = arith.constant dense<0.000000e+00> : vector<8x128xf32>
    %229 = tpu.matmul %227, %228, %cst_69 {dimension_numbers = #tpu.dot_dimension_numbers<[1], [0], [0], [1], [0, 0, 1, 1], [], []>} : vector<8x160xf32>, vector<160x128xf32>, vector<8x128xf32> -> vector<8x128xf32>
    %c0_70 = arith.constant 0 : index
    %c0_71 = arith.constant 0 : index
    %230 = vector.load %arg4[%c0_70, %c0_71] : memref<1x128xf32, #tpu.memory_space<vmem>>, vector<1x128xf32>
    %231 = vector.broadcast %230 : vector<1x128xf32> to vector<8x128xf32>
    %232 = arith.addf %229, %231 : vector<8x128xf32>
    %233 = arith.negf %232 : vector<8x128xf32>
    %234 = math.exp %233 : vector<8x128xf32>
    %cst_72 = arith.constant 1.000000e+00 : f32
    %235 = vector.broadcast %cst_72 : f32 to vector<8x128xf32>
    %236 = arith.addf %235, %234 : vector<8x128xf32>
    %237 = arith.divf %235, %236 : vector<8x128xf32>
    %238 = math.tanh %232 : vector<8x128xf32>
    %239 = vector.extract_strided_slice %237 {offsets = [0, 0], sizes = [8, 32], strides = [1, 1]} : vector<8x128xf32> to vector<8x32xf32>
    %240 = vector.extract_strided_slice %237 {offsets = [0, 32], sizes = [8, 32], strides = [1, 1]} : vector<8x128xf32> to vector<8x32xf32>
    %241 = vector.extract_strided_slice %238 {offsets = [0, 64], sizes = [8, 32], strides = [1, 1]} : vector<8x128xf32> to vector<8x32xf32>
    %242 = vector.extract_strided_slice %237 {offsets = [0, 96], sizes = [8, 32], strides = [1, 1]} : vector<8x128xf32> to vector<8x32xf32>
    %243 = arith.mulf %240, %218 : vector<8x32xf32>
    %244 = arith.mulf %239, %241 : vector<8x32xf32>
    %245 = arith.addf %243, %244 : vector<8x32xf32>
    %246 = math.tanh %245 : vector<8x32xf32>
    %247 = arith.mulf %242, %246 : vector<8x32xf32>
    %c9 = arith.constant 9 : index
    %c0_73 = arith.constant 0 : index
    %c0_74 = arith.constant 0 : index
    %248 = vector.load %arg0[%c9, %c0_73, %c0_74] : memref<10x8x1xi32, #tpu.memory_space<vmem>>, vector<1x8x1xi32>
    %249 = vector.shape_cast %248 : vector<1x8x1xi32> to vector<8x1xi32>
    %250 = vector.broadcast %249 : vector<8x1xi32> to vector<8x128xi32>
    %251 = arith.cmpi eq, %0, %250 : vector<8x128xi32>
    %252 = arith.extui %251 : vector<8x128xi1> to vector<8x128xi32>
    %253 = arith.sitofp %252 : vector<8x128xi32> to vector<8x128xf32>
    %254 = tpu.concatenate %253, %247 in 1 : vector<8x128xf32>, vector<8x32xf32> -> vector<8x160xf32>
    %c0_75 = arith.constant 0 : index
    %c0_76 = arith.constant 0 : index
    %255 = vector.load %arg3[%c0_75, %c0_76] : memref<160x128xf32, #tpu.memory_space<vmem>>, vector<160x128xf32>
    %cst_77 = arith.constant dense<0.000000e+00> : vector<8x128xf32>
    %256 = tpu.matmul %254, %255, %cst_77 {dimension_numbers = #tpu.dot_dimension_numbers<[1], [0], [0], [1], [0, 0, 1, 1], [], []>} : vector<8x160xf32>, vector<160x128xf32>, vector<8x128xf32> -> vector<8x128xf32>
    %c0_78 = arith.constant 0 : index
    %c0_79 = arith.constant 0 : index
    %257 = vector.load %arg4[%c0_78, %c0_79] : memref<1x128xf32, #tpu.memory_space<vmem>>, vector<1x128xf32>
    %258 = vector.broadcast %257 : vector<1x128xf32> to vector<8x128xf32>
    %259 = arith.addf %256, %258 : vector<8x128xf32>
    %260 = arith.negf %259 : vector<8x128xf32>
    %261 = math.exp %260 : vector<8x128xf32>
    %cst_80 = arith.constant 1.000000e+00 : f32
    %262 = vector.broadcast %cst_80 : f32 to vector<8x128xf32>
    %263 = arith.addf %262, %261 : vector<8x128xf32>
    %264 = arith.divf %262, %263 : vector<8x128xf32>
    %265 = math.tanh %259 : vector<8x128xf32>
    %266 = vector.extract_strided_slice %264 {offsets = [0, 0], sizes = [8, 32], strides = [1, 1]} : vector<8x128xf32> to vector<8x32xf32>
    %267 = vector.extract_strided_slice %264 {offsets = [0, 32], sizes = [8, 32], strides = [1, 1]} : vector<8x128xf32> to vector<8x32xf32>
    %268 = vector.extract_strided_slice %265 {offsets = [0, 64], sizes = [8, 32], strides = [1, 1]} : vector<8x128xf32> to vector<8x32xf32>
    %269 = vector.extract_strided_slice %264 {offsets = [0, 96], sizes = [8, 32], strides = [1, 1]} : vector<8x128xf32> to vector<8x32xf32>
    %270 = arith.mulf %267, %245 : vector<8x32xf32>
    %271 = arith.mulf %266, %268 : vector<8x32xf32>
    %272 = arith.addf %270, %271 : vector<8x32xf32>
    %273 = math.tanh %272 : vector<8x32xf32>
    %274 = arith.mulf %269, %273 : vector<8x32xf32>
    %cst_81 = arith.constant 0.000000e+00 : f32
    %275 = vector.broadcast %cst_81 : f32 to vector<8x128xf32>
    %c0_82 = arith.constant 0 : index
    %c0_83 = arith.constant 0 : index
    %c0_84 = arith.constant 0 : index
    %276 = vector.load %arg9[%c0_82, %c0_83, %c0_84] : memref<8x8x128xf32, #tpu.memory_space<vmem>>, vector<1x8x128xf32>
    %277 = vector.shape_cast %276 : vector<1x8x128xf32> to vector<8x128xf32>
    %278 = vector.shape_cast %275 : vector<8x128xf32> to vector<1x8x128xf32>
    tpu.vector_store %arg9[%c0_82, %c0_83, %c0_84], %278 {strides = array<i32>} : memref<8x8x128xf32, #tpu.memory_space<vmem>>, vector<1x8x128xf32>,
    %c0_85 = arith.constant 0 : index
    %c0_86 = arith.constant 0 : index
    %c0_87 = arith.constant 0 : index
    %279 = vector.load %arg1[%c0_85, %c0_86, %c0_87] : memref<8x8x1xi32, #tpu.memory_space<vmem>>, vector<1x8x1xi32>
    %280 = vector.shape_cast %279 : vector<1x8x1xi32> to vector<8x1xi32>
    %281 = vector.broadcast %280 : vector<8x1xi32> to vector<8x128xi32>
    %282 = arith.cmpi eq, %1, %281 : vector<8x128xi32>
    %283 = arith.extui %282 : vector<8x128xi1> to vector<8x128xi32>
    %284 = arith.sitofp %283 : vector<8x128xi32> to vector<8x128xf32>
    %285 = tpu.concatenate %284, %274 in 1 : vector<8x128xf32>, vector<8x32xf32> -> vector<8x160xf32>
    %c0_88 = arith.constant 0 : index
    %c0_89 = arith.constant 0 : index
    %286 = vector.load %arg5[%c0_88, %c0_89] : memref<160x128xf32, #tpu.memory_space<vmem>>, vector<160x128xf32>
    %cst_90 = arith.constant dense<0.000000e+00> : vector<8x128xf32>
    %287 = tpu.matmul %285, %286, %cst_90 {dimension_numbers = #tpu.dot_dimension_numbers<[1], [0], [0], [1], [0, 0, 1, 1], [], []>} : vector<8x160xf32>, vector<160x128xf32>, vector<8x128xf32> -> vector<8x128xf32>
    %c0_91 = arith.constant 0 : index
    %c0_92 = arith.constant 0 : index
    %288 = vector.load %arg6[%c0_91, %c0_92] : memref<1x128xf32, #tpu.memory_space<vmem>>, vector<1x128xf32>
    %289 = vector.broadcast %288 : vector<1x128xf32> to vector<8x128xf32>
    %290 = arith.addf %287, %289 : vector<8x128xf32>
    %291 = arith.negf %290 : vector<8x128xf32>
    %292 = math.exp %291 : vector<8x128xf32>
    %cst_93 = arith.constant 1.000000e+00 : f32
    %293 = vector.broadcast %cst_93 : f32 to vector<8x128xf32>
    %294 = arith.addf %293, %292 : vector<8x128xf32>
    %295 = arith.divf %293, %294 : vector<8x128xf32>
    %296 = math.tanh %290 : vector<8x128xf32>
    %297 = vector.extract_strided_slice %295 {offsets = [0, 0], sizes = [8, 32], strides = [1, 1]} : vector<8x128xf32> to vector<8x32xf32>
    %298 = vector.extract_strided_slice %295 {offsets = [0, 32], sizes = [8, 32], strides = [1, 1]} : vector<8x128xf32> to vector<8x32xf32>
    %299 = vector.extract_strided_slice %296 {offsets = [0, 64], sizes = [8, 32], strides = [1, 1]} : vector<8x128xf32> to vector<8x32xf32>
    %300 = vector.extract_strided_slice %295 {offsets = [0, 96], sizes = [8, 32], strides = [1, 1]} : vector<8x128xf32> to vector<8x32xf32>
    %301 = arith.mulf %298, %272 : vector<8x32xf32>
    %302 = arith.mulf %297, %299 : vector<8x32xf32>
    %303 = arith.addf %301, %302 : vector<8x32xf32>
    %304 = math.tanh %303 : vector<8x32xf32>
    %305 = arith.mulf %300, %304 : vector<8x32xf32>
    %c0_94 = arith.constant 0 : index
    %c0_95 = arith.constant 0 : index
    %306 = vector.load %arg7[%c0_94, %c0_95] : memref<32x128xf32, #tpu.memory_space<vmem>>, vector<32x128xf32>
    %cst_96 = arith.constant dense<0.000000e+00> : vector<8x128xf32>
    %307 = tpu.matmul %305, %306, %cst_96 {dimension_numbers = #tpu.dot_dimension_numbers<[1], [0], [0], [1], [0, 0, 1, 1], [], []>} : vector<8x32xf32>, vector<32x128xf32>, vector<8x128xf32> -> vector<8x128xf32>
    %c0_97 = arith.constant 0 : index
    %c0_98 = arith.constant 0 : index
    %308 = vector.load %arg8[%c0_97, %c0_98] : memref<1x128xf32, #tpu.memory_space<vmem>>, vector<1x128xf32>
    %309 = vector.broadcast %308 : vector<1x128xf32> to vector<8x128xf32>
    %310 = arith.addf %307, %309 : vector<8x128xf32>
    %c1_99 = arith.constant 1 : index
    %c0_100 = arith.constant 0 : index
    %c0_101 = arith.constant 0 : index
    %311 = vector.load %arg9[%c1_99, %c0_100, %c0_101] : memref<8x8x128xf32, #tpu.memory_space<vmem>>, vector<1x8x128xf32>
    %312 = vector.shape_cast %311 : vector<1x8x128xf32> to vector<8x128xf32>
    %313 = vector.shape_cast %310 : vector<8x128xf32> to vector<1x8x128xf32>
    tpu.vector_store %arg9[%c1_99, %c0_100, %c0_101], %313 {strides = array<i32>} : memref<8x8x128xf32, #tpu.memory_space<vmem>>, vector<1x8x128xf32>,
    %cst_102 = arith.constant dense<0xFF800000> : vector<8xf32>
    %314 = vector.multi_reduction <maximumf>, %310, %cst_102 [1] : vector<8x128xf32> to vector<8xf32>
    %315 = vector.shape_cast %314 : vector<8xf32> to vector<8x1xf32>
    %316 = vector.broadcast %315 : vector<8x1xf32> to vector<8x128xf32>
    %317 = arith.cmpf oeq, %310, %316 : vector<8x128xf32>
    %cst_103 = arith.constant 1.280000e+02 : f32
    %318 = vector.broadcast %cst_103 : f32 to vector<8x128xf32>
    %319 = arith.select %317, %2, %318 : vector<8x128xi1>, vector<8x128xf32>
    %cst_104 = arith.constant dense<0x7F800000> : vector<8xf32>
    %320 = vector.multi_reduction <minimumf>, %319, %cst_104 [1] : vector<8x128xf32> to vector<8xf32>
    %321 = vector.shape_cast %320 : vector<8xf32> to vector<8x1xf32>
    %322 = arith.fptosi %321 : vector<8x1xf32> to vector<8x1xi32>
    %c1_105 = arith.constant 1 : index
    %c0_106 = arith.constant 0 : index
    %c0_107 = arith.constant 0 : index
    %323 = vector.load %arg2[%c1_105, %c0_106, %c0_107] : memref<8x8x1xi32, #tpu.memory_space<vmem>>, vector<1x8x1xi32>
    %324 = vector.shape_cast %323 : vector<1x8x1xi32> to vector<8x1xi32>
    %c0_i32 = arith.constant 0 : i32
    %325 = vector.broadcast %c0_i32 : i32 to vector<8x1xi32>
    %326 = arith.cmpi ne, %324, %325 : vector<8x1xi32>
    %c1_108 = arith.constant 1 : index
    %c0_109 = arith.constant 0 : index
    %c0_110 = arith.constant 0 : index
    %327 = vector.load %arg1[%c1_108, %c0_109, %c0_110] : memref<8x8x1xi32, #tpu.memory_space<vmem>>, vector<1x8x1xi32>
    %328 = vector.shape_cast %327 : vector<1x8x1xi32> to vector<8x1xi32>
    %329 = arith.select %326, %328, %322 : vector<8x1xi1>, vector<8x1xi32>
    %330 = vector.broadcast %329 : vector<8x1xi32> to vector<8x128xi32>
    %331 = arith.cmpi eq, %1, %330 : vector<8x128xi32>
    %332 = arith.extui %331 : vector<8x128xi1> to vector<8x128xi32>
    %333 = arith.sitofp %332 : vector<8x128xi32> to vector<8x128xf32>
    %334 = tpu.concatenate %333, %305 in 1 : vector<8x128xf32>, vector<8x32xf32> -> vector<8x160xf32>
    %c0_111 = arith.constant 0 : index
    %c0_112 = arith.constant 0 : index
    %335 = vector.load %arg5[%c0_111, %c0_112] : memref<160x128xf32, #tpu.memory_space<vmem>>, vector<160x128xf32>
    %cst_113 = arith.constant dense<0.000000e+00> : vector<8x128xf32>
    %336 = tpu.matmul %334, %335, %cst_113 {dimension_numbers = #tpu.dot_dimension_numbers<[1], [0], [0], [1], [0, 0, 1, 1], [], []>} : vector<8x160xf32>, vector<160x128xf32>, vector<8x128xf32> -> vector<8x128xf32>
    %c0_114 = arith.constant 0 : index
    %c0_115 = arith.constant 0 : index
    %337 = vector.load %arg6[%c0_114, %c0_115] : memref<1x128xf32, #tpu.memory_space<vmem>>, vector<1x128xf32>
    %338 = vector.broadcast %337 : vector<1x128xf32> to vector<8x128xf32>
    %339 = arith.addf %336, %338 : vector<8x128xf32>
    %340 = arith.negf %339 : vector<8x128xf32>
    %341 = math.exp %340 : vector<8x128xf32>
    %cst_116 = arith.constant 1.000000e+00 : f32
    %342 = vector.broadcast %cst_116 : f32 to vector<8x128xf32>
    %343 = arith.addf %342, %341 : vector<8x128xf32>
    %344 = arith.divf %342, %343 : vector<8x128xf32>
    %345 = math.tanh %339 : vector<8x128xf32>
    %346 = vector.extract_strided_slice %344 {offsets = [0, 0], sizes = [8, 32], strides = [1, 1]} : vector<8x128xf32> to vector<8x32xf32>
    %347 = vector.extract_strided_slice %344 {offsets = [0, 32], sizes = [8, 32], strides = [1, 1]} : vector<8x128xf32> to vector<8x32xf32>
    %348 = vector.extract_strided_slice %345 {offsets = [0, 64], sizes = [8, 32], strides = [1, 1]} : vector<8x128xf32> to vector<8x32xf32>
    %349 = vector.extract_strided_slice %344 {offsets = [0, 96], sizes = [8, 32], strides = [1, 1]} : vector<8x128xf32> to vector<8x32xf32>
    %350 = arith.mulf %347, %303 : vector<8x32xf32>
    %351 = arith.mulf %346, %348 : vector<8x32xf32>
    %352 = arith.addf %350, %351 : vector<8x32xf32>
    %353 = math.tanh %352 : vector<8x32xf32>
    %354 = arith.mulf %349, %353 : vector<8x32xf32>
    %c0_117 = arith.constant 0 : index
    %c0_118 = arith.constant 0 : index
    %355 = vector.load %arg7[%c0_117, %c0_118] : memref<32x128xf32, #tpu.memory_space<vmem>>, vector<32x128xf32>
    %cst_119 = arith.constant dense<0.000000e+00> : vector<8x128xf32>
    %356 = tpu.matmul %354, %355, %cst_119 {dimension_numbers = #tpu.dot_dimension_numbers<[1], [0], [0], [1], [0, 0, 1, 1], [], []>} : vector<8x32xf32>, vector<32x128xf32>, vector<8x128xf32> -> vector<8x128xf32>
    %c0_120 = arith.constant 0 : index
    %c0_121 = arith.constant 0 : index
    %357 = vector.load %arg8[%c0_120, %c0_121] : memref<1x128xf32, #tpu.memory_space<vmem>>, vector<1x128xf32>
    %358 = vector.broadcast %357 : vector<1x128xf32> to vector<8x128xf32>
    %359 = arith.addf %356, %358 : vector<8x128xf32>
    %c2_122 = arith.constant 2 : index
    %c0_123 = arith.constant 0 : index
    %c0_124 = arith.constant 0 : index
    %360 = vector.load %arg9[%c2_122, %c0_123, %c0_124] : memref<8x8x128xf32, #tpu.memory_space<vmem>>, vector<1x8x128xf32>
    %361 = vector.shape_cast %360 : vector<1x8x128xf32> to vector<8x128xf32>
    %362 = vector.shape_cast %359 : vector<8x128xf32> to vector<1x8x128xf32>
    tpu.vector_store %arg9[%c2_122, %c0_123, %c0_124], %362 {strides = array<i32>} : memref<8x8x128xf32, #tpu.memory_space<vmem>>, vector<1x8x128xf32>,
    %cst_125 = arith.constant dense<0xFF800000> : vector<8xf32>
    %363 = vector.multi_reduction <maximumf>, %359, %cst_125 [1] : vector<8x128xf32> to vector<8xf32>
    %364 = vector.shape_cast %363 : vector<8xf32> to vector<8x1xf32>
    %365 = vector.broadcast %364 : vector<8x1xf32> to vector<8x128xf32>
    %366 = arith.cmpf oeq, %359, %365 : vector<8x128xf32>
    %cst_126 = arith.constant 1.280000e+02 : f32
    %367 = vector.broadcast %cst_126 : f32 to vector<8x128xf32>
    %368 = arith.select %366, %2, %367 : vector<8x128xi1>, vector<8x128xf32>
    %cst_127 = arith.constant dense<0x7F800000> : vector<8xf32>
    %369 = vector.multi_reduction <minimumf>, %368, %cst_127 [1] : vector<8x128xf32> to vector<8xf32>
    %370 = vector.shape_cast %369 : vector<8xf32> to vector<8x1xf32>
    %371 = arith.fptosi %370 : vector<8x1xf32> to vector<8x1xi32>
    %c2_128 = arith.constant 2 : index
    %c0_129 = arith.constant 0 : index
    %c0_130 = arith.constant 0 : index
    %372 = vector.load %arg2[%c2_128, %c0_129, %c0_130] : memref<8x8x1xi32, #tpu.memory_space<vmem>>, vector<1x8x1xi32>
    %373 = vector.shape_cast %372 : vector<1x8x1xi32> to vector<8x1xi32>
    %c0_i32_131 = arith.constant 0 : i32
    %374 = vector.broadcast %c0_i32_131 : i32 to vector<8x1xi32>
    %375 = arith.cmpi ne, %373, %374 : vector<8x1xi32>
    %c2_132 = arith.constant 2 : index
    %c0_133 = arith.constant 0 : index
    %c0_134 = arith.constant 0 : index
    %376 = vector.load %arg1[%c2_132, %c0_133, %c0_134] : memref<8x8x1xi32, #tpu.memory_space<vmem>>, vector<1x8x1xi32>
    %377 = vector.shape_cast %376 : vector<1x8x1xi32> to vector<8x1xi32>
    %378 = arith.select %375, %377, %371 : vector<8x1xi1>, vector<8x1xi32>
    %379 = vector.broadcast %378 : vector<8x1xi32> to vector<8x128xi32>
    %380 = arith.cmpi eq, %1, %379 : vector<8x128xi32>
    %381 = arith.extui %380 : vector<8x128xi1> to vector<8x128xi32>
    %382 = arith.sitofp %381 : vector<8x128xi32> to vector<8x128xf32>
    %383 = tpu.concatenate %382, %354 in 1 : vector<8x128xf32>, vector<8x32xf32> -> vector<8x160xf32>
    %c0_135 = arith.constant 0 : index
    %c0_136 = arith.constant 0 : index
    %384 = vector.load %arg5[%c0_135, %c0_136] : memref<160x128xf32, #tpu.memory_space<vmem>>, vector<160x128xf32>
    %cst_137 = arith.constant dense<0.000000e+00> : vector<8x128xf32>
    %385 = tpu.matmul %383, %384, %cst_137 {dimension_numbers = #tpu.dot_dimension_numbers<[1], [0], [0], [1], [0, 0, 1, 1], [], []>} : vector<8x160xf32>, vector<160x128xf32>, vector<8x128xf32> -> vector<8x128xf32>
    %c0_138 = arith.constant 0 : index
    %c0_139 = arith.constant 0 : index
    %386 = vector.load %arg6[%c0_138, %c0_139] : memref<1x128xf32, #tpu.memory_space<vmem>>, vector<1x128xf32>
    %387 = vector.broadcast %386 : vector<1x128xf32> to vector<8x128xf32>
    %388 = arith.addf %385, %387 : vector<8x128xf32>
    %389 = arith.negf %388 : vector<8x128xf32>
    %390 = math.exp %389 : vector<8x128xf32>
    %cst_140 = arith.constant 1.000000e+00 : f32
    %391 = vector.broadcast %cst_140 : f32 to vector<8x128xf32>
    %392 = arith.addf %391, %390 : vector<8x128xf32>
    %393 = arith.divf %391, %392 : vector<8x128xf32>
    %394 = math.tanh %388 : vector<8x128xf32>
    %395 = vector.extract_strided_slice %393 {offsets = [0, 0], sizes = [8, 32], strides = [1, 1]} : vector<8x128xf32> to vector<8x32xf32>
    %396 = vector.extract_strided_slice %393 {offsets = [0, 32], sizes = [8, 32], strides = [1, 1]} : vector<8x128xf32> to vector<8x32xf32>
    %397 = vector.extract_strided_slice %394 {offsets = [0, 64], sizes = [8, 32], strides = [1, 1]} : vector<8x128xf32> to vector<8x32xf32>
    %398 = vector.extract_strided_slice %393 {offsets = [0, 96], sizes = [8, 32], strides = [1, 1]} : vector<8x128xf32> to vector<8x32xf32>
    %399 = arith.mulf %396, %352 : vector<8x32xf32>
    %400 = arith.mulf %395, %397 : vector<8x32xf32>
    %401 = arith.addf %399, %400 : vector<8x32xf32>
    %402 = math.tanh %401 : vector<8x32xf32>
    %403 = arith.mulf %398, %402 : vector<8x32xf32>
    %c0_141 = arith.constant 0 : index
    %c0_142 = arith.constant 0 : index
    %404 = vector.load %arg7[%c0_141, %c0_142] : memref<32x128xf32, #tpu.memory_space<vmem>>, vector<32x128xf32>
    %cst_143 = arith.constant dense<0.000000e+00> : vector<8x128xf32>
    %405 = tpu.matmul %403, %404, %cst_143 {dimension_numbers = #tpu.dot_dimension_numbers<[1], [0], [0], [1], [0, 0, 1, 1], [], []>} : vector<8x32xf32>, vector<32x128xf32>, vector<8x128xf32> -> vector<8x128xf32>
    %c0_144 = arith.constant 0 : index
    %c0_145 = arith.constant 0 : index
    %406 = vector.load %arg8[%c0_144, %c0_145] : memref<1x128xf32, #tpu.memory_space<vmem>>, vector<1x128xf32>
    %407 = vector.broadcast %406 : vector<1x128xf32> to vector<8x128xf32>
    %408 = arith.addf %405, %407 : vector<8x128xf32>
    %c3_146 = arith.constant 3 : index
    %c0_147 = arith.constant 0 : index
    %c0_148 = arith.constant 0 : index
    %409 = vector.load %arg9[%c3_146, %c0_147, %c0_148] : memref<8x8x128xf32, #tpu.memory_space<vmem>>, vector<1x8x128xf32>
    %410 = vector.shape_cast %409 : vector<1x8x128xf32> to vector<8x128xf32>
    %411 = vector.shape_cast %408 : vector<8x128xf32> to vector<1x8x128xf32>
    tpu.vector_store %arg9[%c3_146, %c0_147, %c0_148], %411 {strides = array<i32>} : memref<8x8x128xf32, #tpu.memory_space<vmem>>, vector<1x8x128xf32>,
    %cst_149 = arith.constant dense<0xFF800000> : vector<8xf32>
    %412 = vector.multi_reduction <maximumf>, %408, %cst_149 [1] : vector<8x128xf32> to vector<8xf32>
    %413 = vector.shape_cast %412 : vector<8xf32> to vector<8x1xf32>
    %414 = vector.broadcast %413 : vector<8x1xf32> to vector<8x128xf32>
    %415 = arith.cmpf oeq, %408, %414 : vector<8x128xf32>
    %cst_150 = arith.constant 1.280000e+02 : f32
    %416 = vector.broadcast %cst_150 : f32 to vector<8x128xf32>
    %417 = arith.select %415, %2, %416 : vector<8x128xi1>, vector<8x128xf32>
    %cst_151 = arith.constant dense<0x7F800000> : vector<8xf32>
    %418 = vector.multi_reduction <minimumf>, %417, %cst_151 [1] : vector<8x128xf32> to vector<8xf32>
    %419 = vector.shape_cast %418 : vector<8xf32> to vector<8x1xf32>
    %420 = arith.fptosi %419 : vector<8x1xf32> to vector<8x1xi32>
    %c3_152 = arith.constant 3 : index
    %c0_153 = arith.constant 0 : index
    %c0_154 = arith.constant 0 : index
    %421 = vector.load %arg2[%c3_152, %c0_153, %c0_154] : memref<8x8x1xi32, #tpu.memory_space<vmem>>, vector<1x8x1xi32>
    %422 = vector.shape_cast %421 : vector<1x8x1xi32> to vector<8x1xi32>
    %c0_i32_155 = arith.constant 0 : i32
    %423 = vector.broadcast %c0_i32_155 : i32 to vector<8x1xi32>
    %424 = arith.cmpi ne, %422, %423 : vector<8x1xi32>
    %c3_156 = arith.constant 3 : index
    %c0_157 = arith.constant 0 : index
    %c0_158 = arith.constant 0 : index
    %425 = vector.load %arg1[%c3_156, %c0_157, %c0_158] : memref<8x8x1xi32, #tpu.memory_space<vmem>>, vector<1x8x1xi32>
    %426 = vector.shape_cast %425 : vector<1x8x1xi32> to vector<8x1xi32>
    %427 = arith.select %424, %426, %420 : vector<8x1xi1>, vector<8x1xi32>
    %428 = vector.broadcast %427 : vector<8x1xi32> to vector<8x128xi32>
    %429 = arith.cmpi eq, %1, %428 : vector<8x128xi32>
    %430 = arith.extui %429 : vector<8x128xi1> to vector<8x128xi32>
    %431 = arith.sitofp %430 : vector<8x128xi32> to vector<8x128xf32>
    %432 = tpu.concatenate %431, %403 in 1 : vector<8x128xf32>, vector<8x32xf32> -> vector<8x160xf32>
    %c0_159 = arith.constant 0 : index
    %c0_160 = arith.constant 0 : index
    %433 = vector.load %arg5[%c0_159, %c0_160] : memref<160x128xf32, #tpu.memory_space<vmem>>, vector<160x128xf32>
    %cst_161 = arith.constant dense<0.000000e+00> : vector<8x128xf32>
    %434 = tpu.matmul %432, %433, %cst_161 {dimension_numbers = #tpu.dot_dimension_numbers<[1], [0], [0], [1], [0, 0, 1, 1], [], []>} : vector<8x160xf32>, vector<160x128xf32>, vector<8x128xf32> -> vector<8x128xf32>
    %c0_162 = arith.constant 0 : index
    %c0_163 = arith.constant 0 : index
    %435 = vector.load %arg6[%c0_162, %c0_163] : memref<1x128xf32, #tpu.memory_space<vmem>>, vector<1x128xf32>
    %436 = vector.broadcast %435 : vector<1x128xf32> to vector<8x128xf32>
    %437 = arith.addf %434, %436 : vector<8x128xf32>
    %438 = arith.negf %437 : vector<8x128xf32>
    %439 = math.exp %438 : vector<8x128xf32>
    %cst_164 = arith.constant 1.000000e+00 : f32
    %440 = vector.broadcast %cst_164 : f32 to vector<8x128xf32>
    %441 = arith.addf %440, %439 : vector<8x128xf32>
    %442 = arith.divf %440, %441 : vector<8x128xf32>
    %443 = math.tanh %437 : vector<8x128xf32>
    %444 = vector.extract_strided_slice %442 {offsets = [0, 0], sizes = [8, 32], strides = [1, 1]} : vector<8x128xf32> to vector<8x32xf32>
    %445 = vector.extract_strided_slice %442 {offsets = [0, 32], sizes = [8, 32], strides = [1, 1]} : vector<8x128xf32> to vector<8x32xf32>
    %446 = vector.extract_strided_slice %443 {offsets = [0, 64], sizes = [8, 32], strides = [1, 1]} : vector<8x128xf32> to vector<8x32xf32>
    %447 = vector.extract_strided_slice %442 {offsets = [0, 96], sizes = [8, 32], strides = [1, 1]} : vector<8x128xf32> to vector<8x32xf32>
    %448 = arith.mulf %445, %401 : vector<8x32xf32>
    %449 = arith.mulf %444, %446 : vector<8x32xf32>
    %450 = arith.addf %448, %449 : vector<8x32xf32>
    %451 = math.tanh %450 : vector<8x32xf32>
    %452 = arith.mulf %447, %451 : vector<8x32xf32>
    %c0_165 = arith.constant 0 : index
    %c0_166 = arith.constant 0 : index
    %453 = vector.load %arg7[%c0_165, %c0_166] : memref<32x128xf32, #tpu.memory_space<vmem>>, vector<32x128xf32>
    %cst_167 = arith.constant dense<0.000000e+00> : vector<8x128xf32>
    %454 = tpu.matmul %452, %453, %cst_167 {dimension_numbers = #tpu.dot_dimension_numbers<[1], [0], [0], [1], [0, 0, 1, 1], [], []>} : vector<8x32xf32>, vector<32x128xf32>, vector<8x128xf32> -> vector<8x128xf32>
    %c0_168 = arith.constant 0 : index
    %c0_169 = arith.constant 0 : index
    %455 = vector.load %arg8[%c0_168, %c0_169] : memref<1x128xf32, #tpu.memory_space<vmem>>, vector<1x128xf32>
    %456 = vector.broadcast %455 : vector<1x128xf32> to vector<8x128xf32>
    %457 = arith.addf %454, %456 : vector<8x128xf32>
    %c4_170 = arith.constant 4 : index
    %c0_171 = arith.constant 0 : index
    %c0_172 = arith.constant 0 : index
    %458 = vector.load %arg9[%c4_170, %c0_171, %c0_172] : memref<8x8x128xf32, #tpu.memory_space<vmem>>, vector<1x8x128xf32>
    %459 = vector.shape_cast %458 : vector<1x8x128xf32> to vector<8x128xf32>
    %460 = vector.shape_cast %457 : vector<8x128xf32> to vector<1x8x128xf32>
    tpu.vector_store %arg9[%c4_170, %c0_171, %c0_172], %460 {strides = array<i32>} : memref<8x8x128xf32, #tpu.memory_space<vmem>>, vector<1x8x128xf32>,
    %cst_173 = arith.constant dense<0xFF800000> : vector<8xf32>
    %461 = vector.multi_reduction <maximumf>, %457, %cst_173 [1] : vector<8x128xf32> to vector<8xf32>
    %462 = vector.shape_cast %461 : vector<8xf32> to vector<8x1xf32>
    %463 = vector.broadcast %462 : vector<8x1xf32> to vector<8x128xf32>
    %464 = arith.cmpf oeq, %457, %463 : vector<8x128xf32>
    %cst_174 = arith.constant 1.280000e+02 : f32
    %465 = vector.broadcast %cst_174 : f32 to vector<8x128xf32>
    %466 = arith.select %464, %2, %465 : vector<8x128xi1>, vector<8x128xf32>
    %cst_175 = arith.constant dense<0x7F800000> : vector<8xf32>
    %467 = vector.multi_reduction <minimumf>, %466, %cst_175 [1] : vector<8x128xf32> to vector<8xf32>
    %468 = vector.shape_cast %467 : vector<8xf32> to vector<8x1xf32>
    %469 = arith.fptosi %468 : vector<8x1xf32> to vector<8x1xi32>
    %c4_176 = arith.constant 4 : index
    %c0_177 = arith.constant 0 : index
    %c0_178 = arith.constant 0 : index
    %470 = vector.load %arg2[%c4_176, %c0_177, %c0_178] : memref<8x8x1xi32, #tpu.memory_space<vmem>>, vector<1x8x1xi32>
    %471 = vector.shape_cast %470 : vector<1x8x1xi32> to vector<8x1xi32>
    %c0_i32_179 = arith.constant 0 : i32
    %472 = vector.broadcast %c0_i32_179 : i32 to vector<8x1xi32>
    %473 = arith.cmpi ne, %471, %472 : vector<8x1xi32>
    %c4_180 = arith.constant 4 : index
    %c0_181 = arith.constant 0 : index
    %c0_182 = arith.constant 0 : index
    %474 = vector.load %arg1[%c4_180, %c0_181, %c0_182] : memref<8x8x1xi32, #tpu.memory_space<vmem>>, vector<1x8x1xi32>
    %475 = vector.shape_cast %474 : vector<1x8x1xi32> to vector<8x1xi32>
    %476 = arith.select %473, %475, %469 : vector<8x1xi1>, vector<8x1xi32>
    %477 = vector.broadcast %476 : vector<8x1xi32> to vector<8x128xi32>
    %478 = arith.cmpi eq, %1, %477 : vector<8x128xi32>
    %479 = arith.extui %478 : vector<8x128xi1> to vector<8x128xi32>
    %480 = arith.sitofp %479 : vector<8x128xi32> to vector<8x128xf32>
    %481 = tpu.concatenate %480, %452 in 1 : vector<8x128xf32>, vector<8x32xf32> -> vector<8x160xf32>
    %c0_183 = arith.constant 0 : index
    %c0_184 = arith.constant 0 : index
    %482 = vector.load %arg5[%c0_183, %c0_184] : memref<160x128xf32, #tpu.memory_space<vmem>>, vector<160x128xf32>
    %cst_185 = arith.constant dense<0.000000e+00> : vector<8x128xf32>
    %483 = tpu.matmul %481, %482, %cst_185 {dimension_numbers = #tpu.dot_dimension_numbers<[1], [0], [0], [1], [0, 0, 1, 1], [], []>} : vector<8x160xf32>, vector<160x128xf32>, vector<8x128xf32> -> vector<8x128xf32>
    %c0_186 = arith.constant 0 : index
    %c0_187 = arith.constant 0 : index
    %484 = vector.load %arg6[%c0_186, %c0_187] : memref<1x128xf32, #tpu.memory_space<vmem>>, vector<1x128xf32>
    %485 = vector.broadcast %484 : vector<1x128xf32> to vector<8x128xf32>
    %486 = arith.addf %483, %485 : vector<8x128xf32>
    %487 = arith.negf %486 : vector<8x128xf32>
    %488 = math.exp %487 : vector<8x128xf32>
    %cst_188 = arith.constant 1.000000e+00 : f32
    %489 = vector.broadcast %cst_188 : f32 to vector<8x128xf32>
    %490 = arith.addf %489, %488 : vector<8x128xf32>
    %491 = arith.divf %489, %490 : vector<8x128xf32>
    %492 = math.tanh %486 : vector<8x128xf32>
    %493 = vector.extract_strided_slice %491 {offsets = [0, 0], sizes = [8, 32], strides = [1, 1]} : vector<8x128xf32> to vector<8x32xf32>
    %494 = vector.extract_strided_slice %491 {offsets = [0, 32], sizes = [8, 32], strides = [1, 1]} : vector<8x128xf32> to vector<8x32xf32>
    %495 = vector.extract_strided_slice %492 {offsets = [0, 64], sizes = [8, 32], strides = [1, 1]} : vector<8x128xf32> to vector<8x32xf32>
    %496 = vector.extract_strided_slice %491 {offsets = [0, 96], sizes = [8, 32], strides = [1, 1]} : vector<8x128xf32> to vector<8x32xf32>
    %497 = arith.mulf %494, %450 : vector<8x32xf32>
    %498 = arith.mulf %493, %495 : vector<8x32xf32>
    %499 = arith.addf %497, %498 : vector<8x32xf32>
    %500 = math.tanh %499 : vector<8x32xf32>
    %501 = arith.mulf %496, %500 : vector<8x32xf32>
    %c0_189 = arith.constant 0 : index
    %c0_190 = arith.constant 0 : index
    %502 = vector.load %arg7[%c0_189, %c0_190] : memref<32x128xf32, #tpu.memory_space<vmem>>, vector<32x128xf32>
    %cst_191 = arith.constant dense<0.000000e+00> : vector<8x128xf32>
    %503 = tpu.matmul %501, %502, %cst_191 {dimension_numbers = #tpu.dot_dimension_numbers<[1], [0], [0], [1], [0, 0, 1, 1], [], []>} : vector<8x32xf32>, vector<32x128xf32>, vector<8x128xf32> -> vector<8x128xf32>
    %c0_192 = arith.constant 0 : index
    %c0_193 = arith.constant 0 : index
    %504 = vector.load %arg8[%c0_192, %c0_193] : memref<1x128xf32, #tpu.memory_space<vmem>>, vector<1x128xf32>
    %505 = vector.broadcast %504 : vector<1x128xf32> to vector<8x128xf32>
    %506 = arith.addf %503, %505 : vector<8x128xf32>
    %c5_194 = arith.constant 5 : index
    %c0_195 = arith.constant 0 : index
    %c0_196 = arith.constant 0 : index
    %507 = vector.load %arg9[%c5_194, %c0_195, %c0_196] : memref<8x8x128xf32, #tpu.memory_space<vmem>>, vector<1x8x128xf32>
    %508 = vector.shape_cast %507 : vector<1x8x128xf32> to vector<8x128xf32>
    %509 = vector.shape_cast %506 : vector<8x128xf32> to vector<1x8x128xf32>
    tpu.vector_store %arg9[%c5_194, %c0_195, %c0_196], %509 {strides = array<i32>} : memref<8x8x128xf32, #tpu.memory_space<vmem>>, vector<1x8x128xf32>,
    %cst_197 = arith.constant dense<0xFF800000> : vector<8xf32>
    %510 = vector.multi_reduction <maximumf>, %506, %cst_197 [1] : vector<8x128xf32> to vector<8xf32>
    %511 = vector.shape_cast %510 : vector<8xf32> to vector<8x1xf32>
    %512 = vector.broadcast %511 : vector<8x1xf32> to vector<8x128xf32>
    %513 = arith.cmpf oeq, %506, %512 : vector<8x128xf32>
    %cst_198 = arith.constant 1.280000e+02 : f32
    %514 = vector.broadcast %cst_198 : f32 to vector<8x128xf32>
    %515 = arith.select %513, %2, %514 : vector<8x128xi1>, vector<8x128xf32>
    %cst_199 = arith.constant dense<0x7F800000> : vector<8xf32>
    %516 = vector.multi_reduction <minimumf>, %515, %cst_199 [1] : vector<8x128xf32> to vector<8xf32>
    %517 = vector.shape_cast %516 : vector<8xf32> to vector<8x1xf32>
    %518 = arith.fptosi %517 : vector<8x1xf32> to vector<8x1xi32>
    %c5_200 = arith.constant 5 : index
    %c0_201 = arith.constant 0 : index
    %c0_202 = arith.constant 0 : index
    %519 = vector.load %arg2[%c5_200, %c0_201, %c0_202] : memref<8x8x1xi32, #tpu.memory_space<vmem>>, vector<1x8x1xi32>
    %520 = vector.shape_cast %519 : vector<1x8x1xi32> to vector<8x1xi32>
    %c0_i32_203 = arith.constant 0 : i32
    %521 = vector.broadcast %c0_i32_203 : i32 to vector<8x1xi32>
    %522 = arith.cmpi ne, %520, %521 : vector<8x1xi32>
    %c5_204 = arith.constant 5 : index
    %c0_205 = arith.constant 0 : index
    %c0_206 = arith.constant 0 : index
    %523 = vector.load %arg1[%c5_204, %c0_205, %c0_206] : memref<8x8x1xi32, #tpu.memory_space<vmem>>, vector<1x8x1xi32>
    %524 = vector.shape_cast %523 : vector<1x8x1xi32> to vector<8x1xi32>
    %525 = arith.select %522, %524, %518 : vector<8x1xi1>, vector<8x1xi32>
    %526 = vector.broadcast %525 : vector<8x1xi32> to vector<8x128xi32>
    %527 = arith.cmpi eq, %1, %526 : vector<8x128xi32>
    %528 = arith.extui %527 : vector<8x128xi1> to vector<8x128xi32>
    %529 = arith.sitofp %528 : vector<8x128xi32> to vector<8x128xf32>
    %530 = tpu.concatenate %529, %501 in 1 : vector<8x128xf32>, vector<8x32xf32> -> vector<8x160xf32>
    %c0_207 = arith.constant 0 : index
    %c0_208 = arith.constant 0 : index
    %531 = vector.load %arg5[%c0_207, %c0_208] : memref<160x128xf32, #tpu.memory_space<vmem>>, vector<160x128xf32>
    %cst_209 = arith.constant dense<0.000000e+00> : vector<8x128xf32>
    %532 = tpu.matmul %530, %531, %cst_209 {dimension_numbers = #tpu.dot_dimension_numbers<[1], [0], [0], [1], [0, 0, 1, 1], [], []>} : vector<8x160xf32>, vector<160x128xf32>, vector<8x128xf32> -> vector<8x128xf32>
    %c0_210 = arith.constant 0 : index
    %c0_211 = arith.constant 0 : index
    %533 = vector.load %arg6[%c0_210, %c0_211] : memref<1x128xf32, #tpu.memory_space<vmem>>, vector<1x128xf32>
    %534 = vector.broadcast %533 : vector<1x128xf32> to vector<8x128xf32>
    %535 = arith.addf %532, %534 : vector<8x128xf32>
    %536 = arith.negf %535 : vector<8x128xf32>
    %537 = math.exp %536 : vector<8x128xf32>
    %cst_212 = arith.constant 1.000000e+00 : f32
    %538 = vector.broadcast %cst_212 : f32 to vector<8x128xf32>
    %539 = arith.addf %538, %537 : vector<8x128xf32>
    %540 = arith.divf %538, %539 : vector<8x128xf32>
    %541 = math.tanh %535 : vector<8x128xf32>
    %542 = vector.extract_strided_slice %540 {offsets = [0, 0], sizes = [8, 32], strides = [1, 1]} : vector<8x128xf32> to vector<8x32xf32>
    %543 = vector.extract_strided_slice %540 {offsets = [0, 32], sizes = [8, 32], strides = [1, 1]} : vector<8x128xf32> to vector<8x32xf32>
    %544 = vector.extract_strided_slice %541 {offsets = [0, 64], sizes = [8, 32], strides = [1, 1]} : vector<8x128xf32> to vector<8x32xf32>
    %545 = vector.extract_strided_slice %540 {offsets = [0, 96], sizes = [8, 32], strides = [1, 1]} : vector<8x128xf32> to vector<8x32xf32>
    %546 = arith.mulf %543, %499 : vector<8x32xf32>
    %547 = arith.mulf %542, %544 : vector<8x32xf32>
    %548 = arith.addf %546, %547 : vector<8x32xf32>
    %549 = math.tanh %548 : vector<8x32xf32>
    %550 = arith.mulf %545, %549 : vector<8x32xf32>
    %c0_213 = arith.constant 0 : index
    %c0_214 = arith.constant 0 : index
    %551 = vector.load %arg7[%c0_213, %c0_214] : memref<32x128xf32, #tpu.memory_space<vmem>>, vector<32x128xf32>
    %cst_215 = arith.constant dense<0.000000e+00> : vector<8x128xf32>
    %552 = tpu.matmul %550, %551, %cst_215 {dimension_numbers = #tpu.dot_dimension_numbers<[1], [0], [0], [1], [0, 0, 1, 1], [], []>} : vector<8x32xf32>, vector<32x128xf32>, vector<8x128xf32> -> vector<8x128xf32>
    %c0_216 = arith.constant 0 : index
    %c0_217 = arith.constant 0 : index
    %553 = vector.load %arg8[%c0_216, %c0_217] : memref<1x128xf32, #tpu.memory_space<vmem>>, vector<1x128xf32>
    %554 = vector.broadcast %553 : vector<1x128xf32> to vector<8x128xf32>
    %555 = arith.addf %552, %554 : vector<8x128xf32>
    %c6_218 = arith.constant 6 : index
    %c0_219 = arith.constant 0 : index
    %c0_220 = arith.constant 0 : index
    %556 = vector.load %arg9[%c6_218, %c0_219, %c0_220] : memref<8x8x128xf32, #tpu.memory_space<vmem>>, vector<1x8x128xf32>
    %557 = vector.shape_cast %556 : vector<1x8x128xf32> to vector<8x128xf32>
    %558 = vector.shape_cast %555 : vector<8x128xf32> to vector<1x8x128xf32>
    tpu.vector_store %arg9[%c6_218, %c0_219, %c0_220], %558 {strides = array<i32>} : memref<8x8x128xf32, #tpu.memory_space<vmem>>, vector<1x8x128xf32>,
    %cst_221 = arith.constant dense<0xFF800000> : vector<8xf32>
    %559 = vector.multi_reduction <maximumf>, %555, %cst_221 [1] : vector<8x128xf32> to vector<8xf32>
    %560 = vector.shape_cast %559 : vector<8xf32> to vector<8x1xf32>
    %561 = vector.broadcast %560 : vector<8x1xf32> to vector<8x128xf32>
    %562 = arith.cmpf oeq, %555, %561 : vector<8x128xf32>
    %cst_222 = arith.constant 1.280000e+02 : f32
    %563 = vector.broadcast %cst_222 : f32 to vector<8x128xf32>
    %564 = arith.select %562, %2, %563 : vector<8x128xi1>, vector<8x128xf32>
    %cst_223 = arith.constant dense<0x7F800000> : vector<8xf32>
    %565 = vector.multi_reduction <minimumf>, %564, %cst_223 [1] : vector<8x128xf32> to vector<8xf32>
    %566 = vector.shape_cast %565 : vector<8xf32> to vector<8x1xf32>
    %567 = arith.fptosi %566 : vector<8x1xf32> to vector<8x1xi32>
    %c6_224 = arith.constant 6 : index
    %c0_225 = arith.constant 0 : index
    %c0_226 = arith.constant 0 : index
    %568 = vector.load %arg2[%c6_224, %c0_225, %c0_226] : memref<8x8x1xi32, #tpu.memory_space<vmem>>, vector<1x8x1xi32>
    %569 = vector.shape_cast %568 : vector<1x8x1xi32> to vector<8x1xi32>
    %c0_i32_227 = arith.constant 0 : i32
    %570 = vector.broadcast %c0_i32_227 : i32 to vector<8x1xi32>
    %571 = arith.cmpi ne, %569, %570 : vector<8x1xi32>
    %c6_228 = arith.constant 6 : index
    %c0_229 = arith.constant 0 : index
    %c0_230 = arith.constant 0 : index
    %572 = vector.load %arg1[%c6_228, %c0_229, %c0_230] : memref<8x8x1xi32, #tpu.memory_space<vmem>>, vector<1x8x1xi32>
    %573 = vector.shape_cast %572 : vector<1x8x1xi32> to vector<8x1xi32>
    %574 = arith.select %571, %573, %567 : vector<8x1xi1>, vector<8x1xi32>
    %575 = vector.broadcast %574 : vector<8x1xi32> to vector<8x128xi32>
    %576 = arith.cmpi eq, %1, %575 : vector<8x128xi32>
    %577 = arith.extui %576 : vector<8x128xi1> to vector<8x128xi32>
    %578 = arith.sitofp %577 : vector<8x128xi32> to vector<8x128xf32>
    %579 = tpu.concatenate %578, %550 in 1 : vector<8x128xf32>, vector<8x32xf32> -> vector<8x160xf32>
    %c0_231 = arith.constant 0 : index
    %c0_232 = arith.constant 0 : index
    %580 = vector.load %arg5[%c0_231, %c0_232] : memref<160x128xf32, #tpu.memory_space<vmem>>, vector<160x128xf32>
    %cst_233 = arith.constant dense<0.000000e+00> : vector<8x128xf32>
    %581 = tpu.matmul %579, %580, %cst_233 {dimension_numbers = #tpu.dot_dimension_numbers<[1], [0], [0], [1], [0, 0, 1, 1], [], []>} : vector<8x160xf32>, vector<160x128xf32>, vector<8x128xf32> -> vector<8x128xf32>
    %c0_234 = arith.constant 0 : index
    %c0_235 = arith.constant 0 : index
    %582 = vector.load %arg6[%c0_234, %c0_235] : memref<1x128xf32, #tpu.memory_space<vmem>>, vector<1x128xf32>
    %583 = vector.broadcast %582 : vector<1x128xf32> to vector<8x128xf32>
    %584 = arith.addf %581, %583 : vector<8x128xf32>
    %585 = arith.negf %584 : vector<8x128xf32>
    %586 = math.exp %585 : vector<8x128xf32>
    %cst_236 = arith.constant 1.000000e+00 : f32
    %587 = vector.broadcast %cst_236 : f32 to vector<8x128xf32>
    %588 = arith.addf %587, %586 : vector<8x128xf32>
    %589 = arith.divf %587, %588 : vector<8x128xf32>
    %590 = math.tanh %584 : vector<8x128xf32>
    %591 = vector.extract_strided_slice %589 {offsets = [0, 0], sizes = [8, 32], strides = [1, 1]} : vector<8x128xf32> to vector<8x32xf32>
    %592 = vector.extract_strided_slice %589 {offsets = [0, 32], sizes = [8, 32], strides = [1, 1]} : vector<8x128xf32> to vector<8x32xf32>
    %593 = vector.extract_strided_slice %590 {offsets = [0, 64], sizes = [8, 32], strides = [1, 1]} : vector<8x128xf32> to vector<8x32xf32>
    %594 = vector.extract_strided_slice %589 {offsets = [0, 96], sizes = [8, 32], strides = [1, 1]} : vector<8x128xf32> to vector<8x32xf32>
    %595 = arith.mulf %592, %548 : vector<8x32xf32>
    %596 = arith.mulf %591, %593 : vector<8x32xf32>
    %597 = arith.addf %595, %596 : vector<8x32xf32>
    %598 = math.tanh %597 : vector<8x32xf32>
    %599 = arith.mulf %594, %598 : vector<8x32xf32>
    %c0_237 = arith.constant 0 : index
    %c0_238 = arith.constant 0 : index
    %600 = vector.load %arg7[%c0_237, %c0_238] : memref<32x128xf32, #tpu.memory_space<vmem>>, vector<32x128xf32>
    %cst_239 = arith.constant dense<0.000000e+00> : vector<8x128xf32>
    %601 = tpu.matmul %599, %600, %cst_239 {dimension_numbers = #tpu.dot_dimension_numbers<[1], [0], [0], [1], [0, 0, 1, 1], [], []>} : vector<8x32xf32>, vector<32x128xf32>, vector<8x128xf32> -> vector<8x128xf32>
    %c0_240 = arith.constant 0 : index
    %c0_241 = arith.constant 0 : index
    %602 = vector.load %arg8[%c0_240, %c0_241] : memref<1x128xf32, #tpu.memory_space<vmem>>, vector<1x128xf32>
    %603 = vector.broadcast %602 : vector<1x128xf32> to vector<8x128xf32>
    %604 = arith.addf %601, %603 : vector<8x128xf32>
    %c7_242 = arith.constant 7 : index
    %c0_243 = arith.constant 0 : index
    %c0_244 = arith.constant 0 : index
    %605 = vector.load %arg9[%c7_242, %c0_243, %c0_244] : memref<8x8x128xf32, #tpu.memory_space<vmem>>, vector<1x8x128xf32>
    %606 = vector.shape_cast %605 : vector<1x8x128xf32> to vector<8x128xf32>
    %607 = vector.shape_cast %604 : vector<8x128xf32> to vector<1x8x128xf32>
    tpu.vector_store %arg9[%c7_242, %c0_243, %c0_244], %607 {strides = array<i32>} : memref<8x8x128xf32, #tpu.memory_space<vmem>>, vector<1x8x128xf32>,
    return
  }
}

</mosaic_0001>

<bundles_post_ra>
// kernel: _seq2seq_forward_impl.1
= control target key start
LH: loop header
LB: loop body
LE: loop exit
PB: predicated region body
PF: predicated region fallthrough
CT: control target
= control target key end

     0   :  { %v3696_v3 = vmov 0   ;;  %v3697_v4 = vmov 0.0|0.0   ;;  %v3698_v8 = vmov 0.0   ;;  %s4695_s0 = inlined_call_operand.vmem [shape: s32[10,8,1], index: 0, kind: input, shape index: {}]   ;;  %s4696_s1 = inlined_call_operand.vmem [shape: s32[8,8,1], index: 1, kind: input, shape index: {}]   ;;  %s4697_s2 = inlined_call_operand.vmem [shape: s32[8,8,1], index: 2, kind: input, shape index: {}]   ;;  %s4698_s3 = inlined_call_operand.vmem [shape: f32[160,128], index: 3, kind: input, shape index: {}]   ;;  %s4699_s4 = inlined_call_operand.vmem [shape: f32[1,128], index: 4, kind: input, shape index: {}]   ;;  %s4700_s5 = inlined_call_operand.vmem [shape: f32[160,128], index: 5, kind: input, shape index: {}]   ;;  %s4701_s6 = inlined_call_operand.vmem [shape: f32[1,128], index: 6, kind: input, shape index: {}]   ;;  %s4702_s7 = inlined_call_operand.vmem [shape: f32[32,128], index: 7, kind: input, shape index: {}]   ;;  %s4703_s8 = inlined_call_operand.vmem [shape: f32[1,128], index: 8, kind: input, shape index: {}]   ;;  %s4704_s9 = inlined_call_operand.hbm [shape: f32[8,8,128], index: 9, kind: output, shape index: {}]  }
   0x1   :  { %v36_v0 = vld [vmem:[%s4695_s0] sm:$0xff]  ;;  %v44_v2 = vld [vmem:[%s4698_s3 + $0x8] sm:$0xff]  ;;  %3533 = vset.pattern.permute.xlu0 %v3696_v3  ;;  %2959 = vmatprep.subr.bf16.mxu0 %v3697_v4  ;;  %v45_v6 = vld [vmem:[%s4698_s3 + $0x10] sm:$0xff]  ;;  %1131 = vst [vmem:[#allocation2] sm:$0xff] %v3698_v8 }
   0x2   :  { %v43_v1 = vld [vmem:[%s4698_s3] sm:$0xff]  ;;  %v46_v7 = vld [vmem:[%s4698_s3 + $0x18] sm:$0xff]  ;;  %38 = vperm.xlu0 %3533, %v36_v0   ;;  %138 = vmatprep.mubr.f32.mxu0 %v3698_v8  ;;  %v48_v11 = vld [vmem:[%s4698_s3 + $0x28] sm:$0xff] }
   0x3   :  { %v3766_v5 = vpack.c.bf16 %v44_v2, %v43_v1  ;;  %v3775_v9 = vpack.c.bf16 %v46_v7, %v45_v6  ;;  %2989 = vmatprep.subr.bf16.mxu1 %v3697_v4  ;;  %v47_v10 = vld [vmem:[%s4698_s3 + $0x20] sm:$0xff]  ;;  %3534 = vset.pattern.permute.xlu1 %v3696_v3 }
   0x4   :  { %v3788_v12 = vpack.c.bf16 %v48_v11, %v47_v10 }
   0x5   :  { %2961 = vmatpush1.bf16.msra.mxu0 %v3766_v5  ;;  %2991 = vmatpush1.bf16.msra.mxu1 %v3766_v5 }
   0x6   :  { %2962 = vmatprep.subr.bf16.mxu0 %v3697_v4  ;;  %2992 = vmatprep.subr.bf16.mxu1 %v3697_v4 }
   0x9   :  { %2964 = vmatpush1.bf16.msra.mxu0 %v3775_v9 }
   0xa   :  { %14 = vsyncpa [#allocation3], 0  ;;  %2965 = vmatprep.subr.bf16.mxu0 %v3697_v4  ;;  %v49_v13 = vld [vmem:[%s4698_s3 + $0x30] sm:$0xff]  ;;  %v50_v14 = vld [vmem:[%s4698_s3 + $0x38] sm:$0xff]  ;;  %2994 = vmatpush1.bf16.msra.mxu1 %v3775_v9  ;;  %v33_v34 = vlaneseq  ;;  %v3699_v37 = vmov 1.0   ;;  %s3700_s10 = smov 64  }
   0xb   :  { %2995 = vmatprep.subr.bf16.mxu1 %v3697_v4  ;;  %v3800_v15 = vpack.c.bf16 %v50_v14, %v49_v13  ;;  %v51_v16 = vld [vmem:[%s4698_s3 + $0x40] sm:$0xff]  ;;  %v52_v17 = vld [vmem:[%s4698_s3 + $0x48] sm:$0xff]  ;;  %v53_v19 = vld [vmem:[%s4698_s3 + $0x50] sm:$0xff]  ;;  %vm70_vm1 = vcmask 261120   ;;  %vm3702_vm12 = vmmov 0  }
   0xc   :  { %v3812_v18 = vpack.c.bf16 %v52_v17, %v51_v16  ;;  %v54_v20 = vld [vmem:[%s4698_s3 + $0x58] sm:$0xff]  ;;  %v55_v22 = vld [vmem:[%s4698_s3 + $0x60] sm:$0xff]  ;;  %v56_v23 = vld [vmem:[%s4698_s3 + $0x68] sm:$0xff]  ;;  %v3881_v35 = vand.u32 127, %v33_v34 }
   0xd   :  { %2967 = vmatpush1.bf16.msra.mxu0 %v3788_v12  ;;  %v3824_v21 = vpack.c.bf16 %v54_v20, %v53_v19  ;;  %v3836_v24 = vpack.c.bf16 %v56_v23, %v55_v22  ;;  %v57_v25 = vld [vmem:[%s4698_s3 + $0x70] sm:$0xff]  ;;  %v58_v26 = vld [vmem:[%s4698_s3 + $0x78] sm:$0xff]  ;;  %v59_v28 = vld [vmem:[%s4698_s3 + $0x80] sm:$0xff] }
   0xe   :  { %2968 = vmatprep.subr.bf16.mxu0 %v3697_v4  ;;  %2997 = vmatpush1.bf16.msra.mxu1 %v3788_v12  ;;  %v3848_v27 = vpack.c.bf16 %v58_v26, %v57_v25  ;;  %v60_v29 = vld [vmem:[%s4698_s3 + $0x88] sm:$0xff]  ;;  %v61_v31 = vld [vmem:[%s4698_s3 + $0x90] sm:$0xff]  ;;  %v62_v32 = vld [vmem:[%s4698_s3 + $0x98] sm:$0xff] }
   0xf   :  { %2998 = vmatprep.subr.bf16.mxu1 %v3697_v4  ;;  %v3860_v30 = vpack.c.bf16 %v60_v29, %v59_v28  ;;  %v3872_v33 = vpack.c.bf16 %v62_v32, %v61_v31  ;;  %v3908_v38 = vld [vmem:[%s4699_s4] ss:$0 sm:$0xff]  ;;  %v2741_v43 = vld [vmem:[%s4695_s0 + $0x8] sm:$0xff]  ;;  %s3701_s4 = smov 32   ;;  %v2746_v6 = vld [vmem:[%s4695_s0 + $0x10] sm:$0xff] }
  0x10   :  { %v2751_v34 = vld [vmem:[%s4695_s0 + $0x18] sm:$0xff] }
  0x11   :  { %2970 = vmatpush1.bf16.msra.mxu0 %v3800_v15 }
  0x12   :  { %2971 = vmatprep.subr.bf16.mxu0 %v3697_v4  ;;  %3000 = vmatpush1.bf16.msra.mxu1 %v3800_v15 }
  0x13   :  { %3001 = vmatprep.subr.bf16.mxu1 %v3697_v4 }
  0x15   :  { %2973 = vmatpush1.bf16.msra.mxu0 %v3812_v18 }
  0x16   :  { %2974 = vmatprep.subr.bf16.mxu0 %v3697_v4  ;;  %3003 = vmatpush1.bf16.msra.mxu1 %v3812_v18 }
  0x17   :  { %3004 = vmatprep.subr.bf16.mxu1 %v3697_v4 }
  0x19   :  { %2976 = vmatpush1.bf16.msra.mxu0 %v3824_v21 }
  0x1a   :  { %2977 = vmatprep.subr.bf16.mxu0 %v3697_v4  ;;  %3006 = vmatpush1.bf16.msra.mxu1 %v3824_v21 }
  0x1b   :  { %3007 = vmatprep.subr.bf16.mxu1 %v3697_v4 }
  0x1d   :  { %2979 = vmatpush1.bf16.msra.mxu0 %v3836_v24 }
  0x1e   :  { %2980 = vmatprep.subr.bf16.mxu0 %v3697_v4  ;;  %3009 = vmatpush1.bf16.msra.mxu1 %v3836_v24 }
  0x1f   :  { %3010 = vmatprep.subr.bf16.mxu1 %v3697_v4 }
  0x21   :  { %2982 = vmatpush1.bf16.msra.mxu0 %v3848_v27 }
  0x22   :  { %2983 = vmatprep.subr.bf16.mxu0 %v3697_v4  ;;  %3012 = vmatpush1.bf16.msra.mxu1 %v3848_v27 }
  0x23   :  { %3013 = vmatprep.subr.bf16.mxu1 %v3697_v4 }
  0x25   :  { %2985 = vmatpush1.bf16.msra.mxu0 %v3860_v30 }
  0x26   :  { %2986 = vmatprep.subr.bf16.mxu0 %v3697_v4  ;;  %3015 = vmatpush1.bf16.msra.mxu1 %v3860_v30 }
  0x27   :  { %3016 = vmatprep.subr.bf16.mxu1 %v3697_v4 }
  0x29   :  { %2988 = vmatpush1.bf16.msra.mxu0 %v3872_v33 }
  0x2a   :  { %3018 = vmatpush1.bf16.msra.mxu1 %v3872_v33  ;;  %3019 = vmatprep.subr.bf16.mxu0 %v3697_v4 }
  0x2b   :  { %3049 = vmatprep.subr.bf16.mxu1 %v3697_v4 }
  0x81   :  { %v39_v36 = vpop.permute.xlu0 %38 }
  0x82   :  { %vm40_vm0 = vcmp.eq.s32.totalorder %v3881_v35, %v39_v36 }
  0x83   :  { %2739 = vmatmul.mubr.msk.f32.vlgmr.msra.gmra.mrb[0].mxu0 %vm40_vm0, %v3699_v37 }
  0x84   :  { %3021 = vmatpush1.bf16.msra.mxu0 %v3766_v5 }
  0x85   :  { %3022 = vmatprep.subr.bf16.mxu0 %v3697_v4 }
  0x88   :  { %3024 = vmatpush1.bf16.msra.mxu0 %v3775_v9 }
  0x89   :  { %3025 = vmatprep.subr.bf16.mxu0 %v3697_v4 }
  0x8c   :  { %3027 = vmatpush1.bf16.msra.mxu0 %v3788_v12 }
  0x8d   :  { %3028 = vmatprep.subr.bf16.mxu0 %v3697_v4 }
  0x90   :  { %3030 = vmatpush1.bf16.msra.mxu0 %v3800_v15 }
  0x91   :  { %3031 = vmatprep.subr.bf16.mxu0 %v3697_v4 }
  0x94   :  { %3033 = vmatpush1.bf16.msra.mxu0 %v3812_v18 }
  0x95   :  { %3034 = vmatprep.subr.bf16.mxu0 %v3697_v4 }
  0x98   :  { %3036 = vmatpush1.bf16.msra.mxu0 %v3824_v21 }
  0x99   :  { %3037 = vmatprep.subr.bf16.mxu0 %v3697_v4 }
  0x9c   :  { %3039 = vmatpush1.bf16.msra.mxu0 %v3836_v24 }
  0x9d   :  { %3040 = vmatprep.subr.bf16.mxu0 %v3697_v4 }
  0xa0   :  { %3042 = vmatpush1.bf16.msra.mxu0 %v3848_v27 }
  0xa1   :  { %3043 = vmatprep.subr.bf16.mxu0 %v3697_v4 }
  0xa4   :  { %3045 = vmatpush1.bf16.msra.mxu0 %v3860_v30 }
  0xa5   :  { %3046 = vmatprep.subr.bf16.mxu0 %v3697_v4 }
  0xa8   :  { %3048 = vmatpush1.bf16.msra.mxu0 %v3872_v33 }
  0xa9   :  { %3079 = vmatprep.subr.bf16.mxu0 %v3697_v4 }
 0x156   :  { %v140_v39 = vpop.f32.mrb[0].mxu0 }
 0x157   :  { %v141_v40 = vadd.f32 %v3908_v38, %v140_v39  ;;  %v142_v41 = vpop.f32.mrb[1].mxu0 }
 0x159   :  { %3535 = vtanh.f32 %v141_v40  ;;  %v2740_v44 = vmul.f32 -1.442695, %v141_v40 }
 0x15b   :  { %3537 = vpow2.f32 %v2740_v44 }
 0x163   :  { %v3536_v42 = vpop.eup %3535 }
 0x164   :  { %153 = vrot.lane.b32.xlu0 %v3536_v42, %s3700_s10 }
 0x165   :  { %v3538_v45 = vpop.eup %3537 }
 0x166   :  { %v147_v46 = vadd.f32 1.0, %v3538_v45 }
 0x168   :  { %171 = vperm.xlu0 %3533, %v2741_v43   ;;  %3539 = vrcp.f32 %v147_v46 }
 0x172   :  { %v3540_v47 = vpop.eup %3539 }
 0x173   :  { %v151_v50 = vmul.f32 0.0, %v3540_v47 }
 0x1d6   :  { %v154_v48 = vpop.permute.xlu0 %153 }
 0x1d7   :  { %v156_v49 = vmul.f32 %v3540_v47, %v154_v48 }
 0x1d9   :  { %158 = vrot.lane.b32.xlu1 %v156_v49, %s3701_s4 }
 0x1e7   :  { %v172_v56 = vpop.permute.xlu0 %171 }
 0x1e8   :  { %vm173_vm2 = vcmp.eq.s32.totalorder %v3881_v35, %v172_v56  ;;  %v2756_v56 = vld [vmem:[%s4695_s0 + $0x20] sm:$0xff] }
 0x24b   :  { %v159_v51 = vpop.permute.xlu1 %158 }
 0x24c   :  { %v161_v52 = vadd.f32 %v159_v51, %v151_v50 }
 0x24e   :  { %3541 = vtanh.f32 %v161_v52 }
 0x258   :  { %v3542_v53 = vpop.eup %3541 }
 0x259   :  { %164 = vrot.lane.b32.xlu1 %v3542_v53, %s3700_s10 }
 0x2cb   :  { %v165_v54 = vpop.permute.xlu1 %164 }
 0x2cc   :  { %v167_v55 = vmul.f32 %v3540_v47, %v165_v54 }
 0x2ce   :  { %177 = vrot.lane.b32.xlu1 %v167_v55, %s3701_s4 }
 0x340   :  { %v178_v57 = vpop.permute.xlu1 %177 }
 0x341   :  { %2743 = vmatprep.mubr.msk.f32.mxu1 %vm70_vm1, %v178_v57 }
 0x342   :  { %2744 = vmatmul.mubr.msk.f32.vlgmr.msra.gmra.mrb[0].mxu1 %vm173_vm2, %v3699_v37 }
 0x343   :  { %3051 = vmatpush1.bf16.msra.mxu1 %v3766_v5 }
 0x344   :  { %3052 = vmatprep.subr.bf16.mxu1 %v3697_v4 }
 0x347   :  { %3054 = vmatpush1.bf16.msra.mxu1 %v3775_v9 }
 0x348   :  { %3055 = vmatprep.subr.bf16.mxu1 %v3697_v4 }
 0x34b   :  { %3057 = vmatpush1.bf16.msra.mxu1 %v3788_v12 }
 0x34c   :  { %3058 = vmatprep.subr.bf16.mxu1 %v3697_v4 }
 0x34f   :  { %3060 = vmatpush1.bf16.msra.mxu1 %v3800_v15 }
 0x350   :  { %3061 = vmatprep.subr.bf16.mxu1 %v3697_v4 }
 0x353   :  { %3063 = vmatpush1.bf16.msra.mxu1 %v3812_v18 }
 0x354   :  { %3064 = vmatprep.subr.bf16.mxu1 %v3697_v4 }
 0x357   :  { %3066 = vmatpush1.bf16.msra.mxu1 %v3824_v21 }
 0x358   :  { %3067 = vmatprep.subr.bf16.mxu1 %v3697_v4 }
 0x35b   :  { %3069 = vmatpush1.bf16.msra.mxu1 %v3836_v24 }
 0x35c   :  { %3070 = vmatprep.subr.bf16.mxu1 %v3697_v4 }
 0x35f   :  { %3072 = vmatpush1.bf16.msra.mxu1 %v3848_v27 }
 0x360   :  { %3073 = vmatprep.subr.bf16.mxu1 %v3697_v4 }
 0x363   :  { %3075 = vmatpush1.bf16.msra.mxu1 %v3860_v30 }
 0x364   :  { %3076 = vmatprep.subr.bf16.mxu1 %v3697_v4 }
 0x367   :  { %3078 = vmatpush1.bf16.msra.mxu1 %v3872_v33 }
 0x368   :  { %3109 = vmatprep.subr.bf16.mxu1 %v3697_v4 }
 0x415   :  { %v247_v58 = vpop.f32.mrb[0].mxu1 }
 0x416   :  { %v248_v59 = vadd.f32 %v3908_v38, %v247_v58  ;;  %v249_v60 = vpop.f32.mrb[1].mxu1 }
 0x418   :  { %3543 = vtanh.f32 %v248_v59  ;;  %v2745_v62 = vmul.f32 -1.442695, %v248_v59 }
 0x41a   :  { %3545 = vpow2.f32 %v2745_v62 }
 0x422   :  { %v3544_v61 = vpop.eup %3543 }
 0x423   :  { %260 = vrot.lane.b32.xlu0 %v3544_v61, %s3700_s10 }
 0x424   :  { %v3546_v63 = vpop.eup %3545 }
 0x425   :  { %v254_v0 = vadd.f32 1.0, %v3546_v63 }
 0x427   :  { %3547 = vrcp.f32 %v254_v0 }
 0x431   :  { %v3548_v1 = vpop.eup %3547 }
 0x432   :  { %v258_v7 = vmul.f32 %v3548_v1, %v161_v52 }
 0x495   :  { %v261_v2 = vpop.permute.xlu0 %260 }
 0x496   :  { %v263_v3 = vmul.f32 %v3548_v1, %v261_v2 }
 0x498   :  { %265 = vrot.lane.b32.xlu1 %v263_v3, %s3701_s4 }
 0x49c   :  { %278 = vperm.xlu1 %3534, %v2746_v6  }
 0x50a   :  { %v266_v8 = vpop.permute.xlu1 %265 }
 0x50b   :  { %v268_v10 = vadd.f32 %v266_v8, %v258_v7 }
 0x50d   :  { %3549 = vtanh.f32 %v268_v10 }
 0x517   :  { %v3550_v11 = vpop.eup %3549 }
 0x518   :  { %271 = vrot.lane.b32.xlu0 %v3550_v11, %s3700_s10 }
 0x51b   :  { %v279_v16 = vpop.permute.xlu1 %278 }
 0x51c   :  { %vm280_vm3 = vcmp.eq.s32.totalorder %v3881_v35, %v279_v16  ;;  %v2761_v16 = vld [vmem:[%s4695_s0 + $0x28] sm:$0xff] }
 0x58a   :  { %v272_v13 = vpop.permute.xlu0 %271 }
 0x58b   :  { %v274_v14 = vmul.f32 %v3548_v1, %v272_v13 }
 0x58d   :  { %284 = vrot.lane.b32.xlu0 %v274_v14, %s3701_s4 }
 0x5ff   :  { %v285_v17 = vpop.permute.xlu0 %284 }
 0x600   :  { %2748 = vmatprep.mubr.msk.f32.mxu0 %vm70_vm1, %v285_v17 }
 0x601   :  { %2749 = vmatmul.mubr.msk.f32.vlgmr.msra.gmra.mrb[2].mxu0 %vm280_vm3, %v3699_v37 }
 0x602   :  { %3081 = vmatpush1.bf16.msra.mxu0 %v3766_v5 }
 0x603   :  { %3082 = vmatprep.subr.bf16.mxu0 %v3697_v4 }
 0x606   :  { %3084 = vmatpush1.bf16.msra.mxu0 %v3775_v9 }
 0x607   :  { %3085 = vmatprep.subr.bf16.mxu0 %v3697_v4 }
 0x60a   :  { %3087 = vmatpush1.bf16.msra.mxu0 %v3788_v12 }
 0x60b   :  { %3088 = vmatprep.subr.bf16.mxu0 %v3697_v4 }
 0x60e   :  { %3090 = vmatpush1.bf16.msra.mxu0 %v3800_v15 }
 0x60f   :  { %3091 = vmatprep.subr.bf16.mxu0 %v3697_v4 }
 0x612   :  { %3093 = vmatpush1.bf16.msra.mxu0 %v3812_v18 }
 0x613   :  { %3094 = vmatprep.subr.bf16.mxu0 %v3697_v4 }
 0x616   :  { %3096 = vmatpush1.bf16.msra.mxu0 %v3824_v21 }
 0x617   :  { %3097 = vmatprep.subr.bf16.mxu0 %v3697_v4 }
 0x61a   :  { %3099 = vmatpush1.bf16.msra.mxu0 %v3836_v24 }
 0x61b   :  { %3100 = vmatprep.subr.bf16.mxu0 %v3697_v4 }
 0x61e   :  { %3102 = vmatpush1.bf16.msra.mxu0 %v3848_v27 }
 0x61f   :  { %3103 = vmatprep.subr.bf16.mxu0 %v3697_v4 }
 0x622   :  { %3105 = vmatpush1.bf16.msra.mxu0 %v3860_v30 }
 0x623   :  { %3106 = vmatprep.subr.bf16.mxu0 %v3697_v4 }
 0x626   :  { %3108 = vmatpush1.bf16.msra.mxu0 %v3872_v33 }
 0x627   :  { %3139 = vmatprep.subr.bf16.mxu0 %v3697_v4 }
 0x6d4   :  { %v354_v19 = vpop.f32.mrb[2].mxu0 }
 0x6d5   :  { %v355_v20 = vadd.f32 %v3908_v38, %v354_v19  ;;  %v356_v22 = vpop.f32.mrb[3].mxu0 }
 0x6d7   :  { %3551 = vtanh.f32 %v355_v20  ;;  %v2750_v25 = vmul.f32 -1.442695, %v355_v20 }
 0x6d9   :  { %3553 = vpow2.f32 %v2750_v25 }
 0x6e1   :  { %v3552_v23 = vpop.eup %3551 }
 0x6e2   :  { %367 = vrot.lane.b32.xlu1 %v3552_v23, %s3700_s10 }
 0x6e3   :  { %v3554_v26 = vpop.eup %3553 }
 0x6e4   :  { %v361_v28 = vadd.f32 1.0, %v3554_v26 }
 0x6e6   :  { %3555 = vrcp.f32 %v361_v28 }
 0x6f0   :  { %v3556_v29 = vpop.eup %3555 }
 0x6f1   :  { %v365_v36 = vmul.f32 %v3556_v29, %v268_v10 }
 0x754   :  { %v368_v31 = vpop.permute.xlu1 %367 }
 0x755   :  { %v370_v32 = vmul.f32 %v3556_v29, %v368_v31 }
 0x757   :  { %372 = vrot.lane.b32.xlu0 %v370_v32, %s3701_s4 }
 0x75b   :  { %385 = vperm.xlu0 %3533, %v2751_v34  }
 0x7c9   :  { %v373_v39 = vpop.permute.xlu0 %372 }
 0x7ca   :  { %v375_v40 = vadd.f32 %v373_v39, %v365_v36 }
 0x7cc   :  { %3557 = vtanh.f32 %v375_v40 }
 0x7d6   :  { %v3558_v41 = vpop.eup %3557 }
 0x7d7   :  { %378 = vrot.lane.b32.xlu1 %v3558_v41, %s3700_s10 }
 0x7da   :  { %v386_v44 = vpop.permute.xlu0 %385 }
 0x7db   :  { %vm387_vm4 = vcmp.eq.s32.totalorder %v3881_v35, %v386_v44  ;;  %v2766_v44 = vld [vmem:[%s4695_s0 + $0x30] sm:$0xff] }
 0x849   :  { %v379_v42 = vpop.permute.xlu1 %378 }
 0x84a   :  { %v381_v43 = vmul.f32 %v3556_v29, %v379_v42 }
 0x84c   :  { %391 = vrot.lane.b32.xlu1 %v381_v43, %s3701_s4 }
 0x8be   :  { %v392_v45 = vpop.permute.xlu1 %391 }
 0x8bf   :  { %2753 = vmatprep.mubr.msk.f32.mxu1 %vm70_vm1, %v392_v45 }
 0x8c0   :  { %2754 = vmatmul.mubr.msk.f32.vlgmr.msra.gmra.mrb[2].mxu1 %vm387_vm4, %v3699_v37 }
 0x8c1   :  { %3111 = vmatpush1.bf16.msra.mxu1 %v3766_v5 }
 0x8c2   :  { %3112 = vmatprep.subr.bf16.mxu1 %v3697_v4 }
 0x8c5   :  { %3114 = vmatpush1.bf16.msra.mxu1 %v3775_v9 }
 0x8c6   :  { %3115 = vmatprep.subr.bf16.mxu1 %v3697_v4 }
 0x8c9   :  { %3117 = vmatpush1.bf16.msra.mxu1 %v3788_v12 }
 0x8ca   :  { %3118 = vmatprep.subr.bf16.mxu1 %v3697_v4 }
 0x8cd   :  { %3120 = vmatpush1.bf16.msra.mxu1 %v3800_v15 }
 0x8ce   :  { %3121 = vmatprep.subr.bf16.mxu1 %v3697_v4 }
 0x8d1   :  { %3123 = vmatpush1.bf16.msra.mxu1 %v3812_v18 }
 0x8d2   :  { %3124 = vmatprep.subr.bf16.mxu1 %v3697_v4 }
 0x8d5   :  { %3126 = vmatpush1.bf16.msra.mxu1 %v3824_v21 }
 0x8d6   :  { %3127 = vmatprep.subr.bf16.mxu1 %v3697_v4 }
 0x8d9   :  { %3129 = vmatpush1.bf16.msra.mxu1 %v3836_v24 }
 0x8da   :  { %3130 = vmatprep.subr.bf16.mxu1 %v3697_v4 }
 0x8dd   :  { %3132 = vmatpush1.bf16.msra.mxu1 %v3848_v27 }
 0x8de   :  { %3133 = vmatprep.subr.bf16.mxu1 %v3697_v4 }
 0x8e1   :  { %3135 = vmatpush1.bf16.msra.mxu1 %v3860_v30 }
 0x8e2   :  { %3136 = vmatprep.subr.bf16.mxu1 %v3697_v4 }
 0x8e5   :  { %3138 = vmatpush1.bf16.msra.mxu1 %v3872_v33 }
 0x8e6   :  { %3169 = vmatprep.subr.bf16.mxu1 %v3697_v4 }
 0x993   :  { %v461_v46 = vpop.f32.mrb[2].mxu1 }
 0x994   :  { %v462_v47 = vadd.f32 %v3908_v38, %v461_v46  ;;  %v463_v48 = vpop.f32.mrb[3].mxu1 }
 0x996   :  { %3559 = vtanh.f32 %v462_v47  ;;  %v2755_v50 = vmul.f32 -1.442695, %v462_v47 }
 0x998   :  { %3561 = vpow2.f32 %v2755_v50 }
 0x9a0   :  { %v3560_v49 = vpop.eup %3559 }
 0x9a1   :  { %474 = vrot.lane.b32.xlu0 %v3560_v49, %s3700_s10 }
 0x9a2   :  { %v3562_v51 = vpop.eup %3561 }
 0x9a3   :  { %v468_v52 = vadd.f32 1.0, %v3562_v51 }
 0x9a5   :  { %3563 = vrcp.f32 %v468_v52 }
 0x9af   :  { %v3564_v53 = vpop.eup %3563 }
 0x9b0   :  { %v472_v57 = vmul.f32 %v3564_v53, %v375_v40 }
 0xa13   :  { %v475_v54 = vpop.permute.xlu0 %474 }
 0xa14   :  { %v477_v55 = vmul.f32 %v3564_v53, %v475_v54 }
 0xa16   :  { %479 = vrot.lane.b32.xlu1 %v477_v55, %s3701_s4 }
 0xa1a   :  { %492 = vperm.xlu1 %3534, %v2756_v56  }
 0xa88   :  { %v480_v58 = vpop.permute.xlu1 %479 }
 0xa89   :  { %v482_v59 = vadd.f32 %v480_v58, %v472_v57 }
 0xa8b   :  { %3565 = vtanh.f32 %v482_v59 }
 0xa95   :  { %v3566_v60 = vpop.eup %3565 }
 0xa96   :  { %485 = vrot.lane.b32.xlu0 %v3566_v60, %s3700_s10 }
 0xa99   :  { %v493_v63 = vpop.permute.xlu1 %492 }
 0xa9a   :  { %vm494_vm5 = vcmp.eq.s32.totalorder %v3881_v35, %v493_v63  ;;  %v2771_v63 = vld [vmem:[%s4695_s0 + $0x38] sm:$0xff] }
 0xb08   :  { %v486_v61 = vpop.permute.xlu0 %485 }
 0xb09   :  { %v488_v62 = vmul.f32 %v3564_v53, %v486_v61 }
 0xb0b   :  { %498 = vrot.lane.b32.xlu0 %v488_v62, %s3701_s4 }
 0xb7d   :  { %v499_v0 = vpop.permute.xlu0 %498 }
 0xb7e   :  { %2758 = vmatprep.mubr.msk.f32.mxu0 %vm70_vm1, %v499_v0 }
 0xb7f   :  { %2759 = vmatmul.mubr.msk.f32.vlgmr.msra.gmra.mrb[4].mxu0 %vm494_vm5, %v3699_v37 }
 0xb80   :  { %3141 = vmatpush1.bf16.msra.mxu0 %v3766_v5 }
 0xb81   :  { %3142 = vmatprep.subr.bf16.mxu0 %v3697_v4 }
 0xb84   :  { %3144 = vmatpush1.bf16.msra.mxu0 %v3775_v9 }
 0xb85   :  { %3145 = vmatprep.subr.bf16.mxu0 %v3697_v4 }
 0xb88   :  { %3147 = vmatpush1.bf16.msra.mxu0 %v3788_v12 }
 0xb89   :  { %3148 = vmatprep.subr.bf16.mxu0 %v3697_v4 }
 0xb8c   :  { %3150 = vmatpush1.bf16.msra.mxu0 %v3800_v15 }
 0xb8d   :  { %3151 = vmatprep.subr.bf16.mxu0 %v3697_v4 }
 0xb90   :  { %3153 = vmatpush1.bf16.msra.mxu0 %v3812_v18 }
 0xb91   :  { %3154 = vmatprep.subr.bf16.mxu0 %v3697_v4 }
 0xb94   :  { %3156 = vmatpush1.bf16.msra.mxu0 %v3824_v21 }
 0xb95   :  { %3157 = vmatprep.subr.bf16.mxu0 %v3697_v4 }
 0xb98   :  { %3159 = vmatpush1.bf16.msra.mxu0 %v3836_v24 }
 0xb99   :  { %3160 = vmatprep.subr.bf16.mxu0 %v3697_v4 }
 0xb9c   :  { %3162 = vmatpush1.bf16.msra.mxu0 %v3848_v27 }
 0xb9d   :  { %3163 = vmatprep.subr.bf16.mxu0 %v3697_v4 }
 0xba0   :  { %3165 = vmatpush1.bf16.msra.mxu0 %v3860_v30 }
 0xba1   :  { %3166 = vmatprep.subr.bf16.mxu0 %v3697_v4 }
 0xba4   :  { %3168 = vmatpush1.bf16.msra.mxu0 %v3872_v33 }
 0xba5   :  { %3199 = vmatprep.subr.bf16.mxu0 %v3697_v4 }
 0xc52   :  { %v568_v1 = vpop.f32.mrb[4].mxu0 }
 0xc53   :  { %v569_v2 = vadd.f32 %v3908_v38, %v568_v1  ;;  %v570_v3 = vpop.f32.mrb[5].mxu0 }
 0xc55   :  { %3567 = vtanh.f32 %v569_v2  ;;  %v2760_v7 = vmul.f32 -1.442695, %v569_v2 }
 0xc57   :  { %3569 = vpow2.f32 %v2760_v7 }
 0xc5f   :  { %v3568_v6 = vpop.eup %3567 }
 0xc60   :  { %581 = vrot.lane.b32.xlu1 %v3568_v6, %s3700_s10 }
 0xc61   :  { %v3570_v8 = vpop.eup %3569 }
 0xc62   :  { %v575_v10 = vadd.f32 1.0, %v3570_v8 }
 0xc64   :  { %3571 = vrcp.f32 %v575_v10 }
 0xc6e   :  { %v3572_v11 = vpop.eup %3571 }
 0xc6f   :  { %v579_v17 = vmul.f32 %v3572_v11, %v482_v59 }
 0xcd2   :  { %v582_v13 = vpop.permute.xlu1 %581 }
 0xcd3   :  { %v584_v14 = vmul.f32 %v3572_v11, %v582_v13 }
 0xcd5   :  { %586 = vrot.lane.b32.xlu0 %v584_v14, %s3701_s4 }
 0xcd9   :  { %599 = vperm.xlu0 %3533, %v2761_v16  }
 0xd47   :  { %v587_v19 = vpop.permute.xlu0 %586 }
 0xd48   :  { %v589_v20 = vadd.f32 %v587_v19, %v579_v17 }
 0xd4a   :  { %3573 = vtanh.f32 %v589_v20 }
 0xd54   :  { %v3574_v22 = vpop.eup %3573 }
 0xd55   :  { %592 = vrot.lane.b32.xlu1 %v3574_v22, %s3700_s10 }
 0xd58   :  { %v600_v26 = vpop.permute.xlu0 %599 }
 0xd59   :  { %vm601_vm6 = vcmp.eq.s32.totalorder %v3881_v35, %v600_v26 }
 0xdc7   :  { %v593_v23 = vpop.permute.xlu1 %592 }
 0xdc8   :  { %v595_v25 = vmul.f32 %v3572_v11, %v593_v23 }
 0xdca   :  { %605 = vrot.lane.b32.xlu1 %v595_v25, %s3701_s4 }
 0xe3c   :  { %v606_v28 = vpop.permute.xlu1 %605 }
 0xe3d   :  { %2763 = vmatprep.mubr.msk.f32.mxu1 %vm70_vm1, %v606_v28 }
 0xe3e   :  { %2764 = vmatmul.mubr.msk.f32.vlgmr.msra.gmra.mrb[4].mxu1 %vm601_vm6, %v3699_v37 }
 0xe3f   :  { %3171 = vmatpush1.bf16.msra.mxu1 %v3766_v5 }
 0xe40   :  { %3172 = vmatprep.subr.bf16.mxu1 %v3697_v4 }
 0xe43   :  { %3174 = vmatpush1.bf16.msra.mxu1 %v3775_v9 }
 0xe44   :  { %3175 = vmatprep.subr.bf16.mxu1 %v3697_v4 }
 0xe47   :  { %3177 = vmatpush1.bf16.msra.mxu1 %v3788_v12 }
 0xe48   :  { %3178 = vmatprep.subr.bf16.mxu1 %v3697_v4 }
 0xe4b   :  { %3180 = vmatpush1.bf16.msra.mxu1 %v3800_v15 }
 0xe4c   :  { %3181 = vmatprep.subr.bf16.mxu1 %v3697_v4 }
 0xe4f   :  { %3183 = vmatpush1.bf16.msra.mxu1 %v3812_v18 }
 0xe50   :  { %3184 = vmatprep.subr.bf16.mxu1 %v3697_v4 }
 0xe53   :  { %3186 = vmatpush1.bf16.msra.mxu1 %v3824_v21 }
 0xe54   :  { %3187 = vmatprep.subr.bf16.mxu1 %v3697_v4 }
 0xe57   :  { %3189 = vmatpush1.bf16.msra.mxu1 %v3836_v24 }
 0xe58   :  { %3190 = vmatprep.subr.bf16.mxu1 %v3697_v4 }
 0xe5b   :  { %3192 = vmatpush1.bf16.msra.mxu1 %v3848_v27 }
 0xe5c   :  { %3193 = vmatprep.subr.bf16.mxu1 %v3697_v4 }
 0xe5f   :  { %3195 = vmatpush1.bf16.msra.mxu1 %v3860_v30 }
 0xe60   :  { %3196 = vmatprep.subr.bf16.mxu1 %v3697_v4 }
 0xe63   :  { %3198 = vmatpush1.bf16.msra.mxu1 %v3872_v33 }
 0xe64   :  { %3229 = vmatprep.subr.bf16.mxu1 %v3697_v4 }
 0xf11   :  { %v675_v29 = vpop.f32.mrb[4].mxu1 }
 0xf12   :  { %v676_v31 = vadd.f32 %v3908_v38, %v675_v29  ;;  %v677_v32 = vpop.f32.mrb[5].mxu1 }
 0xf14   :  { %3575 = vtanh.f32 %v676_v31  ;;  %v2765_v36 = vmul.f32 -1.442695, %v676_v31 }
 0xf16   :  { %3577 = vpow2.f32 %v2765_v36 }
 0xf1e   :  { %v3576_v34 = vpop.eup %3575 }
 0xf1f   :  { %688 = vrot.lane.b32.xlu0 %v3576_v34, %s3700_s10 }
 0xf20   :  { %v3578_v39 = vpop.eup %3577 }
 0xf21   :  { %v682_v40 = vadd.f32 1.0, %v3578_v39 }
 0xf23   :  { %3579 = vrcp.f32 %v682_v40 }
 0xf2d   :  { %v3580_v41 = vpop.eup %3579 }
 0xf2e   :  { %v686_v45 = vmul.f32 %v3580_v41, %v589_v20 }
 0xf91   :  { %v689_v42 = vpop.permute.xlu0 %688 }
 0xf92   :  { %v691_v43 = vmul.f32 %v3580_v41, %v689_v42 }
 0xf94   :  { %693 = vrot.lane.b32.xlu1 %v691_v43, %s3701_s4 }
 0xf98   :  { %706 = vperm.xlu1 %3534, %v2766_v44  }
0x1006   :  { %v694_v46 = vpop.permute.xlu1 %693 }
0x1007   :  { %v696_v47 = vadd.f32 %v694_v46, %v686_v45 }
0x1009   :  { %3581 = vtanh.f32 %v696_v47 }
0x1013   :  { %v3582_v48 = vpop.eup %3581 }
0x1014   :  { %699 = vrot.lane.b32.xlu0 %v3582_v48, %s3700_s10 }
0x1017   :  { %v707_v51 = vpop.permute.xlu1 %706 }
0x1018   :  { %vm708_vm7 = vcmp.eq.s32.totalorder %v3881_v35, %v707_v51 }
0x1086   :  { %v700_v49 = vpop.permute.xlu0 %699 }
0x1087   :  { %v702_v50 = vmul.f32 %v3580_v41, %v700_v49  ;;  %v2781_v41 = vld [vmem:[%s4695_s0 + $0x48] sm:$0xff] }
0x1089   :  { %712 = vrot.lane.b32.xlu0 %v702_v50, %s3701_s4 }
0x10fb   :  { %v713_v52 = vpop.permute.xlu0 %712 }
0x10fc   :  { %2768 = vmatprep.mubr.msk.f32.mxu0 %vm70_vm1, %v713_v52 }
0x10fd   :  { %2769 = vmatmul.mubr.msk.f32.vlgmr.msra.gmra.mrb[6].mxu0 %vm708_vm7, %v3699_v37 }
0x10fe   :  { %3201 = vmatpush1.bf16.msra.mxu0 %v3766_v5 }
0x10ff   :  { %3202 = vmatprep.subr.bf16.mxu0 %v3697_v4 }
0x1102   :  { %3204 = vmatpush1.bf16.msra.mxu0 %v3775_v9 }
0x1103   :  { %3205 = vmatprep.subr.bf16.mxu0 %v3697_v4 }
0x1106   :  { %3207 = vmatpush1.bf16.msra.mxu0 %v3788_v12 }
0x1107   :  { %3208 = vmatprep.subr.bf16.mxu0 %v3697_v4 }
0x110a   :  { %3210 = vmatpush1.bf16.msra.mxu0 %v3800_v15 }
0x110b   :  { %3211 = vmatprep.subr.bf16.mxu0 %v3697_v4 }
0x110e   :  { %3213 = vmatpush1.bf16.msra.mxu0 %v3812_v18 }
0x110f   :  { %3214 = vmatprep.subr.bf16.mxu0 %v3697_v4 }
0x1112   :  { %3216 = vmatpush1.bf16.msra.mxu0 %v3824_v21 }
0x1113   :  { %3217 = vmatprep.subr.bf16.mxu0 %v3697_v4 }
0x1116   :  { %3219 = vmatpush1.bf16.msra.mxu0 %v3836_v24 }
0x1117   :  { %3220 = vmatprep.subr.bf16.mxu0 %v3697_v4 }
0x111a   :  { %3222 = vmatpush1.bf16.msra.mxu0 %v3848_v27 }
0x111b   :  { %3223 = vmatprep.subr.bf16.mxu0 %v3697_v4 }
0x111e   :  { %3225 = vmatpush1.bf16.msra.mxu0 %v3860_v30 }
0x111f   :  { %3226 = vmatprep.subr.bf16.mxu0 %v3697_v4 }
0x1122   :  { %3228 = vmatpush1.bf16.msra.mxu0 %v3872_v33 }
0x1123   :  { %3259 = vmatprep.subr.bf16.mxu0 %v3697_v4 }
0x11d0   :  { %v782_v53 = vpop.f32.mrb[6].mxu0 }
0x11d1   :  { %v783_v54 = vadd.f32 %v3908_v38, %v782_v53  ;;  %v784_v55 = vpop.f32.mrb[7].mxu0 }
0x11d3   :  { %3583 = vtanh.f32 %v783_v54  ;;  %v2770_v57 = vmul.f32 -1.442695, %v783_v54 }
0x11d5   :  { %3585 = vpow2.f32 %v2770_v57 }
0x11dd   :  { %v3584_v56 = vpop.eup %3583 }
0x11de   :  { %795 = vrot.lane.b32.xlu1 %v3584_v56, %s3700_s10 }
0x11df   :  { %v3586_v58 = vpop.eup %3585 }
0x11e0   :  { %v789_v59 = vadd.f32 1.0, %v3586_v58 }
0x11e2   :  { %3587 = vrcp.f32 %v789_v59 }
0x11ec   :  { %v3588_v60 = vpop.eup %3587 }
0x11ed   :  { %v793_v0 = vmul.f32 %v3588_v60, %v696_v47 }
0x1250   :  { %v796_v61 = vpop.permute.xlu1 %795 }
0x1251   :  { %v798_v62 = vmul.f32 %v3588_v60, %v796_v61 }
0x1253   :  { %800 = vrot.lane.b32.xlu0 %v798_v62, %s3701_s4 }
0x1257   :  { %813 = vperm.xlu0 %3533, %v2771_v63   ;;  %v1142_v63 = vld [vmem:[%s4700_s5] sm:$0xff] }
0x12c5   :  { %v801_v1 = vpop.permute.xlu0 %800 }
0x12c6   :  { %v803_v2 = vadd.f32 %v801_v1, %v793_v0  ;;  %v1143_v0 = vld [vmem:[%s4700_s5 + $0x8] sm:$0xff]  ;;  %v1144_v1 = vld [vmem:[%s4700_s5 + $0x10] sm:$0xff] }
0x12c8   :  { %3589 = vtanh.f32 %v803_v2 }
0x12d2   :  { %v3590_v3 = vpop.eup %3589 }
0x12d3   :  { %806 = vrot.lane.b32.xlu1 %v3590_v3, %s3700_s10  ;;  %v1145_v3 = vld [vmem:[%s4700_s5 + $0x18] sm:$0xff] }
0x12d6   :  { %v814_v8 = vpop.permute.xlu0 %813 }
0x12d7   :  { %vm815_vm8 = vcmp.eq.s32.totalorder %v3881_v35, %v814_v8  ;;  %v1147_v8 = vld [vmem:[%s4700_s5 + $0x28] sm:$0xff] }
0x1345   :  { %v807_v6 = vpop.permute.xlu1 %806 }
0x1346   :  { %v809_v7 = vmul.f32 %v3588_v60, %v807_v6  ;;  %v4177_v6 = vpack.c.bf16 %v1145_v3, %v1144_v1  ;;  %v4355_v3 = vcvt.s32.f32 %v3881_v35 }
0x1348   :  { %819 = vrot.lane.b32.xlu1 %v809_v7, %s3701_s4  ;;  %v1146_v7 = vld [vmem:[%s4700_s5 + $0x20] sm:$0xff] }
0x13ba   :  { %v820_v10 = vpop.permute.xlu1 %819 }
0x13bb   :  { %2773 = vmatprep.mubr.msk.f32.mxu1 %vm70_vm1, %v820_v10  ;;  %v4187_v10 = vpack.c.bf16 %v1147_v8, %v1146_v7 }
0x13bc   :  { %2774 = vmatmul.mubr.msk.f32.vlgmr.msra.gmra.mrb[6].mxu1 %vm815_vm8, %v3699_v37 }
0x13bd   :  { %3231 = vmatpush1.bf16.msra.mxu1 %v3766_v5 }
0x13be   :  { %3232 = vmatprep.subr.bf16.mxu1 %v3697_v4 }
0x13c1   :  { %3234 = vmatpush1.bf16.msra.mxu1 %v3775_v9 }
0x13c2   :  { %3235 = vmatprep.subr.bf16.mxu1 %v3697_v4 }
0x13c5   :  { %3237 = vmatpush1.bf16.msra.mxu1 %v3788_v12 }
0x13c6   :  { %3238 = vmatprep.subr.bf16.mxu1 %v3697_v4 }
0x13c9   :  { %3240 = vmatpush1.bf16.msra.mxu1 %v3800_v15 }
0x13ca   :  { %3241 = vmatprep.subr.bf16.mxu1 %v3697_v4 }
0x13cd   :  { %3243 = vmatpush1.bf16.msra.mxu1 %v3812_v18 }
0x13ce   :  { %3244 = vmatprep.subr.bf16.mxu1 %v3697_v4 }
0x13d1   :  { %3246 = vmatpush1.bf16.msra.mxu1 %v3824_v21 }
0x13d2   :  { %3247 = vmatprep.subr.bf16.mxu1 %v3697_v4 }
0x13d5   :  { %3249 = vmatpush1.bf16.msra.mxu1 %v3836_v24 }
0x13d6   :  { %3250 = vmatprep.subr.bf16.mxu1 %v3697_v4 }
0x13d9   :  { %3252 = vmatpush1.bf16.msra.mxu1 %v3848_v27 }
0x13da   :  { %3253 = vmatprep.subr.bf16.mxu1 %v3697_v4 }
0x13dd   :  { %3255 = vmatpush1.bf16.msra.mxu1 %v3860_v30 }
0x13de   :  { %3256 = vmatprep.subr.bf16.mxu1 %v3697_v4 }
0x13e1   :  { %3258 = vmatpush1.bf16.msra.mxu1 %v3872_v33  ;;  %v2776_v33 = vld [vmem:[%s4695_s0 + $0x40] sm:$0xff] }
0x13e2   :  { %3289 = vmatprep.subr.bf16.mxu1 %v3697_v4 }
0x148f   :  { %v889_v5 = vpop.f32.mrb[6].mxu1 }
0x1490   :  { %v890_v9 = vadd.f32 %v3908_v38, %v889_v5  ;;  %v891_v12 = vpop.f32.mrb[7].mxu1  ;;  %v1148_v5 = vld [vmem:[%s4700_s5 + $0x30] sm:$0xff] }
0x1492   :  { %3591 = vtanh.f32 %v890_v9  ;;  %v2775_v18 = vmul.f32 -1.442695, %v890_v9  ;;  %v1149_v9 = vld [vmem:[%s4700_s5 + $0x38] sm:$0xff] }
0x1494   :  { %3593 = vpow2.f32 %v2775_v18  ;;  %v1150_v18 = vld [vmem:[%s4700_s5 + $0x40] sm:$0xff] }
0x149c   :  { %v3592_v15 = vpop.eup %3591 }
0x149d   :  { %902 = vrot.lane.b32.xlu0 %v3592_v15, %s3700_s10  ;;  %v4198_v15 = vpack.c.bf16 %v1149_v9, %v1148_v5  ;;  %v2793_v5 = vld [vmem:[%s4697_s2 + $0x8] sm:$0xff] }
0x149e   :  { %v3594_v21 = vpop.eup %3593  ;;  %vm1362_vm14 = vcmp.ne.s32.totalorder %v2793_v5, 0 }
0x149f   :  { %v896_v24 = vadd.f32 1.0, %v3594_v21  ;;  %v1151_v21 = vld [vmem:[%s4700_s5 + $0x48] sm:$0xff] }
0x14a1   :  { %3595 = vrcp.f32 %v896_v24  ;;  %v4208_v24 = vpack.c.bf16 %v1151_v21, %v1150_v18  ;;  %v2794_v18 = vld [vmem:[%s4696_s1 + $0x8] sm:$0xff] }
0x14ab   :  { %v3596_v27 = vpop.eup %3595 }
0x14ac   :  { %v900_v13 = vmul.f32 %v3596_v27, %v803_v2  ;;  %v4171_v2 = vpack.c.bf16 %v1143_v0, %v1142_v63 }
0x150f   :  { %v903_v30 = vpop.permute.xlu0 %902 }
0x1510   :  { %v905_v11 = vmul.f32 %v3596_v27, %v903_v30  ;;  %v1153_v30 = vld [vmem:[%s4700_s5 + $0x58] sm:$0xff] }
0x1512   :  { %907 = vrot.lane.b32.xlu1 %v905_v11, %s3701_s4 }
0x1516   :  { %920 = vperm.xlu1 %3534, %v2776_v33   ;;  %v1154_v33 = vld [vmem:[%s4700_s5 + $0x60] sm:$0xff] }
0x1584   :  { %v908_v14 = vpop.permute.xlu1 %907 }
0x1585   :  { %v910_v16 = vadd.f32 %v908_v14, %v900_v13  ;;  %v1155_v13 = vld [vmem:[%s4700_s5 + $0x68] sm:$0xff] }
0x1586   :  { %v4228_v14 = vpack.c.bf16 %v1155_v13, %v1154_v33 }
0x1587   :  { %3597 = vtanh.f32 %v910_v16 }
0x1591   :  { %v3598_v17 = vpop.eup %3597 }
0x1592   :  { %913 = vrot.lane.b32.xlu0 %v3598_v17, %s3700_s10  ;;  %v1157_v17 = vld [vmem:[%s4700_s5 + $0x78] sm:$0xff] }
0x1595   :  { %v921_v22 = vpop.permute.xlu1 %920 }
0x1596   :  { %vm922_vm9 = vcmp.eq.s32.totalorder %v3881_v35, %v921_v22  ;;  %v1159_v22 = vld [vmem:[%s4700_s5 + $0x88] sm:$0xff] }
0x1604   :  { %v914_v19 = vpop.permute.xlu0 %913 }
0x1605   :  { %v916_v20 = vmul.f32 %v3596_v27, %v914_v19  ;;  %v1152_v27 = vld [vmem:[%s4700_s5 + $0x50] sm:$0xff] }
0x1606   :  { %v4218_v11 = vpack.c.bf16 %v1153_v30, %v1152_v27 }
0x1607   :  { %926 = vrot.lane.b32.xlu0 %v916_v20, %s3701_s4  ;;  %v1158_v20 = vld [vmem:[%s4700_s5 + $0x80] sm:$0xff] }
0x1679   :  { %v927_v23 = vpop.permute.xlu0 %926 }
0x167a   :  { %2778 = vmatprep.mubr.msk.f32.mxu0 %vm70_vm1, %v927_v23  ;;  %v4248_v23 = vpack.c.bf16 %v1159_v22, %v1158_v20 }
0x167b   :  { %2779 = vmatmul.mubr.msk.f32.vlgmr.msra.gmra.mrb[8].mxu0 %vm922_vm9, %v3699_v37 }
0x167c   :  { %3261 = vmatpush1.bf16.msra.mxu0 %v4171_v2 }
0x167d   :  { %3262 = vmatprep.subr.bf16.mxu0 %v3697_v4 }
0x1680   :  { %3264 = vmatpush1.bf16.msra.mxu0 %v4177_v6 }
0x1681   :  { %3265 = vmatprep.subr.bf16.mxu0 %v3697_v4 }
0x1684   :  { %3267 = vmatpush1.bf16.msra.mxu0 %v4187_v10 }
0x1685   :  { %3268 = vmatprep.subr.bf16.mxu0 %v3697_v4 }
0x1688   :  { %3270 = vmatpush1.bf16.msra.mxu0 %v4198_v15 }
0x1689   :  { %3271 = vmatprep.subr.bf16.mxu0 %v3697_v4 }
0x168c   :  { %3273 = vmatpush1.bf16.msra.mxu0 %v4208_v24 }
0x168d   :  { %3274 = vmatprep.subr.bf16.mxu0 %v3697_v4 }
0x1690   :  { %3276 = vmatpush1.bf16.msra.mxu0 %v4218_v11 }
0x1691   :  { %3277 = vmatprep.subr.bf16.mxu0 %v3697_v4 }
0x1694   :  { %3279 = vmatpush1.bf16.msra.mxu0 %v4228_v14 }
0x1695   :  { %3280 = vmatprep.subr.bf16.mxu0 %v3697_v4 }
0x174e   :  { %v996_v25 = vpop.f32.mrb[8].mxu0 }
0x174f   :  { %v997_v26 = vadd.f32 %v3908_v38, %v996_v25  ;;  %v998_v28 = vpop.f32.mrb[9].mxu0  ;;  %v1160_v25 = vld [vmem:[%s4700_s5 + $0x90] sm:$0xff] }
0x1751   :  { %3599 = vtanh.f32 %v997_v26  ;;  %v2780_v31 = vmul.f32 -1.442695, %v997_v26  ;;  %v1161_v26 = vld [vmem:[%s4700_s5 + $0x98] sm:$0xff] }
0x1752   :  { %v4258_v28 = vpack.c.bf16 %v1161_v26, %v1160_v25 }
0x1753   :  { %3601 = vpow2.f32 %v2780_v31 }
0x175b   :  { %v3600_v29 = vpop.eup %3599 }
0x175c   :  { %1009 = vrot.lane.b32.xlu1 %v3600_v29, %s3700_s10 }
0x175d   :  { %v3602_v32 = vpop.eup %3601 }
0x175e   :  { %v1003_v34 = vadd.f32 1.0, %v3602_v32 }
0x1760   :  { %3603 = vrcp.f32 %v1003_v34 }
0x176a   :  { %v3604_v36 = vpop.eup %3603 }
0x176b   :  { %v1007_v42 = vmul.f32 %v3604_v36, %v910_v16  ;;  %v1156_v16 = vld [vmem:[%s4700_s5 + $0x70] sm:$0xff] }
0x176c   :  { %v4238_v19 = vpack.c.bf16 %v1157_v17, %v1156_v16 }
0x176e   :  { %3282 = vmatpush1.bf16.msra.mxu0 %v4238_v19 }
0x176f   :  { %3283 = vmatprep.subr.bf16.mxu0 %v3697_v4 }
0x1772   :  { %3285 = vmatpush1.bf16.msra.mxu0 %v4248_v23 }
0x1773   :  { %3286 = vmatprep.subr.bf16.mxu0 %v3697_v4 }
0x1776   :  { %3288 = vmatpush1.bf16.msra.mxu0 %v4258_v28 }
0x1777   :  { %3331 = vmatprep.subr.bf16.mxu0 %v3697_v4 }
0x17ce   :  { %v1010_v39 = vpop.permute.xlu1 %1009 }
0x17cf   :  { %v1012_v40 = vmul.f32 %v3604_v36, %v1010_v39 }
0x17d1   :  { %1014 = vrot.lane.b32.xlu0 %v1012_v40, %s3701_s4 }
0x17d5   :  { %1027 = vperm.xlu0 %3533, %v2781_v41  }
0x1843   :  { %v1015_v43 = vpop.permute.xlu0 %1014 }
0x1844   :  { %v1017_v44 = vadd.f32 %v1015_v43, %v1007_v42 }
0x1846   :  { %3605 = vtanh.f32 %v1017_v44 }
0x1850   :  { %v3606_v45 = vpop.eup %3605 }
0x1851   :  { %1020 = vrot.lane.b32.xlu1 %v3606_v45, %s3700_s10 }
0x1854   :  { %v1028_v48 = vpop.permute.xlu0 %1027 }
0x1855   :  { %vm1029_vm10 = vcmp.eq.s32.totalorder %v3881_v35, %v1028_v48 }
0x18c3   :  { %v1021_v46 = vpop.permute.xlu1 %1020 }
0x18c4   :  { %v1023_v47 = vmul.f32 %v3604_v36, %v1021_v46  ;;  %v4291_v36 = vld [vmem:[%s4701_s6] ss:$0 sm:$0xff] }
0x18c6   :  { %1033 = vrot.lane.b32.xlu1 %v1023_v47, %s3701_s4 }
0x1938   :  { %v1034_v49 = vpop.permute.xlu1 %1033 }
0x1939   :  { %2783 = vmatprep.mubr.msk.f32.mxu1 %vm70_vm1, %v1034_v49 }
0x193a   :  { %2784 = vmatmul.mubr.msk.f32.vlgmr.msra.gmra.mrb[8].mxu1 %vm1029_vm10, %v3699_v37 }
0x1a0d   :  { %v1103_v50 = vpop.f32.mrb[8].mxu1 }
0x1a0e   :  { %v1104_v51 = vadd.f32 %v3908_v38, %v1103_v50  ;;  %v1105_v52 = vpop.f32.mrb[9].mxu1  ;;  %v1132_v38 = vld [vmem:[%s4696_s1] sm:$0xff] }
0x1a0f   :  { %v1265_v52 = vld [vmem:[%s4702_s7] sm:$0xff] }
0x1a10   :  { %3607 = vtanh.f32 %v1104_v51  ;;  %v2785_v54 = vmul.f32 -1.442695, %v1104_v51 }
0x1a12   :  { %3609 = vpow2.f32 %v2785_v54  ;;  %v1267_v54 = vld [vmem:[%s4702_s7 + $0x10] sm:$0xff] }
0x1a1a   :  { %v3608_v53 = vpop.eup %3607 }
0x1a1b   :  { %1116 = vrot.lane.b32.xlu0 %v3608_v53, %s3700_s10  ;;  %v1266_v53 = vld [vmem:[%s4702_s7 + $0x8] sm:$0xff] }
0x1a1c   :  { %v3610_v55 = vpop.eup %3609 }
0x1a1d   :  { %v1110_v56 = vadd.f32 1.0, %v3610_v55  ;;  %v4309_v55 = vpack.c.bf16 %v1266_v53, %v1265_v52  ;;  %v2803_v52 = vld [vmem:[%s4696_s1 + $0x10] sm:$0xff] }
0x1a1f   :  { %3611 = vrcp.f32 %v1110_v56  ;;  %v1268_v56 = vld [vmem:[%s4702_s7 + $0x18] sm:$0xff]  ;;  %3291 = vmatpush3.bf16.msra.mxu1 %v4309_v55 }
0x1a20   :  { %3292 = vmatprep.subr.bf16.mxu1 %v3697_v4 }
0x1a29   :  { %v4151_v57 = vpop.eup %3611 }
0x1a2a   :  { %v1114_v60 = vmul.f32 %v4151_v57, %v1017_v44 }
0x1a8d   :  { %v1117_v58 = vpop.permute.xlu0 %1116 }
0x1a8e   :  { %v1119_v59 = vmul.f32 %v4151_v57, %v1117_v58  ;;  %v4319_v58 = vpack.c.bf16 %v1268_v56, %v1267_v54 }
0x1a90   :  { %1121 = vrot.lane.b32.xlu1 %v1119_v59, %s3701_s4  ;;  %3294 = vmatpush3.bf16.msra.mxu1 %v4319_v58 }
0x1a91   :  { %3295 = vmatprep.subr.bf16.mxu1 %v3697_v4 }
0x1a94   :  { %1134 = vperm.xlu1 %3534, %v1132_v38  }
0x1b02   :  { %v1122_v61 = vpop.permute.xlu1 %1121 }
0x1b03   :  { %v4159_v62 = vadd.f32 %v1122_v61, %v1114_v60 }
0x1b05   :  { %3613 = vtanh.f32 %v4159_v62 }
0x1b0f   :  { %v3614_v12 = vpop.eup %3613 }
0x1b10   :  { %1127 = vrot.lane.b32.xlu0 %v3614_v12, %s3700_s10 }
0x1b13   :  { %v1135_v32 = vpop.permute.xlu1 %1134 }
0x1b14   :  { %vm1136_vm11 = vcmp.eq.s32.totalorder %v3881_v35, %v1135_v32 }
0x1b82   :  { %v1128_v29 = vpop.permute.xlu0 %1127 }
0x1b83   :  { %v1130_v31 = vmul.f32 %v4151_v57, %v1128_v29  ;;  %v4314_v57 = vld [vmem:[#allocation2] sm:$0xff] }
0x1b84   :  { %2890 = vmatprep.mubr.msk.f32.mxu1 %vm3702_vm12, %v4314_v57 }
0x1b85   :  { %1140 = vrot.lane.b32.xlu0 %v1130_v31, %s3701_s4 }
0x1bf7   :  { %v1141_v34 = vpop.permute.xlu0 %1140 }
0x1bf8   :  { %2788 = vmatprep.mubr.msk.f32.mxu0 %vm70_vm1, %v1141_v34 }
0x1bf9   :  { %2789 = vmatmul.mubr.msk.f32.vlgmr.msra.gmra.mrb[10].mxu0 %vm1136_vm11, %v3699_v37 }
0x1bfa   :  { %3333 = vmatpush1.bf16.msra.mxu0 %v4171_v2 }
0x1bfb   :  { %3334 = vmatprep.subr.bf16.mxu0 %v3697_v4 }
0x1bfe   :  { %3336 = vmatpush1.bf16.msra.mxu0 %v4177_v6 }
0x1bff   :  { %3337 = vmatprep.subr.bf16.mxu0 %v3697_v4 }
0x1c02   :  { %3339 = vmatpush1.bf16.msra.mxu0 %v4187_v10 }
0x1c03   :  { %3340 = vmatprep.subr.bf16.mxu0 %v3697_v4 }
0x1c06   :  { %3342 = vmatpush1.bf16.msra.mxu0 %v4198_v15 }
0x1c07   :  { %3343 = vmatprep.subr.bf16.mxu0 %v3697_v4 }
0x1c0a   :  { %3345 = vmatpush1.bf16.msra.mxu0 %v4208_v24 }
0x1c0b   :  { %3346 = vmatprep.subr.bf16.mxu0 %v3697_v4 }
0x1c0e   :  { %3348 = vmatpush1.bf16.msra.mxu0 %v4218_v11 }
0x1c0f   :  { %3349 = vmatprep.subr.bf16.mxu0 %v3697_v4 }
0x1c12   :  { %3351 = vmatpush1.bf16.msra.mxu0 %v4228_v14 }
0x1c13   :  { %3352 = vmatprep.subr.bf16.mxu0 %v3697_v4 }
0x1c16   :  { %3354 = vmatpush1.bf16.msra.mxu0 %v4238_v19 }
0x1c17   :  { %3355 = vmatprep.subr.bf16.mxu0 %v3697_v4 }
0x1c1a   :  { %3357 = vmatpush1.bf16.msra.mxu0 %v4248_v23 }
0x1c1b   :  { %3358 = vmatprep.subr.bf16.mxu0 %v3697_v4 }
0x1c1e   :  { %3360 = vmatpush1.bf16.msra.mxu0 %v4258_v28 }
0x1c1f   :  { %3403 = vmatprep.subr.bf16.mxu0 %v3697_v4 }
0x1ccc   :  { %v1237_v39 = vpop.f32.mrb[10].mxu0 }
0x1ccd   :  { %v1238_v40 = vadd.f32 %v4291_v36, %v1237_v39  ;;  %v1239_v41 = vpop.f32.mrb[11].mxu0 }
0x1ccf   :  { %3615 = vtanh.f32 %v1238_v40  ;;  %v2790_v43 = vmul.f32 -1.442695, %v1238_v40 }
0x1cd1   :  { %3617 = vpow2.f32 %v2790_v43 }
0x1cd9   :  { %v3616_v42 = vpop.eup %3615 }
0x1cda   :  { %1250 = vrot.lane.b32.xlu1 %v3616_v42, %s3700_s10 }
0x1cdb   :  { %v3618_v44 = vpop.eup %3617 }
0x1cdc   :  { %v1244_v45 = vadd.f32 1.0, %v3618_v44 }
0x1cde   :  { %3619 = vrcp.f32 %v1244_v45 }
0x1ce8   :  { %v3620_v46 = vpop.eup %3619 }
0x1ce9   :  { %v1248_v49 = vmul.f32 %v3620_v46, %v4159_v62  ;;  %v4351_v62 = vld [vmem:[%s4703_s8] ss:$0 sm:$0xff] }
0x1d4c   :  { %v1251_v47 = vpop.permute.xlu1 %1250 }
0x1d4d   :  { %v1253_v48 = vmul.f32 %v3620_v46, %v1251_v47 }
0x1d4f   :  { %1255 = vrot.lane.b32.xlu0 %v1253_v48, %s3701_s4 }
0x1dc1   :  { %v1256_v50 = vpop.permute.xlu0 %1255 }
0x1dc2   :  { %v4297_v51 = vadd.f32 %v1256_v50, %v1248_v49  ;;  %v2802_v49 = vld [vmem:[%s4697_s2 + $0x10] sm:$0xff] }
0x1dc3   :  { %vm1590_vm2 = vcmp.ne.s32.totalorder %v2802_v49, 0 }
0x1dc4   :  { %3621 = vtanh.f32 %v4297_v51 }
0x1dce   :  { %v3622_v59 = vpop.eup %3621 }
0x1dcf   :  { %1261 = vrot.lane.b32.xlu1 %v3622_v59, %s3700_s10 }
0x1e41   :  { %v1262_v38 = vpop.permute.xlu1 %1261 }
0x1e42   :  { %v1264_v60 = vmul.f32 %v3620_v46, %v1262_v38 }
0x1e44   :  { %1277 = vrot.lane.b32.xlu0 %v1264_v60, %s3701_s4 }
0x1eb6   :  { %v1278_v61 = vpop.permute.xlu0 %1277 }
0x1eb7   :  { %2891 = vmatmul.mubr.msk.f32.vlgmr.msra.gmra.mrb[10].mxu1 %vm70_vm1, %v1278_v61 }
0x1eb8   :  { %2797 = vmatprep.mubr.msk.f32.mxu1 %vm70_vm1, %v1278_v61  ;;  %3297 = vmatpush1.bf16.msra.mxu1 %v4171_v2 }
0x1eb9   :  { %3298 = vmatprep.subr.bf16.mxu1 %v3697_v4 }
0x1ebc   :  { %3300 = vmatpush1.bf16.msra.mxu1 %v4177_v6 }
0x1ebd   :  { %3301 = vmatprep.subr.bf16.mxu1 %v3697_v4 }
0x1ec0   :  { %3303 = vmatpush1.bf16.msra.mxu1 %v4187_v10 }
0x1ec1   :  { %3304 = vmatprep.subr.bf16.mxu1 %v3697_v4 }
0x1ec4   :  { %3306 = vmatpush1.bf16.msra.mxu1 %v4198_v15 }
0x1ec5   :  { %3307 = vmatprep.subr.bf16.mxu1 %v3697_v4 }
0x1ec8   :  { %3309 = vmatpush1.bf16.msra.mxu1 %v4208_v24 }
0x1ec9   :  { %3310 = vmatprep.subr.bf16.mxu1 %v3697_v4 }
0x1ecc   :  { %3312 = vmatpush1.bf16.msra.mxu1 %v4218_v11 }
0x1ecd   :  { %3313 = vmatprep.subr.bf16.mxu1 %v3697_v4 }
0x1ed0   :  { %3315 = vmatpush1.bf16.msra.mxu1 %v4228_v14 }
0x1ed1   :  { %3316 = vmatprep.subr.bf16.mxu1 %v3697_v4 }
0x1ed4   :  { %3318 = vmatpush1.bf16.msra.mxu1 %v4238_v19 }
0x1ed5   :  { %3319 = vmatprep.subr.bf16.mxu1 %v3697_v4 }
0x1ed8   :  { %3321 = vmatpush1.bf16.msra.mxu1 %v4248_v23 }
0x1ed9   :  { %3322 = vmatprep.subr.bf16.mxu1 %v3697_v4 }
0x1edc   :  { %3324 = vmatpush1.bf16.msra.mxu1 %v4258_v28 }
0x1edd   :  { %3325 = vmatprep.subr.bf16.mxu1 %v3697_v4 }
0x1f8a   :  { %v1347_v63 = vpop.f32.mrb[10].mxu1 }
0x1f8b   :  { %v1348_v0 = vadd.f32 %v4351_v62, %v1347_v63  ;;  %v2892_v1 = vpop.f32.mrb[11].mxu1 }
0x1f8d   :  { %1352 = vst [vmem:[#allocation2 + $0x8] sm:$0xff] %v1348_v0  ;;  %1353 = vmax.xlane.f32.xlu1 %v1348_v0 }
0x201a   :  { %v1354_v7 = vpop.xlane.xlu1 %1353 }
0x201b   :  { %vm1355_vm13 = vcmp.eq.f32.partialorder %v1348_v0, %v1354_v7 }
0x201c   :  { %v1356_v8 = vsel %vm1355_vm13, %v4355_v3, 128.0 }
0x201d   :  { %1357 = vmin.xlane.f32.xlu0 %v1356_v8 }
0x20aa   :  { %v1358_v9 = vpop.xlane.xlu0 %1357 }
0x20ab   :  { %v3511_v12 = vtrunc.f32 %v1358_v9 }
0x20ad   :  { %v3512_v21 = vcvt.f32.s32 %v3511_v12 }
0x20af   :  { %v1365_v27 = vsel %vm1362_vm14, %v2794_v18, %v3512_v21 }
0x20b0   :  { %1367 = vperm.xlu0 %3533, %v1365_v27  }
0x212f   :  { %v1368_v30 = vpop.permute.xlu0 %1367 }
0x2130   :  { %vm1369_vm15 = vcmp.eq.s32.totalorder %v3881_v35, %v1368_v30 }
0x2131   :  { %2798 = vmatmul.mubr.msk.f32.vlgmr.msra.gmra.mrb[12].mxu1 %vm1369_vm15, %v3699_v37 }
0x2132   :  { %3327 = vmatpush3.bf16.msra.mxu1 %v4309_v55  ;;  %2901 = vmatprep.mubr.msk.f32.mxu1 %vm3702_vm12, %v4314_v57 }
0x2133   :  { %3328 = vmatprep.subr.bf16.mxu1 %v3697_v4 }
0x2136   :  { %3330 = vmatpush3.bf16.msra.mxu1 %v4319_v58 }
0x2137   :  { %3361 = vmatprep.subr.bf16.mxu1 %v3697_v4 }
0x2204   :  { %v1465_v33 = vpop.f32.mrb[12].mxu1 }
0x2205   :  { %v1466_v13 = vadd.f32 %v4291_v36, %v1465_v33  ;;  %v1467_v16 = vpop.f32.mrb[13].mxu1 }
0x2207   :  { %3623 = vtanh.f32 %v1466_v13  ;;  %v2799_v20 = vmul.f32 -1.442695, %v1466_v13 }
0x2209   :  { %3625 = vpow2.f32 %v2799_v20 }
0x2211   :  { %v3624_v17 = vpop.eup %3623 }
0x2212   :  { %1478 = vrot.lane.b32.xlu1 %v3624_v17, %s3700_s10 }
0x2213   :  { %v3626_v22 = vpop.eup %3625 }
0x2214   :  { %v1472_v25 = vadd.f32 1.0, %v3626_v22 }
0x2216   :  { %3627 = vrcp.f32 %v1472_v25 }
0x2220   :  { %v3628_v26 = vpop.eup %3627 }
0x2221   :  { %v1476_v32 = vmul.f32 %v3628_v26, %v4297_v51 }
0x2284   :  { %v1479_v29 = vpop.permute.xlu1 %1478 }
0x2285   :  { %v1481_v31 = vmul.f32 %v3628_v26, %v1479_v29 }
0x2287   :  { %1483 = vrot.lane.b32.xlu1 %v1481_v31, %s3701_s4 }
0x22f9   :  { %v1484_v34 = vpop.permute.xlu1 %1483 }
0x22fa   :  { %v4376_v39 = vadd.f32 %v1484_v34, %v1476_v32 }
0x22fc   :  { %3629 = vtanh.f32 %v4376_v39 }
0x2306   :  { %v3630_v40 = vpop.eup %3629 }
0x2307   :  { %1489 = vrot.lane.b32.xlu0 %v3630_v40, %s3700_s10 }
0x2379   :  { %v1490_v41 = vpop.permute.xlu0 %1489 }
0x237a   :  { %v1492_v42 = vmul.f32 %v3628_v26, %v1490_v41 }
0x237c   :  { %1505 = vrot.lane.b32.xlu1 %v1492_v42, %s3701_s4 }
0x23ee   :  { %v1506_v43 = vpop.permute.xlu1 %1505 }
0x23ef   :  { %2902 = vmatmul.mubr.msk.f32.vlgmr.msra.gmra.mrb[14].mxu1 %vm70_vm1, %v1506_v43  ;;  %2806 = vmatprep.mubr.msk.f32.mxu0 %vm70_vm1, %v1506_v43 }
0x23f0   :  { %3363 = vmatpush3.bf16.msra.mxu1 %v4309_v55  ;;  %2912 = vmatprep.mubr.msk.f32.mxu1 %vm3702_vm12, %v4314_v57 }
0x23f1   :  { %3364 = vmatprep.subr.bf16.mxu1 %v3697_v4 }
0x23f4   :  { %3366 = vmatpush3.bf16.msra.mxu1 %v4319_v58 }
0x23f5   :  { %3367 = vmatprep.subr.bf16.mxu1 %v3697_v4 }
0x24c2   :  { %v1575_v44 = vpop.f32.mrb[14].mxu1 }
0x24c3   :  { %v1576_v45 = vadd.f32 %v4351_v62, %v1575_v44  ;;  %v2903_v46 = vpop.f32.mrb[15].mxu1 }
0x24c5   :  { %1580 = vst [vmem:[#allocation2 + $0x10] sm:$0xff] %v1576_v45  ;;  %1581 = vmax.xlane.f32.xlu0 %v1576_v45 }
0x2552   :  { %v1582_v47 = vpop.xlane.xlu0 %1581 }
0x2553   :  { %vm1583_vm0 = vcmp.eq.f32.partialorder %v1576_v45, %v1582_v47 }
0x2554   :  { %v1584_v48 = vsel %vm1583_vm0, %v4355_v3, 128.0 }
0x2555   :  { %1585 = vmin.xlane.f32.xlu1 %v1584_v48 }
0x25e2   :  { %v1586_v50 = vpop.xlane.xlu1 %1585 }
0x25e3   :  { %v3513_v51 = vtrunc.f32 %v1586_v50 }
0x25e5   :  { %v3514_v53 = vcvt.f32.s32 %v3513_v51 }
0x25e7   :  { %v1593_v54 = vsel %vm1590_vm2, %v2803_v52, %v3514_v53 }
0x25e8   :  { %1595 = vperm.xlu0 %3533, %v1593_v54  }
0x2667   :  { %v1596_v56 = vpop.permute.xlu0 %1595 }
0x2668   :  { %vm1597_vm3 = vcmp.eq.s32.totalorder %v3881_v35, %v1596_v56 }
0x2669   :  { %2807 = vmatmul.mubr.msk.f32.vlgmr.msra.gmra.mrb[12].mxu0 %vm1597_vm3, %v3699_v37 }
0x266a   :  { %3405 = vmatpush1.bf16.msra.mxu0 %v4171_v2 }
0x266b   :  { %3406 = vmatprep.subr.bf16.mxu0 %v3697_v4 }
0x266e   :  { %3408 = vmatpush1.bf16.msra.mxu0 %v4177_v6 }
0x266f   :  { %3409 = vmatprep.subr.bf16.mxu0 %v3697_v4 }
0x2672   :  { %3411 = vmatpush1.bf16.msra.mxu0 %v4187_v10 }
0x2673   :  { %3412 = vmatprep.subr.bf16.mxu0 %v3697_v4 }
0x2676   :  { %3414 = vmatpush1.bf16.msra.mxu0 %v4198_v15 }
0x2677   :  { %3415 = vmatprep.subr.bf16.mxu0 %v3697_v4 }
0x267a   :  { %3417 = vmatpush1.bf16.msra.mxu0 %v4208_v24 }
0x267b   :  { %3418 = vmatprep.subr.bf16.mxu0 %v3697_v4 }
0x267e   :  { %3420 = vmatpush1.bf16.msra.mxu0 %v4218_v11 }
0x267f   :  { %3421 = vmatprep.subr.bf16.mxu0 %v3697_v4 }
0x2682   :  { %3423 = vmatpush1.bf16.msra.mxu0 %v4228_v14 }
0x2683   :  { %3424 = vmatprep.subr.bf16.mxu0 %v3697_v4 }
0x2686   :  { %3426 = vmatpush1.bf16.msra.mxu0 %v4238_v19 }
0x2687   :  { %3427 = vmatprep.subr.bf16.mxu0 %v3697_v4 }
0x268a   :  { %3429 = vmatpush1.bf16.msra.mxu0 %v4248_v23 }
0x268b   :  { %3430 = vmatprep.subr.bf16.mxu0 %v3697_v4 }
0x268e   :  { %3432 = vmatpush1.bf16.msra.mxu0 %v4258_v28 }
0x268f   :  { %3469 = vmatprep.subr.bf16.mxu0 %v3697_v4 }
0x273c   :  { %v1693_v59 = vpop.f32.mrb[12].mxu0 }
0x273d   :  { %v1694_v38 = vadd.f32 %v4291_v36, %v1693_v59  ;;  %v1695_v60 = vpop.f32.mrb[13].mxu0 }
0x273f   :  { %3631 = vtanh.f32 %v1694_v38  ;;  %v2808_v63 = vmul.f32 -1.442695, %v1694_v38 }
0x2741   :  { %3633 = vpow2.f32 %v2808_v63 }
0x2749   :  { %v3632_v61 = vpop.eup %3631 }
0x274a   :  { %1706 = vrot.lane.b32.xlu1 %v3632_v61, %s3700_s10 }
0x274b   :  { %v3634_v0 = vpop.eup %3633 }
0x274c   :  { %v1700_v1 = vadd.f32 1.0, %v3634_v0 }
0x274e   :  { %3635 = vrcp.f32 %v1700_v1 }
0x2758   :  { %v3636_v7 = vpop.eup %3635 }
0x2759   :  { %v1704_v9 = vmul.f32 %v3636_v7, %v4376_v39 }
0x27bc   :  { %v1707_v8 = vpop.permute.xlu1 %1706 }
0x27bd   :  { %v1709_v5 = vmul.f32 %v3636_v7, %v1707_v8 }
0x27bf   :  { %1711 = vrot.lane.b32.xlu0 %v1709_v5, %s3701_s4 }
0x2831   :  { %v1712_v12 = vpop.permute.xlu0 %1711 }
0x2832   :  { %v4423_v18 = vadd.f32 %v1712_v12, %v1704_v9 }
0x2834   :  { %3637 = vtanh.f32 %v4423_v18 }
0x283e   :  { %v3638_v21 = vpop.eup %3637 }
0x283f   :  { %1717 = vrot.lane.b32.xlu1 %v3638_v21, %s3700_s10 }
0x28b1   :  { %v1718_v27 = vpop.permute.xlu1 %1717 }
0x28b2   :  { %v1720_v30 = vmul.f32 %v3636_v7, %v1718_v27 }
0x28b4   :  { %1733 = vrot.lane.b32.xlu0 %v1720_v30, %s3701_s4 }
0x2926   :  { %v1734_v33 = vpop.permute.xlu0 %1733 }
0x2927   :  { %2913 = vmatmul.mubr.msk.f32.vlgmr.msra.gmra.mrb[16].mxu1 %vm70_vm1, %v1734_v33 }
0x2928   :  { %2815 = vmatprep.mubr.msk.f32.mxu1 %vm70_vm1, %v1734_v33  ;;  %3369 = vmatpush1.bf16.msra.mxu1 %v4171_v2 }
0x2929   :  { %3370 = vmatprep.subr.bf16.mxu1 %v3697_v4 }
0x292c   :  { %3372 = vmatpush1.bf16.msra.mxu1 %v4177_v6 }
0x292d   :  { %3373 = vmatprep.subr.bf16.mxu1 %v3697_v4 }
0x2930   :  { %3375 = vmatpush1.bf16.msra.mxu1 %v4187_v10 }
0x2931   :  { %3376 = vmatprep.subr.bf16.mxu1 %v3697_v4 }
0x2934   :  { %3378 = vmatpush1.bf16.msra.mxu1 %v4198_v15 }
0x2935   :  { %3379 = vmatprep.subr.bf16.mxu1 %v3697_v4 }
0x2938   :  { %3381 = vmatpush1.bf16.msra.mxu1 %v4208_v24 }
0x2939   :  { %3382 = vmatprep.subr.bf16.mxu1 %v3697_v4 }
0x293c   :  { %3384 = vmatpush1.bf16.msra.mxu1 %v4218_v11  ;;  %v2811_v11 = vld [vmem:[%s4697_s2 + $0x18] sm:$0xff] }
0x293d   :  { %3385 = vmatprep.subr.bf16.mxu1 %v3697_v4  ;;  %vm1818_vm5 = vcmp.ne.s32.totalorder %v2811_v11, 0  ;;  %v2284_v11 = vld [vmem:[%s4700_s5] sm:$0xff] }
0x2940   :  { %3387 = vmatpush1.bf16.msra.mxu1 %v4228_v14 }
0x2941   :  { %3388 = vmatprep.subr.bf16.mxu1 %v3697_v4 }
0x2944   :  { %3390 = vmatpush1.bf16.msra.mxu1 %v4238_v19 }
0x2945   :  { %3391 = vmatprep.subr.bf16.mxu1 %v3697_v4 }
0x2948   :  { %3393 = vmatpush1.bf16.msra.mxu1 %v4248_v23  ;;  %v2812_v23 = vld [vmem:[%s4696_s1 + $0x18] sm:$0xff] }
0x2949   :  { %3394 = vmatprep.subr.bf16.mxu1 %v3697_v4 }
0x294c   :  { %3396 = vmatpush1.bf16.msra.mxu1 %v4258_v28 }
0x294d   :  { %3397 = vmatprep.subr.bf16.mxu1 %v3697_v4 }
0x29fa   :  { %v1803_v2 = vpop.f32.mrb[16].mxu1 }
0x29fb   :  { %v1804_v6 = vadd.f32 %v4351_v62, %v1803_v2  ;;  %v2914_v10 = vpop.f32.mrb[17].mxu1 }
0x29fd   :  { %1808 = vst [vmem:[#allocation2 + $0x18] sm:$0xff] %v1804_v6  ;;  %1809 = vmax.xlane.f32.xlu1 %v1804_v6 }
0x2a8a   :  { %v1810_v15 = vpop.xlane.xlu1 %1809 }
0x2a8b   :  { %vm1811_vm4 = vcmp.eq.f32.partialorder %v1804_v6, %v1810_v15 }
0x2a8c   :  { %v1812_v24 = vsel %vm1811_vm4, %v4355_v3, 128.0 }
0x2a8d   :  { %1813 = vmin.xlane.f32.xlu0 %v1812_v24 }
0x2b1a   :  { %v1814_v14 = vpop.xlane.xlu0 %1813 }
0x2b1b   :  { %v3515_v19 = vtrunc.f32 %v1814_v14  ;;  %v2285_v14 = vld [vmem:[%s4700_s5 + $0x8] sm:$0xff] }
0x2b1d   :  { %v3516_v28 = vcvt.f32.s32 %v3515_v19  ;;  %v4513_v19 = vpack.c.bf16 %v2285_v14, %v2284_v11  ;;  %v2836_v14 = vld [vmem:[%s4703_s8] ss:$0 sm:$0xff] }
0x2b1f   :  { %v1821_v13 = vsel %vm1818_vm5, %v2812_v23, %v3516_v28  ;;  %v2287_v23 = vld [vmem:[%s4700_s5 + $0x18] sm:$0xff] }
0x2b20   :  { %1823 = vperm.xlu0 %3533, %v1821_v13   ;;  %v2288_v13 = vld [vmem:[%s4700_s5 + $0x20] sm:$0xff] }
0x2b9f   :  { %v1824_v16 = vpop.permute.xlu0 %1823 }
0x2ba0   :  { %vm1825_vm6 = vcmp.eq.s32.totalorder %v3881_v35, %v1824_v16  ;;  %v2289_v16 = vld [vmem:[%s4700_s5 + $0x28] sm:$0xff] }
0x2ba1   :  { %2816 = vmatmul.mubr.msk.f32.vlgmr.msra.gmra.mrb[18].mxu1 %vm1825_vm6, %v3699_v37 }
0x2ba2   :  { %3399 = vmatpush3.bf16.msra.mxu1 %v4309_v55  ;;  %2923 = vmatprep.mubr.msk.f32.mxu1 %vm3702_vm12, %v4314_v57 }
0x2ba3   :  { %3400 = vmatprep.subr.bf16.mxu1 %v3697_v4 }
0x2ba6   :  { %3402 = vmatpush3.bf16.msra.mxu1 %v4319_v58 }
0x2ba7   :  { %3433 = vmatprep.subr.bf16.mxu1 %v3697_v4 }
0x2c74   :  { %v1921_v17 = vpop.f32.mrb[18].mxu1 }
0x2c75   :  { %v1922_v20 = vadd.f32 %v4291_v36, %v1921_v17  ;;  %v1923_v22 = vpop.f32.mrb[19].mxu1  ;;  %v4529_v17 = vpack.c.bf16 %v2289_v16, %v2288_v13 }
0x2c76   :  { %v2291_v22 = vld [vmem:[%s4700_s5 + $0x38] sm:$0xff] }
0x2c77   :  { %3639 = vtanh.f32 %v1922_v20  ;;  %v2817_v26 = vmul.f32 -1.442695, %v1922_v20  ;;  %v2290_v20 = vld [vmem:[%s4700_s5 + $0x30] sm:$0xff] }
0x2c79   :  { %3641 = vpow2.f32 %v2817_v26  ;;  %v2292_v26 = vld [vmem:[%s4700_s5 + $0x40] sm:$0xff] }
0x2c81   :  { %v3640_v25 = vpop.eup %3639 }
0x2c82   :  { %1934 = vrot.lane.b32.xlu1 %v3640_v25, %s3700_s10  ;;  %v4539_v25 = vpack.c.bf16 %v2291_v22, %v2290_v20  ;;  %v2839_v20 = vld [vmem:[%s4696_s1 + $0x30] sm:$0xff] }
0x2c83   :  { %v3642_v29 = vpop.eup %3641 }
0x2c84   :  { %v1928_v31 = vadd.f32 1.0, %v3642_v29  ;;  %v2293_v29 = vld [vmem:[%s4700_s5 + $0x48] sm:$0xff] }
0x2c86   :  { %3643 = vrcp.f32 %v1928_v31  ;;  %v4549_v31 = vpack.c.bf16 %v2293_v29, %v2292_v26 }
0x2c90   :  { %v3644_v32 = vpop.eup %3643 }
0x2c91   :  { %v1932_v40 = vmul.f32 %v3644_v32, %v4423_v18 }
0x2cf4   :  { %v1935_v34 = vpop.permute.xlu1 %1934 }
0x2cf5   :  { %v1937_v39 = vmul.f32 %v3644_v32, %v1935_v34  ;;  %v2295_v34 = vld [vmem:[%s4700_s5 + $0x58] sm:$0xff] }
0x2cf7   :  { %1939 = vrot.lane.b32.xlu1 %v1937_v39, %s3701_s4 }
0x2d69   :  { %v1940_v41 = vpop.permute.xlu1 %1939 }
0x2d6a   :  { %v1942_v42 = vadd.f32 %v1940_v41, %v1932_v40  ;;  %v2296_v40 = vld [vmem:[%s4700_s5 + $0x60] sm:$0xff]  ;;  %v2297_v41 = vld [vmem:[%s4700_s5 + $0x68] sm:$0xff] }
0x2d6c   :  { %3645 = vtanh.f32 %v1942_v42 }
0x2d76   :  { %v3646_v43 = vpop.eup %3645 }
0x2d77   :  { %1945 = vrot.lane.b32.xlu0 %v3646_v43, %s3700_s10  ;;  %v2298_v43 = vld [vmem:[%s4700_s5 + $0x70] sm:$0xff] }
0x2de9   :  { %v1946_v44 = vpop.permute.xlu0 %1945 }
0x2dea   :  { %v1948_v45 = vmul.f32 %v3644_v32, %v1946_v44  ;;  %v2294_v32 = vld [vmem:[%s4700_s5 + $0x50] sm:$0xff]  ;;  %v2299_v44 = vld [vmem:[%s4700_s5 + $0x78] sm:$0xff] }
0x2deb   :  { %v4559_v39 = vpack.c.bf16 %v2295_v34, %v2294_v32 }
0x2dec   :  { %1961 = vrot.lane.b32.xlu1 %v1948_v45, %s3701_s4  ;;  %v4579_v45 = vpack.c.bf16 %v2299_v44, %v2298_v43 }
0x2e5e   :  { %v1962_v46 = vpop.permute.xlu1 %1961 }
0x2e5f   :  { %2924 = vmatmul.mubr.msk.f32.vlgmr.msra.gmra.mrb[20].mxu1 %vm70_vm1, %v1962_v46  ;;  %2824 = vmatprep.mubr.msk.f32.mxu0 %vm70_vm1, %v1962_v46  ;;  %v2300_v46 = vld [vmem:[%s4700_s5 + $0x80] sm:$0xff] }
0x2e60   :  { %3435 = vmatpush3.bf16.msra.mxu1 %v4309_v55  ;;  %2934 = vmatprep.mubr.msk.f32.mxu1 %vm3702_vm12, %v4314_v57  ;;  %v2820_v55 = vld [vmem:[%s4697_s2 + $0x20] sm:$0xff] }
0x2e61   :  { %3436 = vmatprep.subr.bf16.mxu1 %v3697_v4  ;;  %vm2046_vm8 = vcmp.ne.s32.totalorder %v2820_v55, 0  ;;  %v2829_v55 = vld [vmem:[%s4697_s2 + $0x28] sm:$0xff] }
0x2e62   :  { %vm2274_vm11 = vcmp.ne.s32.totalorder %v2829_v55, 0 }
0x2e64   :  { %3438 = vmatpush3.bf16.msra.mxu1 %v4319_v58  ;;  %v2821_v58 = vld [vmem:[%s4696_s1 + $0x20] sm:$0xff] }
0x2e65   :  { %3439 = vmatprep.subr.bf16.mxu1 %v3697_v4 }
0x2f32   :  { %v2031_v47 = vpop.f32.mrb[20].mxu1 }
0x2f33   :  { %v2032_v48 = vadd.f32 %v4351_v62, %v2031_v47  ;;  %v2925_v49 = vpop.f32.mrb[21].mxu1  ;;  %v2301_v47 = vld [vmem:[%s4700_s5 + $0x88] sm:$0xff] }
0x2f34   :  { %v2302_v49 = vld [vmem:[%s4700_s5 + $0x90] sm:$0xff] }
0x2f35   :  { %2036 = vst [vmem:[#allocation2 + $0x20] sm:$0xff] %v2032_v48  ;;  %2037 = vmax.xlane.f32.xlu0 %v2032_v48 }
0x2fc2   :  { %v2038_v50 = vpop.xlane.xlu0 %2037 }
0x2fc3   :  { %vm2039_vm7 = vcmp.eq.f32.partialorder %v2032_v48, %v2038_v50  ;;  %v4589_v48 = vpack.c.bf16 %v2301_v47, %v2300_v46  ;;  %v2303_v50 = vld [vmem:[%s4700_s5 + $0x98] sm:$0xff] }
0x2fc4   :  { %v2040_v51 = vsel %vm2039_vm7, %v4355_v3, 128.0 }
0x2fc5   :  { %2041 = vmin.xlane.f32.xlu1 %v2040_v51  ;;  %v4599_v51 = vpack.c.bf16 %v2303_v50, %v2302_v49 }
0x3052   :  { %v2042_v52 = vpop.xlane.xlu1 %2041 }
0x3053   :  { %v3517_v53 = vtrunc.f32 %v2042_v52 }
0x3055   :  { %v3518_v54 = vcvt.f32.s32 %v3517_v53 }
0x3057   :  { %v2049_v56 = vsel %vm2046_vm8, %v2821_v58, %v3518_v54  ;;  %v2830_v58 = vld [vmem:[%s4696_s1 + $0x28] sm:$0xff]  ;;  %s3703_s1 = smov [#allocation2]  }
0x3058   :  { %2051 = vperm.xlu0 %3533, %v2049_v56  }
0x30d7   :  { %v2052_v59 = vpop.permute.xlu0 %2051 }
0x30d8   :  { %vm2053_vm9 = vcmp.eq.s32.totalorder %v3881_v35, %v2052_v59 }
0x30d9   :  { %2825 = vmatmul.mubr.msk.f32.vlgmr.msra.gmra.mrb[14].mxu0 %vm2053_vm9, %v3699_v37 }
0x30da   :  { %2945 = vmatprep.mubr.msk.f32.mxu0 %vm3702_vm12, %v4314_v57 }
0x31ac   :  { %v2149_v38 = vpop.f32.mrb[14].mxu0 }
0x31ad   :  { %v2150_v60 = vadd.f32 %v4291_v36, %v2149_v38  ;;  %v2151_v61 = vpop.f32.mrb[15].mxu0  ;;  %v4617_v38 = vld [vmem:[%s4701_s6] ss:$0 sm:$0xff] }
0x31af   :  { %3647 = vtanh.f32 %v2150_v60  ;;  %v2826_v0 = vmul.f32 -1.442695, %v2150_v60 }
0x31b1   :  { %3649 = vpow2.f32 %v2826_v0 }
0x31b9   :  { %v3648_v63 = vpop.eup %3647 }
0x31ba   :  { %2162 = vrot.lane.b32.xlu1 %v3648_v63, %s3700_s10 }
0x31bb   :  { %v3650_v1 = vpop.eup %3649 }
0x31bc   :  { %v2156_v7 = vadd.f32 1.0, %v3650_v1 }
0x31be   :  { %3651 = vrcp.f32 %v2156_v7 }
0x31c8   :  { %v3652_v8 = vpop.eup %3651 }
0x31c9   :  { %v2160_v12 = vmul.f32 %v3652_v8, %v1942_v42  ;;  %v4569_v42 = vpack.c.bf16 %v2297_v41, %v2296_v40 }
0x322c   :  { %v2163_v5 = vpop.permute.xlu1 %2162 }
0x322d   :  { %v2165_v9 = vmul.f32 %v3652_v8, %v2163_v5 }
0x322f   :  { %2167 = vrot.lane.b32.xlu0 %v2165_v9, %s3701_s4 }
0x32a1   :  { %v2168_v18 = vpop.permute.xlu0 %2167 }
0x32a2   :  { %v4495_v21 = vadd.f32 %v2168_v18, %v2160_v12 }
0x32a4   :  { %3653 = vtanh.f32 %v4495_v21 }
0x32ae   :  { %v3654_v36 = vpop.eup %3653 }
0x32af   :  { %2173 = vrot.lane.b32.xlu1 %v3654_v36, %s3700_s10 }
0x3321   :  { %v2174_v27 = vpop.permute.xlu1 %2173 }
0x3322   :  { %v2176_v30 = vmul.f32 %v3652_v8, %v2174_v27  ;;  %v2405_v27 = vld [vmem:[%s4702_s7] sm:$0xff] }
0x3324   :  { %2189 = vrot.lane.b32.xlu0 %v2176_v30, %s3701_s4  ;;  %v2406_v30 = vld [vmem:[%s4702_s7 + $0x8] sm:$0xff] }
0x3396   :  { %v2190_v33 = vpop.permute.xlu0 %2189 }
0x3397   :  { %2935 = vmatmul.mubr.msk.f32.vlgmr.msra.gmra.mrb[22].mxu1 %vm70_vm1, %v2190_v33 }
0x3398   :  { %2833 = vmatprep.mubr.msk.f32.mxu1 %vm70_vm1, %v2190_v33  ;;  %3441 = vmatpush1.bf16.msra.mxu1 %v4513_v19  ;;  %v2407_v33 = vld [vmem:[%s4702_s7 + $0x10] sm:$0xff] }
0x3399   :  { %3442 = vmatprep.subr.bf16.mxu1 %v3697_v4 }
0x346a   :  { %v2259_v2 = vpop.f32.mrb[22].mxu1 }
0x346b   :  { %v2260_v6 = vadd.f32 %v4351_v62, %v2259_v2  ;;  %v2936_v10 = vpop.f32.mrb[23].mxu1  ;;  %v2286_v62 = vld [vmem:[%s4700_s5 + $0x10] sm:$0xff]  ;;  %v3470_v2 = vpack.c.bf16 %v2406_v30, %v2405_v27 }
0x346c   :  { %v4519_v28 = vpack.c.bf16 %v2287_v23, %v2286_v62 }
0x346d   :  { %2264 = vst [vmem:[#allocation2 + $0x28] sm:$0xff] %v2260_v6  ;;  %2265 = vmax.xlane.f32.xlu1 %v2260_v6  ;;  %3471 = vmatpush3.bf16.msra.mxu0 %v3470_v2 }
0x346e   :  { %3444 = vmatpush1.bf16.msra.mxu1 %v4519_v28  ;;  %3472 = vmatprep.subr.bf16.mxu0 %v3697_v4 }
0x346f   :  { %3445 = vmatprep.subr.bf16.mxu1 %v3697_v4 }
0x3472   :  { %3447 = vmatpush1.bf16.msra.mxu1 %v4529_v17 }
0x3473   :  { %3448 = vmatprep.subr.bf16.mxu1 %v3697_v4 }
0x3476   :  { %3450 = vmatpush1.bf16.msra.mxu1 %v4539_v25 }
0x3477   :  { %3451 = vmatprep.subr.bf16.mxu1 %v3697_v4 }
0x347a   :  { %3453 = vmatpush1.bf16.msra.mxu1 %v4549_v31 }
0x347b   :  { %3454 = vmatprep.subr.bf16.mxu1 %v3697_v4 }
0x347e   :  { %3456 = vmatpush1.bf16.msra.mxu1 %v4559_v39 }
0x347f   :  { %3457 = vmatprep.subr.bf16.mxu1 %v3697_v4 }
0x3482   :  { %3459 = vmatpush1.bf16.msra.mxu1 %v4569_v42 }
0x3483   :  { %3460 = vmatprep.subr.bf16.mxu1 %v3697_v4 }
0x3486   :  { %3462 = vmatpush1.bf16.msra.mxu1 %v4579_v45 }
0x3487   :  { %3463 = vmatprep.subr.bf16.mxu1 %v3697_v4 }
0x348a   :  { %3465 = vmatpush1.bf16.msra.mxu1 %v4589_v48 }
0x348b   :  { %3466 = vmatprep.subr.bf16.mxu1 %v3697_v4 }
0x348e   :  { %3468 = vmatpush1.bf16.msra.mxu1 %v4599_v51 }
0x348f   :  { %3505 = vmatprep.subr.bf16.mxu1 %v3697_v4 }
0x34fa   :  { %v2266_v15 = vpop.xlane.xlu1 %2265 }
0x34fb   :  { %vm2267_vm10 = vcmp.eq.f32.partialorder %v2260_v6, %v2266_v15 }
0x34fc   :  { %v2268_v24 = vsel %vm2267_vm10, %v4355_v3, 128.0 }
0x34fd   :  { %2269 = vmin.xlane.f32.xlu0 %v2268_v24 }
0x358a   :  { %v2270_v52 = vpop.xlane.xlu0 %2269 }
0x358b   :  { %v3519_v53 = vtrunc.f32 %v2270_v52 }
0x358d   :  { %v3520_v54 = vcvt.f32.s32 %v3519_v53 }
0x358f   :  { %v2277_v56 = vsel %vm2274_vm11, %v2830_v58, %v3520_v54 }
0x3590   :  { %2279 = vperm.xlu0 %3533, %v2277_v56  }
0x360f   :  { %v2280_v59 = vpop.permute.xlu0 %2279 }
0x3610   :  { %vm2281_vm13 = vcmp.eq.s32.totalorder %v3881_v35, %v2280_v59 }
0x3611   :  { %2834 = vmatmul.mubr.msk.f32.vlgmr.msra.gmra.mrb[24].mxu1 %vm2281_vm13, %v3699_v37 }
0x3612   :  { %2956 = vmatprep.mubr.msk.f32.mxu1 %vm3702_vm12, %v4314_v57  ;;  %3507 = vmatpush3.bf16.msra.mxu1 %v3470_v2 }
0x3613   :  { %3508 = vmatprep.subr.bf16.mxu1 %v3697_v4 }
0x36e4   :  { %v2377_v60 = vpop.f32.mrb[24].mxu1 }
0x36e5   :  { %v2378_v61 = vadd.f32 %v4617_v38, %v2377_v60  ;;  %v2379_v63 = vpop.f32.mrb[25].mxu1 }
0x36e7   :  { %3655 = vtanh.f32 %v2378_v61  ;;  %v2835_v1 = vmul.f32 -1.442695, %v2378_v61 }
0x36e9   :  { %3657 = vpow2.f32 %v2835_v1 }
0x36f1   :  { %v3656_v0 = vpop.eup %3655 }
0x36f2   :  { %2390 = vrot.lane.b32.xlu1 %v3656_v0, %s3700_s10 }
0x36f3   :  { %v3658_v7 = vpop.eup %3657 }
0x36f4   :  { %v2384_v8 = vadd.f32 1.0, %v3658_v7 }
0x36f6   :  { %3659 = vrcp.f32 %v2384_v8 }
0x3700   :  { %v3660_v5 = vpop.eup %3659 }
0x3701   :  { %v2388_v12 = vmul.f32 %v3660_v5, %v4495_v21  ;;  %v2408_v21 = vld [vmem:[%s4702_s7 + $0x18] sm:$0xff] }
0x3702   :  { %v3473_v6 = vpack.c.bf16 %v2408_v21, %v2407_v33 }
0x3704   :  { %3474 = vmatpush3.bf16.msra.mxu0 %v3473_v6  ;;  %3510 = vmatpush3.bf16.msra.mxu1 %v3473_v6 }
0x3705   :  { %3475 = vmatprep.subr.bf16.mxu0 %v3697_v4 }
0x3764   :  { %v2391_v57 = vpop.permute.xlu1 %2390 }
0x3765   :  { %v2393_v9 = vmul.f32 %v3660_v5, %v2391_v57 }
0x3767   :  { %2395 = vrot.lane.b32.xlu1 %v2393_v9, %s3701_s4 }
0x37d9   :  { %v2396_v18 = vpop.permute.xlu1 %2395 }
0x37da   :  { %v4623_v36 = vadd.f32 %v2396_v18, %v2388_v12 }
0x37dc   :  { %3661 = vtanh.f32 %v4623_v36 }
0x37e6   :  { %v3662_v10 = vpop.eup %3661 }
0x37e7   :  { %2401 = vrot.lane.b32.xlu0 %v3662_v10, %s3700_s10 }
0x3859   :  { %v2402_v15 = vpop.permute.xlu0 %2401 }
0x385a   :  { %v2404_v24 = vmul.f32 %v3660_v5, %v2402_v15 }
0x385c   :  { %2417 = vrot.lane.b32.xlu1 %v2404_v24, %s3701_s4 }
0x38ce   :  { %v2418_v11 = vpop.permute.xlu1 %2417 }
0x38cf   :  { %2946 = vmatmul.mubr.msk.f32.vlgmr.msra.gmra.mrb[16].mxu0 %vm70_vm1, %v2418_v11 }
0x38d0   :  { %2842 = vmatprep.mubr.msk.f32.mxu0 %vm70_vm1, %v2418_v11  ;;  %3477 = vmatpush1.bf16.msra.mxu0 %v4513_v19 }
0x38d1   :  { %3478 = vmatprep.subr.bf16.mxu0 %v3697_v4 }
0x38d4   :  { %3480 = vmatpush1.bf16.msra.mxu0 %v4519_v28 }
0x38d5   :  { %3481 = vmatprep.subr.bf16.mxu0 %v3697_v4 }
0x38d8   :  { %3483 = vmatpush1.bf16.msra.mxu0 %v4529_v17 }
0x38d9   :  { %3484 = vmatprep.subr.bf16.mxu0 %v3697_v4 }
0x38dc   :  { %3486 = vmatpush1.bf16.msra.mxu0 %v4539_v25 }
0x38dd   :  { %3487 = vmatprep.subr.bf16.mxu0 %v3697_v4 }
0x38e0   :  { %3489 = vmatpush1.bf16.msra.mxu0 %v4549_v31 }
0x38e1   :  { %3490 = vmatprep.subr.bf16.mxu0 %v3697_v4 }
0x38e4   :  { %3492 = vmatpush1.bf16.msra.mxu0 %v4559_v39 }
0x38e5   :  { %3493 = vmatprep.subr.bf16.mxu0 %v3697_v4 }
0x38e8   :  { %3495 = vmatpush1.bf16.msra.mxu0 %v4569_v42 }
0x38e9   :  { %3496 = vmatprep.subr.bf16.mxu0 %v3697_v4 }
0x38ec   :  { %3498 = vmatpush1.bf16.msra.mxu0 %v4579_v45 }
0x38ed   :  { %3499 = vmatprep.subr.bf16.mxu0 %v3697_v4 }
0x38f0   :  { %3501 = vmatpush1.bf16.msra.mxu0 %v4589_v48 }
0x38f1   :  { %3502 = vmatprep.subr.bf16.mxu0 %v3697_v4  ;;  %v2838_v4 = vld [vmem:[%s4697_s2 + $0x30] sm:$0xff]  ;;  %s2726_s2 = sshll.u32 %s3703_s1, 4  ;;  %s2727_s2 = int_to_ptr.vmem [resolvable:$true] %s2726_s2 }
0x38f2   :  { %vm2502_vm14 = vcmp.ne.s32.totalorder %v2838_v4, 0  ;;  %s3672_s8 = scalar_lea.vmem %s2727_s2, 1024  ;;  %p3677_p1 = scmp.lt.s32.totalorder %s2727_s2, %s2727_s2 }
0x38f3   :  { %p3673_p0 = scmp.ne.s32.totalorder %s2727_s2, %s3672_s8  ;;  %p3678_p2 = scmp.lt.s32.totalorder %s3672_s8, %s3672_s8 }
0x38f4   :  { %3504 = vmatpush1.bf16.msra.mxu0 %v4599_v51 }
0x38f5   :  { %p3679_p3 = por %p3678_p2, %p3677_p1 }
0x38f7   :  { %p3680_p4 = pnand %p3679_p3, %p3673_p0 }
0x39a2   :  { %v2487_v62 = vpop.f32.mrb[16].mxu0 }
0x39a3   :  { %v2488_v19 = vadd.f32 %v2836_v14, %v2487_v62  ;;  %v2947_v23 = vpop.f32.mrb[17].mxu0 }
0x39a5   :  { %2492 = vst [vmem:[#allocation2 + $0x30] sm:$0xff] %v2488_v19  ;;  %2493 = vmax.xlane.f32.xlu0 %v2488_v19 }
0x3a32   :  { %v2494_v28 = vpop.xlane.xlu0 %2493 }
0x3a33   :  { %vm2495_vm12 = vcmp.eq.f32.partialorder %v2488_v19, %v2494_v28 }
0x3a34   :  { %v2496_v13 = vsel %vm2495_vm12, %v4355_v3, 128.0 }
0x3a35   :  { %2497 = vmin.xlane.f32.xlu1 %v2496_v13 }
0x3ac2   :  { %v2498_v16 = vpop.xlane.xlu1 %2497 }
0x3ac3   :  { %v3521_v17 = vtrunc.f32 %v2498_v16 }
0x3ac5   :  { %v3522_v22 = vcvt.f32.s32 %v3521_v17 }
0x3ac7   :  { %v2505_v25 = vsel %vm2502_vm14, %v2839_v20, %v3522_v22 }
0x3ac8   :  { %2507 = vperm.xlu0 %3533, %v2505_v25  }
0x3b47   :  { %v2508_v26 = vpop.permute.xlu0 %2507 }
0x3b48   :  { %vm2509_vm15 = vcmp.eq.s32.totalorder %v3881_v35, %v2508_v26 }
0x3b49   :  { %2843 = vmatmul.mubr.msk.f32.vlgmr.msra.gmra.mrb[18].mxu0 %vm2509_vm15, %v3699_v37 }
0x3c1c   :  { %v2605_v3 = vpop.f32.mrb[18].mxu0 }
0x3c1d   :  { %v2606_v29 = vadd.f32 %v4617_v38, %v2605_v3  ;;  %v2607_v31 = vpop.f32.mrb[19].mxu0 }
0x3c1f   :  { %3663 = vtanh.f32 %v2606_v29  ;;  %v2844_v34 = vmul.f32 -1.442695, %v2606_v29 }
0x3c21   :  { %3665 = vpow2.f32 %v2844_v34 }
0x3c29   :  { %v3664_v32 = vpop.eup %3663 }
0x3c2a   :  { %2618 = vrot.lane.b32.xlu1 %v3664_v32, %s3700_s10 }
0x3c2b   :  { %v3666_v39 = vpop.eup %3665 }
0x3c2c   :  { %v2612_v40 = vadd.f32 1.0, %v3666_v39 }
0x3c2e   :  { %3667 = vrcp.f32 %v2612_v40 }
0x3c38   :  { %v3668_v41 = vpop.eup %3667 }
0x3c39   :  { %v2616_v35 = vmul.f32 %v3668_v41, %v4623_v36 }
0x3c9c   :  { %v2619_v42 = vpop.permute.xlu1 %2618 }
0x3c9d   :  { %v2621_v43 = vmul.f32 %v3668_v41, %v2619_v42 }
0x3c9f   :  { %2623 = vrot.lane.b32.xlu0 %v2621_v43, %s3701_s4 }
0x3d11   :  { %v2624_v37 = vpop.permute.xlu0 %2623 }
0x3d12   :  { %v2626_v44 = vadd.f32 %v2624_v37, %v2616_v35 }
0x3d14   :  { %3669 = vtanh.f32 %v2626_v44 }
0x3d1e   :  { %v3670_v45 = vpop.eup %3669 }
0x3d1f   :  { %2629 = vrot.lane.b32.xlu1 %v3670_v45, %s3700_s10 }
0x3d91   :  { %v2630_v46 = vpop.permute.xlu1 %2629 }
0x3d92   :  { %v2632_v47 = vmul.f32 %v3668_v41, %v2630_v46 }
0x3d94   :  { %2645 = vrot.lane.b32.xlu0 %v2632_v47, %s3701_s4 }
0x3e06   :  { %v2646_v48 = vpop.permute.xlu0 %2645 }
0x3e07   :  { %2957 = vmatmul.mubr.msk.f32.vlgmr.msra.gmra.mrb[26].mxu1 %vm70_vm1, %v2646_v48 }
0x3eda   :  { %v2715_v49 = vpop.f32.mrb[26].mxu1 }
0x3edb   :  { %v2716_v50 = vadd.f32 %v2836_v14, %v2715_v49  ;;  %v2958_v51 = vpop.f32.mrb[27].mxu1 }
0x3edd   :  { %2720 = vst [vmem:[#allocation2 + $0x38] sm:$0xff] %v2716_v50 }
0x3ede   :  { %3683 = shalt.err (!%p3680_p4)
}
0x3edf   :  { %s3684_s4 = scalar_lea.hbm %s4704_s9, 1024 }
0x3ee0   :  { %p3685_p5 = scmp.ne.s32.totalorder %s4704_s9, %s3684_s4  ;;  %p3688_p6 = scmp.lt.u32.totalorder %s3684_s4, %s4704_s9 }
0x3ee2   :  { %p3690_p7 = pnand %p3688_p6, %p3685_p5 }
0x3ee4   :  { %3693 = shalt.err (!%p3690_p7)
}
0x3ee5   :  { %s3704_s0 = smov 128   ;;  %s3705_s29 = smov 8  }
0x3ee6   :  { %2732 = dma.vmem_to_hbm [thread:$0]  %s2727_s2, 1024, %s4704_s9, [#allocation3], %s3704_s0, %s3704_s0, %s3705_s29  }
0x3ee7   :  { %3694 = dma.done.wait [#allocation3], 1024  }
0x3ee8   :  { %3695 = vsyncadd [#allocation3], 4294966272 }
0x3ee9   :  { %2736 = vsyncpa [#allocation3], 1 }

</bundles_post_ra>
